<compile_context>
chip_gen: v5e
topology: v5e:2x2
jax: 0.10.0
libtpu: 0.0.40
codegen_flags: <defaults>
</compile_context>

<pallas_src>
import jax
import jax.numpy as jnp
from jax.experimental import pallas as pl
from jax.experimental.pallas import tpu as pltpu

LANES = 128      # lane width: out-channel padding target
_ROW_TILE = 512  # M tile used only when M is large (v6e/v7x-friendly)


def _round_up(x, m):
    return ((x + m - 1) // m) * m


# ---------------------------------------------------------------------------
# Pallas kernels: fused [BN + ReLU] -> matmul (im2col'd conv)
# ---------------------------------------------------------------------------
def _conv_bn_kernel(a_ref, sb_ref, w_ref, o_ref):
    # a: (TM, K) f32; sb: (2, K) f32 [scale; shift]; w: (K, Np) bf16.
    a = a_ref[...]
    a = jnp.maximum(a * sb_ref[0:1, :] + sb_ref[1:2, :], 0.0)   # folded BN+ReLU
    o_ref[...] = jnp.dot(a.astype(jnp.bfloat16), w_ref[...],
                         preferred_element_type=jnp.float32)


def _conv_plain_kernel(a_ref, w_ref, o_ref):
    o_ref[...] = jnp.dot(a_ref[...].astype(jnp.bfloat16), w_ref[...],
                         preferred_element_type=jnp.float32)


def fused_conv_matmul(a, w_packed, sb_k=None):
    """a: (M, K) f32, w_packed: (K, Np) bf16, sb_k: (2, K) f32 or None.
    Returns (M, Np) f32 = [relu(a*scale+shift)] @ w  (prologue only if sb_k)."""
    M, K = a.shape
    Kw, Np = w_packed.shape
    assert K == Kw and Np % LANES == 0
    # Full-M block for the small M's here; 512-row tiles (ragged last block
    # handled by Pallas) once M grows.
    tm = M if M <= 1024 else _ROW_TILE
    grid = (pl.cdiv(M, tm),)
    out_shape = jax.ShapeDtypeStruct((M, Np), jnp.float32)
    a_spec = pl.BlockSpec((tm, K), lambda i: (i, 0))
    w_spec = pl.BlockSpec((K, Np), lambda i: (0, 0))
    o_spec = pl.BlockSpec((tm, Np), lambda i: (i, 0))
    cp = pltpu.CompilerParams(dimension_semantics=("parallel",))
    if sb_k is not None:
        return pl.pallas_call(
            _conv_bn_kernel,
            out_shape=out_shape,
            grid=grid,
            in_specs=[a_spec, pl.BlockSpec((2, K), lambda i: (0, 0)), w_spec],
            out_specs=o_spec,
            compiler_params=cp,
        )(a, sb_k, w_packed)
    return pl.pallas_call(
        _conv_plain_kernel,
        out_shape=out_shape,
        grid=grid,
        in_specs=[a_spec, w_spec],
        out_specs=o_spec,
        compiler_params=cp,
    )(a, w_packed)


# ---------------------------------------------------------------------------
# Conv layer wrapper (JAX glue around the fused Pallas kernel)
# ---------------------------------------------------------------------------
def conv_layer(x, layer):
    """x: (N,H,W,C) f32.  Implements [BN -> ReLU ->] pad -> Conv2d(bias=False)."""
    N, H, W, C = x.shape
    KH, KW = layer['ksize']
    stride, pad = layer['stride'], layer['pad']
    has_bn = layer['has_bn']

    if pad > 0:
        if has_bn:
            # Neutral pad value so the fused prologue maps padded pixels to 0.
            pv = layer['pad_value']                          # (C,)
            xp = jnp.broadcast_to(pv, (N, H + 2 * pad, W + 2 * pad, C))
            xp = jax.lax.dynamic_update_slice(xp, x, (0, pad, pad, 0))
        else:
            xp = jnp.pad(x, ((0, 0), (pad, pad), (pad, pad), (0, 0)))
    else:
        xp = x

    OH = (H + 2 * pad - KH) // stride + 1
    OW = (W + 2 * pad - KW) // stride + 1

    # im2col patch gather (JAX glue, fused by XLA).  TODO(synk): move into the
    # kernel via tap accumulation to avoid the KH*KW HBM blow-up.
    if KH == 1 and KW == 1 and stride == 1:
        A = xp.reshape(N * OH * OW, C)
    else:
        cols = [xp[:, kh:kh + stride * OH:stride, kw:kw + stride * OW:stride, :]
                for kh in range(KH) for kw in range(KW)]
        A = jnp.concatenate(cols, axis=-1).reshape(N * OH * OW, KH * KW * C)

    out = fused_conv_matmul(A, layer['w_packed'],
                            layer['sb_k'] if has_bn else None)
    O = layer['out_channels']
    return out[:, :O].reshape(N, OH, OW, O)   # drop lane padding once


def upsample_nearest_2x(x):
    """F.interpolate(scale_factor=2, mode='nearest') on NHWC."""
    return jnp.repeat(jnp.repeat(x, 2, axis=1), 2, axis=2)


# ---------------------------------------------------------------------------
# Deterministic parameter construction (mirrors DenseED.__init__)
# ---------------------------------------------------------------------------
def _conv_w(key, o, i, kh, kw):
    fan_in = i * kh * kw
    return jax.random.normal(key, (o, i, kh, kw), jnp.float32) / jnp.sqrt(fan_in)


def _pack_conv(w):
    """(O,I,KH,KW) torch layout -> (KH*KW*I, Np) bf16, Np = roundup(O,128)."""
    O, I, KH, KW = w.shape
    wm = jnp.transpose(w, (2, 3, 1, 0)).reshape(KH * KW * I, O)
    Np = _round_up(O, LANES)
    wm = jnp.pad(wm, ((0, 0), (0, Np - O)))
    return wm.astype(jnp.bfloat16)


def _make_layer(key, in_c, out_c, kh, kw, stride, pad, with_bn, eps=1e-5):
    """One (optional BN+ReLU) + Conv2d layer with all constants prefolded."""
    kk = jax.random.split(key, 5)
    w = _conv_w(kk[0], out_c, in_c, kh, kw)
    layer = {
        'ksize': (kh, kw), 'stride': stride, 'pad': pad,
        'out_channels': out_c, 'has_bn': with_bn,
        'w_packed': _pack_conv(w),
        # HWIO bf16 copy kept only for the pure-JAX reference check.
        'w_hwio': jnp.transpose(w, (2, 3, 1, 0)).astype(jnp.bfloat16),
    }
    if with_bn:
        gamma = jax.random.uniform(kk[1], (in_c,), jnp.float32, 0.5, 1.5)
        beta = 0.1 * jax.random.normal(kk[2], (in_c,), jnp.float32)
        mean = 0.1 * jax.random.normal(kk[3], (in_c,), jnp.float32)
        var = jax.random.uniform(kk[4], (in_c,), jnp.float32, 0.5, 1.5)
        scale = gamma / jnp.sqrt(var + eps)          # folded once at build time
        shift = beta - mean * scale
        layer['sb_k'] = jnp.stack(
            [jnp.tile(scale, kh * kw), jnp.tile(shift, kh * kw)], axis=0)  # (2,K)
        layer['scale_c'] = scale
        layer['shift_c'] = shift
        layer['pad_value'] = jnp.where(scale != 0, -shift / scale, 0.0)
    return layer


def build_dense_ed(key, in_channels, out_channels, imsize, blocks,
                   growth_rate=16, init_features=48):
    """Op list following DenseED.__init__ (drop_rate=0, bottleneck=False,
    upsample='nearest', out_activation=None) with every BN+ReLU fused into the
    following conv.  Nearest upsample commutes with the per-channel BN+ReLU,
    so 'norm-relu-upsample-conv' == 'upsample-(fused BN+ReLU+conv)'."""
    assert len(blocks) == 1 or len(blocks) % 2 == 1
    enc_layers = list(blocks[:len(blocks) // 2])
    dec_layers = list(blocks[len(blocks) // 2:])
    keys = iter(jax.random.split(key, 256))
    ops = []

    # In_conv: Conv(in_channels -> init_features, k7, s2), no preceding BN/ReLU.
    pad0 = 3 if imsize % 2 == 0 else 2
    ops.append(('conv', _make_layer(next(keys), in_channels, init_features,
                                    7, 7, 2, pad0, with_bn=False)))
    nf = init_features

    def add_dense_block(num_layers, nf):
        for i in range(num_layers):
            in_f = nf + i * growth_rate
            ops.append(('dense', _make_layer(next(keys), in_f, growth_rate,
                                             3, 3, 1, 1, with_bn=True)))
        return nf + num_layers * growth_rate

    # Encoder: DenseBlock + transition-down (BN-ReLU-1x1, BN-ReLU-3x3/s2).
    for num_layers in enc_layers:
        nf = add_dense_block(num_layers, nf)
        of = nf // 2
        ops.append(('conv', _make_layer(next(keys), nf, of, 1, 1, 1, 0, True)))
        ops.append(('conv', _make_layer(next(keys), of, of, 3, 3, 2, 1, True)))
        nf = of

    # Decoder: DenseBlock + transition-up (BN-ReLU-1x1, BN-ReLU-upsample-3x3).
    for i, num_layers in enumerate(dec_layers):
        nf = add_dense_block(num_layers, nf)
        if i < len(dec_layers) - 1:
            of = nf // 2
            ops.append(('conv', _make_layer(next(keys), nf, of, 1, 1, 1, 0, True)))
            ops.append(('upsample',))
            ops.append(('conv', _make_layer(next(keys), of, of, 3, 3, 1, 1, True)))
            nf = of

    # last_decoding
    ops.append(('conv', _make_layer(next(keys), nf, nf // 2, 3, 3, 1, 1, True)))
    ops.append(('upsample',))
    ops.append(('conv', _make_layer(next(keys), nf // 2, nf // 4, 3, 3, 1, 1, True)))
    ops.append(('conv', _make_layer(next(keys), nf // 4, out_channels, 4, 4, 1, 2, True)))
    return ops


def dense_ed_forward(ops, x_nchw):
    x = jnp.transpose(x_nchw, (0, 2, 3, 1)).astype(jnp.float32)   # NCHW -> NHWC
    for op in ops:
        kind = op[0]
        if kind == 'conv':
            x = conv_layer(x, op[1])
        elif kind == 'dense':
            y = conv_layer(x, op[1])
            x = jnp.concatenate([x, y], axis=-1)          # torch.cat([x, y], 1)
        elif kind == 'upsample':
            x = upsample_nearest_2x(x)
        else:
            raise ValueError(kind)
    return jnp.transpose(x, (0, 3, 1, 2))                 # NHWC -> NCHW


# ---------------------------------------------------------------------------
# Pure-JAX reference (same math: f32 BN+ReLU, bf16 conv with f32 accumulation)
# ---------------------------------------------------------------------------
def _ref_conv_layer(x, layer):
    if layer['has_bn']:
        x = jnp.maximum(x * layer['scale_c'] + layer['shift_c'], 0.0)
    s, p = layer['stride'], layer['pad']
    return jax.lax.conv_general_dilated(
        x.astype(jnp.bfloat16), layer['w_hwio'],
        window_strides=(s, s), padding=[(p, p), (p, p)],
        dimension_numbers=('NHWC', 'HWIO', 'NHWC'),
        preferred_element_type=jnp.float32)


def dense_ed_reference(ops, x_nchw):
    x = jnp.transpose(x_nchw, (0, 2, 3, 1)).astype(jnp.float32)
    for op in ops:
        if op[0] == 'conv':
            x = _ref_conv_layer(x, op[1])
        elif op[0] == 'dense':
            x = jnp.concatenate([x, _ref_conv_layer(x, op[1])], axis=-1)
        elif op[0] == 'upsample':
            x = upsample_nearest_2x(x)
    return jnp.transpose(x, (0, 3, 1, 2))


# ---------------------------------------------------------------------------
if __name__ == "__main__":
    key = jax.random.PRNGKey(0)
    k_param, k_x = jax.random.split(key)

    in_channels, out_channels, imsize = 2, 2, 16
    blocks = (2, 2, 2)            # 1 encoder block, 2 decoder blocks
    growth_rate, init_features = 4, 16

    ops = build_dense_ed(k_param, in_channels, out_channels, imsize,
                         blocks, growth_rate, init_features)

    x = jax.random.normal(k_x, (2, in_channels, imsize, imsize), jnp.float32)

    fwd = jax.jit(lambda xx: dense_ed_forward(ops, xx))   # fuse the JAX glue
    out = jax.block_until_ready(fwd(x))

    # In_conv s2 (16->8), transdown (8->4), transup (4->8), last upsample
    # (8->16), final k4/pad2 conv (16->17): expect (2, 2, 17, 17).
    assert out.shape == (2, out_channels, 17, 17), out.shape
    assert bool(jnp.all(jnp.isfinite(out)))

    # Numerical check against a pure-JAX reference of the same (bf16-MXU) math.
    ref = jax.block_until_ready(jax.jit(lambda xx: dense_ed_reference(ops, xx))(x))
    max_diff = float(jnp.max(jnp.abs(out - ref)))
    tol = 1e-2 * (1.0 + float(jnp.max(jnp.abs(ref))))
    assert max_diff <= tol, (max_diff, tol)

    print("KERNEL_OK")
</pallas_src>

<mosaic_0001>
module attributes {stable_mosaic.version = 11 : i64} {
  func.func @_conv_plain_kernel(%arg0: i32, %arg1: memref<128x98xf32, #tpu.memory_space<vmem>>, %arg2: memref<98x128xbf16, #tpu.memory_space<vmem>>, %arg3: memref<128x128xf32, #tpu.memory_space<vmem>>) attributes {dimension_semantics = [#tpu.dimension_semantics<parallel>], iteration_bounds = array<i64: 1>, scalar_prefetch = 0 : i64, scratch_operands = 0 : i64, tpu.core_type = #tpu.core_type<tc>, window_params = [{transform_indices = @transform_0, window_bounds = array<i64: 128, 98>}, {pipeline_mode = #tpu.pipeline_mode<synchronous>, transform_indices = @transform_1, window_bounds = array<i64: 98, 128>}, {transform_indices = @transform_2, window_bounds = array<i64: 128, 128>}]} {
    %c0 = arith.constant 0 : index
    %c0_0 = arith.constant 0 : index
    %0 = vector.load %arg1[%c0, %c0_0] : memref<128x98xf32, #tpu.memory_space<vmem>>, vector<128x98xf32>
    %1 = arith.truncf %0 : vector<128x98xf32> to vector<128x98xbf16>
    %c0_1 = arith.constant 0 : index
    %c0_2 = arith.constant 0 : index
    %2 = vector.load %arg2[%c0_1, %c0_2] : memref<98x128xbf16, #tpu.memory_space<vmem>>, vector<98x128xbf16>
    %cst = arith.constant dense<0.000000e+00> : vector<128x128xf32>
    %3 = tpu.matmul %1, %2, %cst {dimension_numbers = #tpu.dot_dimension_numbers<[1], [0], [0], [1], [0, 0, 1, 1], [], []>} : vector<128x98xbf16>, vector<98x128xbf16>, vector<128x128xf32> -> vector<128x128xf32>
    %c0_3 = arith.constant 0 : index
    %c0_4 = arith.constant 0 : index
    %4 = vector.load %arg3[%c0_3, %c0_4] : memref<128x128xf32, #tpu.memory_space<vmem>>, vector<128x128xf32>
    tpu.vector_store %arg3[%c0_3, %c0_4], %3 {strides = array<i32>} : memref<128x128xf32, #tpu.memory_space<vmem>>, vector<128x128xf32>,
    return
  }
  func.func @transform_0(%arg0: i32) -> (i32, i32) {
    %c0_i32 = arith.constant 0 : i32
    %c0_i32_0 = arith.constant 0 : i32
    return %arg0, %c0_i32 : i32, i32
  }
  func.func @transform_1(%arg0: i32) -> (i32, i32) {
    %c0_i32 = arith.constant 0 : i32
    %c0_i32_0 = arith.constant 0 : i32
    %c0_i32_1 = arith.constant 0 : i32
    return %c0_i32, %c0_i32_0 : i32, i32
  }
  func.func @transform_2(%arg0: i32) -> (i32, i32) {
    %c0_i32 = arith.constant 0 : i32
    %c0_i32_0 = arith.constant 0 : i32
    return %arg0, %c0_i32 : i32, i32
  }
}

module attributes {stable_mosaic.version = 11 : i64} {
  func.func @_conv_bn_kernel(%arg0: i32, %arg1: memref<128x144xf32, #tpu.memory_space<vmem>>, %arg2: memref<2x144xf32, #tpu.memory_space<vmem>>, %arg3: memref<144x128xbf16, #tpu.memory_space<vmem>>, %arg4: memref<128x128xf32, #tpu.memory_space<vmem>>) attributes {dimension_semantics = [#tpu.dimension_semantics<parallel>], iteration_bounds = array<i64: 1>, scalar_prefetch = 0 : i64, scratch_operands = 0 : i64, tpu.core_type = #tpu.core_type<tc>, window_params = [{transform_indices = @transform_0, window_bounds = array<i64: 128, 144>}, {pipeline_mode = #tpu.pipeline_mode<synchronous>, transform_indices = @transform_1, window_bounds = array<i64: 2, 144>}, {pipeline_mode = #tpu.pipeline_mode<synchronous>, transform_indices = @transform_2, window_bounds = array<i64: 144, 128>}, {transform_indices = @transform_3, window_bounds = array<i64: 128, 128>}]} {
    %c0 = arith.constant 0 : index
    %c0_0 = arith.constant 0 : index
    %0 = vector.load %arg1[%c0, %c0_0] : memref<128x144xf32, #tpu.memory_space<vmem>>, vector<128x144xf32>
    %c0_1 = arith.constant 0 : index
    %c0_2 = arith.constant 0 : index
    %1 = vector.load %arg2[%c0_1, %c0_2] : memref<2x144xf32, #tpu.memory_space<vmem>>, vector<1x144xf32>
    %2 = vector.broadcast %1 : vector<1x144xf32> to vector<128x144xf32>
    %3 = arith.mulf %0, %2 : vector<128x144xf32>
    %c1 = arith.constant 1 : index
    %c0_3 = arith.constant 0 : index
    %4 = vector.load %arg2[%c1, %c0_3] : memref<2x144xf32, #tpu.memory_space<vmem>>, vector<1x144xf32>
    %5 = vector.broadcast %4 : vector<1x144xf32> to vector<128x144xf32>
    %6 = arith.addf %3, %5 : vector<128x144xf32>
    %cst = arith.constant 0.000000e+00 : f32
    %7 = vector.broadcast %cst : f32 to vector<128x144xf32>
    %8 = arith.maximumf %6, %7 : vector<128x144xf32>
    %9 = arith.truncf %8 : vector<128x144xf32> to vector<128x144xbf16>
    %c0_4 = arith.constant 0 : index
    %c0_5 = arith.constant 0 : index
    %10 = vector.load %arg3[%c0_4, %c0_5] : memref<144x128xbf16, #tpu.memory_space<vmem>>, vector<144x128xbf16>
    %cst_6 = arith.constant dense<0.000000e+00> : vector<128x128xf32>
    %11 = tpu.matmul %9, %10, %cst_6 {dimension_numbers = #tpu.dot_dimension_numbers<[1], [0], [0], [1], [0, 0, 1, 1], [], []>} : vector<128x144xbf16>, vector<144x128xbf16>, vector<128x128xf32> -> vector<128x128xf32>
    %c0_7 = arith.constant 0 : index
    %c0_8 = arith.constant 0 : index
    %12 = vector.load %arg4[%c0_7, %c0_8] : memref<128x128xf32, #tpu.memory_space<vmem>>, vector<128x128xf32>
    tpu.vector_store %arg4[%c0_7, %c0_8], %11 {strides = array<i32>} : memref<128x128xf32, #tpu.memory_space<vmem>>, vector<128x128xf32>,
    return
  }
  func.func @transform_0(%arg0: i32) -> (i32, i32) {
    %c0_i32 = arith.constant 0 : i32
    %c0_i32_0 = arith.constant 0 : i32
    return %arg0, %c0_i32 : i32, i32
  }
  func.func @transform_1(%arg0: i32) -> (i32, i32) {
    %c0_i32 = arith.constant 0 : i32
    %c0_i32_0 = arith.constant 0 : i32
    %c0_i32_1 = arith.constant 0 : i32
    return %c0_i32, %c0_i32_0 : i32, i32
  }
  func.func @transform_2(%arg0: i32) -> (i32, i32) {
    %c0_i32 = arith.constant 0 : i32
    %c0_i32_0 = arith.constant 0 : i32
    %c0_i32_1 = arith.constant 0 : i32
    return %c0_i32, %c0_i32_0 : i32, i32
  }
  func.func @transform_3(%arg0: i32) -> (i32, i32) {
    %c0_i32 = arith.constant 0 : i32
    %c0_i32_0 = arith.constant 0 : i32
    return %arg0, %c0_i32 : i32, i32
  }
}

module attributes {stable_mosaic.version = 11 : i64} {
  func.func @_conv_bn_kernel(%arg0: i32, %arg1: memref<128x180xf32, #tpu.memory_space<vmem>>, %arg2: memref<2x180xf32, #tpu.memory_space<vmem>>, %arg3: memref<180x128xbf16, #tpu.memory_space<vmem>>, %arg4: memref<128x128xf32, #tpu.memory_space<vmem>>) attributes {dimension_semantics = [#tpu.dimension_semantics<parallel>], iteration_bounds = array<i64: 1>, scalar_prefetch = 0 : i64, scratch_operands = 0 : i64, tpu.core_type = #tpu.core_type<tc>, window_params = [{transform_indices = @transform_0, window_bounds = array<i64: 128, 180>}, {pipeline_mode = #tpu.pipeline_mode<synchronous>, transform_indices = @transform_1, window_bounds = array<i64: 2, 180>}, {pipeline_mode = #tpu.pipeline_mode<synchronous>, transform_indices = @transform_2, window_bounds = array<i64: 180, 128>}, {transform_indices = @transform_3, window_bounds = array<i64: 128, 128>}]} {
    %c0 = arith.constant 0 : index
    %c0_0 = arith.constant 0 : index
    %0 = vector.load %arg1[%c0, %c0_0] : memref<128x180xf32, #tpu.memory_space<vmem>>, vector<128x180xf32>
    %c0_1 = arith.constant 0 : index
    %c0_2 = arith.constant 0 : index
    %1 = vector.load %arg2[%c0_1, %c0_2] : memref<2x180xf32, #tpu.memory_space<vmem>>, vector<1x180xf32>
    %2 = vector.broadcast %1 : vector<1x180xf32> to vector<128x180xf32>
    %3 = arith.mulf %0, %2 : vector<128x180xf32>
    %c1 = arith.constant 1 : index
    %c0_3 = arith.constant 0 : index
    %4 = vector.load %arg2[%c1, %c0_3] : memref<2x180xf32, #tpu.memory_space<vmem>>, vector<1x180xf32>
    %5 = vector.broadcast %4 : vector<1x180xf32> to vector<128x180xf32>
    %6 = arith.addf %3, %5 : vector<128x180xf32>
    %cst = arith.constant 0.000000e+00 : f32
    %7 = vector.broadcast %cst : f32 to vector<128x180xf32>
    %8 = arith.maximumf %6, %7 : vector<128x180xf32>
    %9 = arith.truncf %8 : vector<128x180xf32> to vector<128x180xbf16>
    %c0_4 = arith.constant 0 : index
    %c0_5 = arith.constant 0 : index
    %10 = vector.load %arg3[%c0_4, %c0_5] : memref<180x128xbf16, #tpu.memory_space<vmem>>, vector<180x128xbf16>
    %cst_6 = arith.constant dense<0.000000e+00> : vector<128x128xf32>
    %11 = tpu.matmul %9, %10, %cst_6 {dimension_numbers = #tpu.dot_dimension_numbers<[1], [0], [0], [1], [0, 0, 1, 1], [], []>} : vector<128x180xbf16>, vector<180x128xbf16>, vector<128x128xf32> -> vector<128x128xf32>
    %c0_7 = arith.constant 0 : index
    %c0_8 = arith.constant 0 : index
    %12 = vector.load %arg4[%c0_7, %c0_8] : memref<128x128xf32, #tpu.memory_space<vmem>>, vector<128x128xf32>
    tpu.vector_store %arg4[%c0_7, %c0_8], %11 {strides = array<i32>} : memref<128x128xf32, #tpu.memory_space<vmem>>, vector<128x128xf32>,
    return
  }
  func.func @transform_0(%arg0: i32) -> (i32, i32) {
    %c0_i32 = arith.constant 0 : i32
    %c0_i32_0 = arith.constant 0 : i32
    return %arg0, %c0_i32 : i32, i32
  }
  func.func @transform_1(%arg0: i32) -> (i32, i32) {
    %c0_i32 = arith.constant 0 : i32
    %c0_i32_0 = arith.constant 0 : i32
    %c0_i32_1 = arith.constant 0 : i32
    return %c0_i32, %c0_i32_0 : i32, i32
  }
  func.func @transform_2(%arg0: i32) -> (i32, i32) {
    %c0_i32 = arith.constant 0 : i32
    %c0_i32_0 = arith.constant 0 : i32
    %c0_i32_1 = arith.constant 0 : i32
    return %c0_i32, %c0_i32_0 : i32, i32
  }
  func.func @transform_3(%arg0: i32) -> (i32, i32) {
    %c0_i32 = arith.constant 0 : i32
    %c0_i32_0 = arith.constant 0 : i32
    return %arg0, %c0_i32 : i32, i32
  }
}

module attributes {stable_mosaic.version = 11 : i64} {
  func.func @_conv_bn_kernel(%arg0: i32, %arg1: memref<128x24xf32, #tpu.memory_space<vmem>>, %arg2: memref<2x24xf32, #tpu.memory_space<vmem>>, %arg3: memref<24x128xbf16, #tpu.memory_space<vmem>>, %arg4: memref<128x128xf32, #tpu.memory_space<vmem>>) attributes {dimension_semantics = [#tpu.dimension_semantics<parallel>], iteration_bounds = array<i64: 1>, scalar_prefetch = 0 : i64, scratch_operands = 0 : i64, tpu.core_type = #tpu.core_type<tc>, window_params = [{transform_indices = @transform_0, window_bounds = array<i64: 128, 24>}, {pipeline_mode = #tpu.pipeline_mode<synchronous>, transform_indices = @transform_1, window_bounds = array<i64: 2, 24>}, {pipeline_mode = #tpu.pipeline_mode<synchronous>, transform_indices = @transform_2, window_bounds = array<i64: 24, 128>}, {transform_indices = @transform_3, window_bounds = array<i64: 128, 128>}]} {
    %c0 = arith.constant 0 : index
    %c0_0 = arith.constant 0 : index
    %0 = vector.load %arg1[%c0, %c0_0] : memref<128x24xf32, #tpu.memory_space<vmem>>, vector<128x24xf32>
    %c0_1 = arith.constant 0 : index
    %c0_2 = arith.constant 0 : index
    %1 = vector.load %arg2[%c0_1, %c0_2] : memref<2x24xf32, #tpu.memory_space<vmem>>, vector<1x24xf32>
    %2 = vector.broadcast %1 : vector<1x24xf32> to vector<128x24xf32>
    %3 = arith.mulf %0, %2 : vector<128x24xf32>
    %c1 = arith.constant 1 : index
    %c0_3 = arith.constant 0 : index
    %4 = vector.load %arg2[%c1, %c0_3] : memref<2x24xf32, #tpu.memory_space<vmem>>, vector<1x24xf32>
    %5 = vector.broadcast %4 : vector<1x24xf32> to vector<128x24xf32>
    %6 = arith.addf %3, %5 : vector<128x24xf32>
    %cst = arith.constant 0.000000e+00 : f32
    %7 = vector.broadcast %cst : f32 to vector<128x24xf32>
    %8 = arith.maximumf %6, %7 : vector<128x24xf32>
    %9 = arith.truncf %8 : vector<128x24xf32> to vector<128x24xbf16>
    %c0_4 = arith.constant 0 : index
    %c0_5 = arith.constant 0 : index
    %10 = vector.load %arg3[%c0_4, %c0_5] : memref<24x128xbf16, #tpu.memory_space<vmem>>, vector<24x128xbf16>
    %cst_6 = arith.constant dense<0.000000e+00> : vector<128x128xf32>
    %11 = tpu.matmul %9, %10, %cst_6 {dimension_numbers = #tpu.dot_dimension_numbers<[1], [0], [0], [1], [0, 0, 1, 1], [], []>} : vector<128x24xbf16>, vector<24x128xbf16>, vector<128x128xf32> -> vector<128x128xf32>
    %c0_7 = arith.constant 0 : index
    %c0_8 = arith.constant 0 : index
    %12 = vector.load %arg4[%c0_7, %c0_8] : memref<128x128xf32, #tpu.memory_space<vmem>>, vector<128x128xf32>
    tpu.vector_store %arg4[%c0_7, %c0_8], %11 {strides = array<i32>} : memref<128x128xf32, #tpu.memory_space<vmem>>, vector<128x128xf32>,
    return
  }
  func.func @transform_0(%arg0: i32) -> (i32, i32) {
    %c0_i32 = arith.constant 0 : i32
    %c0_i32_0 = arith.constant 0 : i32
    return %arg0, %c0_i32 : i32, i32
  }
  func.func @transform_1(%arg0: i32) -> (i32, i32) {
    %c0_i32 = arith.constant 0 : i32
    %c0_i32_0 = arith.constant 0 : i32
    %c0_i32_1 = arith.constant 0 : i32
    return %c0_i32, %c0_i32_0 : i32, i32
  }
  func.func @transform_2(%arg0: i32) -> (i32, i32) {
    %c0_i32 = arith.constant 0 : i32
    %c0_i32_0 = arith.constant 0 : i32
    %c0_i32_1 = arith.constant 0 : i32
    return %c0_i32, %c0_i32_0 : i32, i32
  }
  func.func @transform_3(%arg0: i32) -> (i32, i32) {
    %c0_i32 = arith.constant 0 : i32
    %c0_i32_0 = arith.constant 0 : i32
    return %arg0, %c0_i32 : i32, i32
  }
}

module attributes {stable_mosaic.version = 11 : i64} {
  func.func @_conv_bn_kernel(%arg0: i32, %arg1: memref<32x108xf32, #tpu.memory_space<vmem>>, %arg2: memref<2x108xf32, #tpu.memory_space<vmem>>, %arg3: memref<108x128xbf16, #tpu.memory_space<vmem>>, %arg4: memref<32x128xf32, #tpu.memory_space<vmem>>) attributes {dimension_semantics = [#tpu.dimension_semantics<parallel>], iteration_bounds = array<i64: 1>, scalar_prefetch = 0 : i64, scratch_operands = 0 : i64, tpu.core_type = #tpu.core_type<tc>, window_params = [{transform_indices = @transform_0, window_bounds = array<i64: 32, 108>}, {pipeline_mode = #tpu.pipeline_mode<synchronous>, transform_indices = @transform_1, window_bounds = array<i64: 2, 108>}, {pipeline_mode = #tpu.pipeline_mode<synchronous>, transform_indices = @transform_2, window_bounds = array<i64: 108, 128>}, {transform_indices = @transform_3, window_bounds = array<i64: 32, 128>}]} {
    %c0 = arith.constant 0 : index
    %c0_0 = arith.constant 0 : index
    %0 = vector.load %arg1[%c0, %c0_0] : memref<32x108xf32, #tpu.memory_space<vmem>>, vector<32x108xf32>
    %c0_1 = arith.constant 0 : index
    %c0_2 = arith.constant 0 : index
    %1 = vector.load %arg2[%c0_1, %c0_2] : memref<2x108xf32, #tpu.memory_space<vmem>>, vector<1x108xf32>
    %2 = vector.broadcast %1 : vector<1x108xf32> to vector<32x108xf32>
    %3 = arith.mulf %0, %2 : vector<32x108xf32>
    %c1 = arith.constant 1 : index
    %c0_3 = arith.constant 0 : index
    %4 = vector.load %arg2[%c1, %c0_3] : memref<2x108xf32, #tpu.memory_space<vmem>>, vector<1x108xf32>
    %5 = vector.broadcast %4 : vector<1x108xf32> to vector<32x108xf32>
    %6 = arith.addf %3, %5 : vector<32x108xf32>
    %cst = arith.constant 0.000000e+00 : f32
    %7 = vector.broadcast %cst : f32 to vector<32x108xf32>
    %8 = arith.maximumf %6, %7 : vector<32x108xf32>
    %9 = arith.truncf %8 : vector<32x108xf32> to vector<32x108xbf16>
    %c0_4 = arith.constant 0 : index
    %c0_5 = arith.constant 0 : index
    %10 = vector.load %arg3[%c0_4, %c0_5] : memref<108x128xbf16, #tpu.memory_space<vmem>>, vector<108x128xbf16>
    %cst_6 = arith.constant dense<0.000000e+00> : vector<32x128xf32>
    %11 = tpu.matmul %9, %10, %cst_6 {dimension_numbers = #tpu.dot_dimension_numbers<[1], [0], [0], [1], [0, 0, 1, 1], [], []>} : vector<32x108xbf16>, vector<108x128xbf16>, vector<32x128xf32> -> vector<32x128xf32>
    %c0_7 = arith.constant 0 : index
    %c0_8 = arith.constant 0 : index
    %12 = vector.load %arg4[%c0_7, %c0_8] : memref<32x128xf32, #tpu.memory_space<vmem>>, vector<32x128xf32>
    tpu.vector_store %arg4[%c0_7, %c0_8], %11 {strides = array<i32>} : memref<32x128xf32, #tpu.memory_space<vmem>>, vector<32x128xf32>,
    return
  }
  func.func @transform_0(%arg0: i32) -> (i32, i32) {
    %c0_i32 = arith.constant 0 : i32
    %c0_i32_0 = arith.constant 0 : i32
    return %arg0, %c0_i32 : i32, i32
  }
  func.func @transform_1(%arg0: i32) -> (i32, i32) {
    %c0_i32 = arith.constant 0 : i32
    %c0_i32_0 = arith.constant 0 : i32
    %c0_i32_1 = arith.constant 0 : i32
    return %c0_i32, %c0_i32_0 : i32, i32
  }
  func.func @transform_2(%arg0: i32) -> (i32, i32) {
    %c0_i32 = arith.constant 0 : i32
    %c0_i32_0 = arith.constant 0 : i32
    %c0_i32_1 = arith.constant 0 : i32
    return %c0_i32, %c0_i32_0 : i32, i32
  }
  func.func @transform_3(%arg0: i32) -> (i32, i32) {
    %c0_i32 = arith.constant 0 : i32
    %c0_i32_0 = arith.constant 0 : i32
    return %arg0, %c0_i32 : i32, i32
  }
}

module attributes {stable_mosaic.version = 11 : i64} {
  func.func @_conv_bn_kernel(%arg0: i32, %arg1: memref<32x144xf32, #tpu.memory_space<vmem>>, %arg2: memref<2x144xf32, #tpu.memory_space<vmem>>, %arg3: memref<144x128xbf16, #tpu.memory_space<vmem>>, %arg4: memref<32x128xf32, #tpu.memory_space<vmem>>) attributes {dimension_semantics = [#tpu.dimension_semantics<parallel>], iteration_bounds = array<i64: 1>, scalar_prefetch = 0 : i64, scratch_operands = 0 : i64, tpu.core_type = #tpu.core_type<tc>, window_params = [{transform_indices = @transform_0, window_bounds = array<i64: 32, 144>}, {pipeline_mode = #tpu.pipeline_mode<synchronous>, transform_indices = @transform_1, window_bounds = array<i64: 2, 144>}, {pipeline_mode = #tpu.pipeline_mode<synchronous>, transform_indices = @transform_2, window_bounds = array<i64: 144, 128>}, {transform_indices = @transform_3, window_bounds = array<i64: 32, 128>}]} {
    %c0 = arith.constant 0 : index
    %c0_0 = arith.constant 0 : index
    %0 = vector.load %arg1[%c0, %c0_0] : memref<32x144xf32, #tpu.memory_space<vmem>>, vector<32x144xf32>
    %c0_1 = arith.constant 0 : index
    %c0_2 = arith.constant 0 : index
    %1 = vector.load %arg2[%c0_1, %c0_2] : memref<2x144xf32, #tpu.memory_space<vmem>>, vector<1x144xf32>
    %2 = vector.broadcast %1 : vector<1x144xf32> to vector<32x144xf32>
    %3 = arith.mulf %0, %2 : vector<32x144xf32>
    %c1 = arith.constant 1 : index
    %c0_3 = arith.constant 0 : index
    %4 = vector.load %arg2[%c1, %c0_3] : memref<2x144xf32, #tpu.memory_space<vmem>>, vector<1x144xf32>
    %5 = vector.broadcast %4 : vector<1x144xf32> to vector<32x144xf32>
    %6 = arith.addf %3, %5 : vector<32x144xf32>
    %cst = arith.constant 0.000000e+00 : f32
    %7 = vector.broadcast %cst : f32 to vector<32x144xf32>
    %8 = arith.maximumf %6, %7 : vector<32x144xf32>
    %9 = arith.truncf %8 : vector<32x144xf32> to vector<32x144xbf16>
    %c0_4 = arith.constant 0 : index
    %c0_5 = arith.constant 0 : index
    %10 = vector.load %arg3[%c0_4, %c0_5] : memref<144x128xbf16, #tpu.memory_space<vmem>>, vector<144x128xbf16>
    %cst_6 = arith.constant dense<0.000000e+00> : vector<32x128xf32>
    %11 = tpu.matmul %9, %10, %cst_6 {dimension_numbers = #tpu.dot_dimension_numbers<[1], [0], [0], [1], [0, 0, 1, 1], [], []>} : vector<32x144xbf16>, vector<144x128xbf16>, vector<32x128xf32> -> vector<32x128xf32>
    %c0_7 = arith.constant 0 : index
    %c0_8 = arith.constant 0 : index
    %12 = vector.load %arg4[%c0_7, %c0_8] : memref<32x128xf32, #tpu.memory_space<vmem>>, vector<32x128xf32>
    tpu.vector_store %arg4[%c0_7, %c0_8], %11 {strides = array<i32>} : memref<32x128xf32, #tpu.memory_space<vmem>>, vector<32x128xf32>,
    return
  }
  func.func @transform_0(%arg0: i32) -> (i32, i32) {
    %c0_i32 = arith.constant 0 : i32
    %c0_i32_0 = arith.constant 0 : i32
    return %arg0, %c0_i32 : i32, i32
  }
  func.func @transform_1(%arg0: i32) -> (i32, i32) {
    %c0_i32 = arith.constant 0 : i32
    %c0_i32_0 = arith.constant 0 : i32
    %c0_i32_1 = arith.constant 0 : i32
    return %c0_i32, %c0_i32_0 : i32, i32
  }
  func.func @transform_2(%arg0: i32) -> (i32, i32) {
    %c0_i32 = arith.constant 0 : i32
    %c0_i32_0 = arith.constant 0 : i32
    %c0_i32_1 = arith.constant 0 : i32
    return %c0_i32, %c0_i32_0 : i32, i32
  }
  func.func @transform_3(%arg0: i32) -> (i32, i32) {
    %c0_i32 = arith.constant 0 : i32
    %c0_i32_0 = arith.constant 0 : i32
    return %arg0, %c0_i32 : i32, i32
  }
}

module attributes {stable_mosaic.version = 11 : i64} {
  func.func @_conv_bn_kernel(%arg0: i32, %arg1: memref<32x20xf32, #tpu.memory_space<vmem>>, %arg2: memref<2x20xf32, #tpu.memory_space<vmem>>, %arg3: memref<20x128xbf16, #tpu.memory_space<vmem>>, %arg4: memref<32x128xf32, #tpu.memory_space<vmem>>) attributes {dimension_semantics = [#tpu.dimension_semantics<parallel>], iteration_bounds = array<i64: 1>, scalar_prefetch = 0 : i64, scratch_operands = 0 : i64, tpu.core_type = #tpu.core_type<tc>, window_params = [{transform_indices = @transform_0, window_bounds = array<i64: 32, 20>}, {pipeline_mode = #tpu.pipeline_mode<synchronous>, transform_indices = @transform_1, window_bounds = array<i64: 2, 20>}, {pipeline_mode = #tpu.pipeline_mode<synchronous>, transform_indices = @transform_2, window_bounds = array<i64: 20, 128>}, {transform_indices = @transform_3, window_bounds = array<i64: 32, 128>}]} {
    %c0 = arith.constant 0 : index
    %c0_0 = arith.constant 0 : index
    %0 = vector.load %arg1[%c0, %c0_0] : memref<32x20xf32, #tpu.memory_space<vmem>>, vector<32x20xf32>
    %c0_1 = arith.constant 0 : index
    %c0_2 = arith.constant 0 : index
    %1 = vector.load %arg2[%c0_1, %c0_2] : memref<2x20xf32, #tpu.memory_space<vmem>>, vector<1x20xf32>
    %2 = vector.broadcast %1 : vector<1x20xf32> to vector<32x20xf32>
    %3 = arith.mulf %0, %2 : vector<32x20xf32>
    %c1 = arith.constant 1 : index
    %c0_3 = arith.constant 0 : index
    %4 = vector.load %arg2[%c1, %c0_3] : memref<2x20xf32, #tpu.memory_space<vmem>>, vector<1x20xf32>
    %5 = vector.broadcast %4 : vector<1x20xf32> to vector<32x20xf32>
    %6 = arith.addf %3, %5 : vector<32x20xf32>
    %cst = arith.constant 0.000000e+00 : f32
    %7 = vector.broadcast %cst : f32 to vector<32x20xf32>
    %8 = arith.maximumf %6, %7 : vector<32x20xf32>
    %9 = arith.truncf %8 : vector<32x20xf32> to vector<32x20xbf16>
    %c0_4 = arith.constant 0 : index
    %c0_5 = arith.constant 0 : index
    %10 = vector.load %arg3[%c0_4, %c0_5] : memref<20x128xbf16, #tpu.memory_space<vmem>>, vector<20x128xbf16>
    %cst_6 = arith.constant dense<0.000000e+00> : vector<32x128xf32>
    %11 = tpu.matmul %9, %10, %cst_6 {dimension_numbers = #tpu.dot_dimension_numbers<[1], [0], [0], [1], [0, 0, 1, 1], [], []>} : vector<32x20xbf16>, vector<20x128xbf16>, vector<32x128xf32> -> vector<32x128xf32>
    %c0_7 = arith.constant 0 : index
    %c0_8 = arith.constant 0 : index
    %12 = vector.load %arg4[%c0_7, %c0_8] : memref<32x128xf32, #tpu.memory_space<vmem>>, vector<32x128xf32>
    tpu.vector_store %arg4[%c0_7, %c0_8], %11 {strides = array<i32>} : memref<32x128xf32, #tpu.memory_space<vmem>>, vector<32x128xf32>,
    return
  }
  func.func @transform_0(%arg0: i32) -> (i32, i32) {
    %c0_i32 = arith.constant 0 : i32
    %c0_i32_0 = arith.constant 0 : i32
    return %arg0, %c0_i32 : i32, i32
  }
  func.func @transform_1(%arg0: i32) -> (i32, i32) {
    %c0_i32 = arith.constant 0 : i32
    %c0_i32_0 = arith.constant 0 : i32
    %c0_i32_1 = arith.constant 0 : i32
    return %c0_i32, %c0_i32_0 : i32, i32
  }
  func.func @transform_2(%arg0: i32) -> (i32, i32) {
    %c0_i32 = arith.constant 0 : i32
    %c0_i32_0 = arith.constant 0 : i32
    %c0_i32_1 = arith.constant 0 : i32
    return %c0_i32, %c0_i32_0 : i32, i32
  }
  func.func @transform_3(%arg0: i32) -> (i32, i32) {
    %c0_i32 = arith.constant 0 : i32
    %c0_i32_0 = arith.constant 0 : i32
    return %arg0, %c0_i32 : i32, i32
  }
}

module attributes {stable_mosaic.version = 11 : i64} {
  func.func @_conv_bn_kernel(%arg0: i32, %arg1: memref<128x90xf32, #tpu.memory_space<vmem>>, %arg2: memref<2x90xf32, #tpu.memory_space<vmem>>, %arg3: memref<90x128xbf16, #tpu.memory_space<vmem>>, %arg4: memref<128x128xf32, #tpu.memory_space<vmem>>) attributes {dimension_semantics = [#tpu.dimension_semantics<parallel>], iteration_bounds = array<i64: 1>, scalar_prefetch = 0 : i64, scratch_operands = 0 : i64, tpu.core_type = #tpu.core_type<tc>, window_params = [{transform_indices = @transform_0, window_bounds = array<i64: 128, 90>}, {pipeline_mode = #tpu.pipeline_mode<synchronous>, transform_indices = @transform_1, window_bounds = array<i64: 2, 90>}, {pipeline_mode = #tpu.pipeline_mode<synchronous>, transform_indices = @transform_2, window_bounds = array<i64: 90, 128>}, {transform_indices = @transform_3, window_bounds = array<i64: 128, 128>}]} {
    %c0 = arith.constant 0 : index
    %c0_0 = arith.constant 0 : index
    %0 = vector.load %arg1[%c0, %c0_0] : memref<128x90xf32, #tpu.memory_space<vmem>>, vector<128x90xf32>
    %c0_1 = arith.constant 0 : index
    %c0_2 = arith.constant 0 : index
    %1 = vector.load %arg2[%c0_1, %c0_2] : memref<2x90xf32, #tpu.memory_space<vmem>>, vector<1x90xf32>
    %2 = vector.broadcast %1 : vector<1x90xf32> to vector<128x90xf32>
    %3 = arith.mulf %0, %2 : vector<128x90xf32>
    %c1 = arith.constant 1 : index
    %c0_3 = arith.constant 0 : index
    %4 = vector.load %arg2[%c1, %c0_3] : memref<2x90xf32, #tpu.memory_space<vmem>>, vector<1x90xf32>
    %5 = vector.broadcast %4 : vector<1x90xf32> to vector<128x90xf32>
    %6 = arith.addf %3, %5 : vector<128x90xf32>
    %cst = arith.constant 0.000000e+00 : f32
    %7 = vector.broadcast %cst : f32 to vector<128x90xf32>
    %8 = arith.maximumf %6, %7 : vector<128x90xf32>
    %9 = arith.truncf %8 : vector<128x90xf32> to vector<128x90xbf16>
    %c0_4 = arith.constant 0 : index
    %c0_5 = arith.constant 0 : index
    %10 = vector.load %arg3[%c0_4, %c0_5] : memref<90x128xbf16, #tpu.memory_space<vmem>>, vector<90x128xbf16>
    %cst_6 = arith.constant dense<0.000000e+00> : vector<128x128xf32>
    %11 = tpu.matmul %9, %10, %cst_6 {dimension_numbers = #tpu.dot_dimension_numbers<[1], [0], [0], [1], [0, 0, 1, 1], [], []>} : vector<128x90xbf16>, vector<90x128xbf16>, vector<128x128xf32> -> vector<128x128xf32>
    %c0_7 = arith.constant 0 : index
    %c0_8 = arith.constant 0 : index
    %12 = vector.load %arg4[%c0_7, %c0_8] : memref<128x128xf32, #tpu.memory_space<vmem>>, vector<128x128xf32>
    tpu.vector_store %arg4[%c0_7, %c0_8], %11 {strides = array<i32>} : memref<128x128xf32, #tpu.memory_space<vmem>>, vector<128x128xf32>,
    return
  }
  func.func @transform_0(%arg0: i32) -> (i32, i32) {
    %c0_i32 = arith.constant 0 : i32
    %c0_i32_0 = arith.constant 0 : i32
    return %arg0, %c0_i32 : i32, i32
  }
  func.func @transform_1(%arg0: i32) -> (i32, i32) {
    %c0_i32 = arith.constant 0 : i32
    %c0_i32_0 = arith.constant 0 : i32
    %c0_i32_1 = arith.constant 0 : i32
    return %c0_i32, %c0_i32_0 : i32, i32
  }
  func.func @transform_2(%arg0: i32) -> (i32, i32) {
    %c0_i32 = arith.constant 0 : i32
    %c0_i32_0 = arith.constant 0 : i32
    %c0_i32_1 = arith.constant 0 : i32
    return %c0_i32, %c0_i32_0 : i32, i32
  }
  func.func @transform_3(%arg0: i32) -> (i32, i32) {
    %c0_i32 = arith.constant 0 : i32
    %c0_i32_0 = arith.constant 0 : i32
    return %arg0, %c0_i32 : i32, i32
  }
}

module attributes {stable_mosaic.version = 11 : i64} {
  func.func @_conv_bn_kernel(%arg0: i32, %arg1: memref<128x126xf32, #tpu.memory_space<vmem>>, %arg2: memref<2x126xf32, #tpu.memory_space<vmem>>, %arg3: memref<126x128xbf16, #tpu.memory_space<vmem>>, %arg4: memref<128x128xf32, #tpu.memory_space<vmem>>) attributes {dimension_semantics = [#tpu.dimension_semantics<parallel>], iteration_bounds = array<i64: 1>, scalar_prefetch = 0 : i64, scratch_operands = 0 : i64, tpu.core_type = #tpu.core_type<tc>, window_params = [{transform_indices = @transform_0, window_bounds = array<i64: 128, 126>}, {pipeline_mode = #tpu.pipeline_mode<synchronous>, transform_indices = @transform_1, window_bounds = array<i64: 2, 126>}, {pipeline_mode = #tpu.pipeline_mode<synchronous>, transform_indices = @transform_2, window_bounds = array<i64: 126, 128>}, {transform_indices = @transform_3, window_bounds = array<i64: 128, 128>}]} {
    %c0 = arith.constant 0 : index
    %c0_0 = arith.constant 0 : index
    %0 = vector.load %arg1[%c0, %c0_0] : memref<128x126xf32, #tpu.memory_space<vmem>>, vector<128x126xf32>
    %c0_1 = arith.constant 0 : index
    %c0_2 = arith.constant 0 : index
    %1 = vector.load %arg2[%c0_1, %c0_2] : memref<2x126xf32, #tpu.memory_space<vmem>>, vector<1x126xf32>
    %2 = vector.broadcast %1 : vector<1x126xf32> to vector<128x126xf32>
    %3 = arith.mulf %0, %2 : vector<128x126xf32>
    %c1 = arith.constant 1 : index
    %c0_3 = arith.constant 0 : index
    %4 = vector.load %arg2[%c1, %c0_3] : memref<2x126xf32, #tpu.memory_space<vmem>>, vector<1x126xf32>
    %5 = vector.broadcast %4 : vector<1x126xf32> to vector<128x126xf32>
    %6 = arith.addf %3, %5 : vector<128x126xf32>
    %cst = arith.constant 0.000000e+00 : f32
    %7 = vector.broadcast %cst : f32 to vector<128x126xf32>
    %8 = arith.maximumf %6, %7 : vector<128x126xf32>
    %9 = arith.truncf %8 : vector<128x126xf32> to vector<128x126xbf16>
    %c0_4 = arith.constant 0 : index
    %c0_5 = arith.constant 0 : index
    %10 = vector.load %arg3[%c0_4, %c0_5] : memref<126x128xbf16, #tpu.memory_space<vmem>>, vector<126x128xbf16>
    %cst_6 = arith.constant dense<0.000000e+00> : vector<128x128xf32>
    %11 = tpu.matmul %9, %10, %cst_6 {dimension_numbers = #tpu.dot_dimension_numbers<[1], [0], [0], [1], [0, 0, 1, 1], [], []>} : vector<128x126xbf16>, vector<126x128xbf16>, vector<128x128xf32> -> vector<128x128xf32>
    %c0_7 = arith.constant 0 : index
    %c0_8 = arith.constant 0 : index
    %12 = vector.load %arg4[%c0_7, %c0_8] : memref<128x128xf32, #tpu.memory_space<vmem>>, vector<128x128xf32>
    tpu.vector_store %arg4[%c0_7, %c0_8], %11 {strides = array<i32>} : memref<128x128xf32, #tpu.memory_space<vmem>>, vector<128x128xf32>,
    return
  }
  func.func @transform_0(%arg0: i32) -> (i32, i32) {
    %c0_i32 = arith.constant 0 : i32
    %c0_i32_0 = arith.constant 0 : i32
    return %arg0, %c0_i32 : i32, i32
  }
  func.func @transform_1(%arg0: i32) -> (i32, i32) {
    %c0_i32 = arith.constant 0 : i32
    %c0_i32_0 = arith.constant 0 : i32
    %c0_i32_1 = arith.constant 0 : i32
    return %c0_i32, %c0_i32_0 : i32, i32
  }
  func.func @transform_2(%arg0: i32) -> (i32, i32) {
    %c0_i32 = arith.constant 0 : i32
    %c0_i32_0 = arith.constant 0 : i32
    %c0_i32_1 = arith.constant 0 : i32
    return %c0_i32, %c0_i32_0 : i32, i32
  }
  func.func @transform_3(%arg0: i32) -> (i32, i32) {
    %c0_i32 = arith.constant 0 : i32
    %c0_i32_0 = arith.constant 0 : i32
    return %arg0, %c0_i32 : i32, i32
  }
}

module attributes {stable_mosaic.version = 11 : i64} {
  func.func @_conv_bn_kernel(%arg0: i32, %arg1: memref<128x162xf32, #tpu.memory_space<vmem>>, %arg2: memref<2x162xf32, #tpu.memory_space<vmem>>, %arg3: memref<162x128xbf16, #tpu.memory_space<vmem>>, %arg4: memref<128x128xf32, #tpu.memory_space<vmem>>) attributes {dimension_semantics = [#tpu.dimension_semantics<parallel>], iteration_bounds = array<i64: 1>, scalar_prefetch = 0 : i64, scratch_operands = 0 : i64, tpu.core_type = #tpu.core_type<tc>, window_params = [{transform_indices = @transform_0, window_bounds = array<i64: 128, 162>}, {pipeline_mode = #tpu.pipeline_mode<synchronous>, transform_indices = @transform_1, window_bounds = array<i64: 2, 162>}, {pipeline_mode = #tpu.pipeline_mode<synchronous>, transform_indices = @transform_2, window_bounds = array<i64: 162, 128>}, {transform_indices = @transform_3, window_bounds = array<i64: 128, 128>}]} {
    %c0 = arith.constant 0 : index
    %c0_0 = arith.constant 0 : index
    %0 = vector.load %arg1[%c0, %c0_0] : memref<128x162xf32, #tpu.memory_space<vmem>>, vector<128x162xf32>
    %c0_1 = arith.constant 0 : index
    %c0_2 = arith.constant 0 : index
    %1 = vector.load %arg2[%c0_1, %c0_2] : memref<2x162xf32, #tpu.memory_space<vmem>>, vector<1x162xf32>
    %2 = vector.broadcast %1 : vector<1x162xf32> to vector<128x162xf32>
    %3 = arith.mulf %0, %2 : vector<128x162xf32>
    %c1 = arith.constant 1 : index
    %c0_3 = arith.constant 0 : index
    %4 = vector.load %arg2[%c1, %c0_3] : memref<2x162xf32, #tpu.memory_space<vmem>>, vector<1x162xf32>
    %5 = vector.broadcast %4 : vector<1x162xf32> to vector<128x162xf32>
    %6 = arith.addf %3, %5 : vector<128x162xf32>
    %cst = arith.constant 0.000000e+00 : f32
    %7 = vector.broadcast %cst : f32 to vector<128x162xf32>
    %8 = arith.maximumf %6, %7 : vector<128x162xf32>
    %9 = arith.truncf %8 : vector<128x162xf32> to vector<128x162xbf16>
    %c0_4 = arith.constant 0 : index
    %c0_5 = arith.constant 0 : index
    %10 = vector.load %arg3[%c0_4, %c0_5] : memref<162x128xbf16, #tpu.memory_space<vmem>>, vector<162x128xbf16>
    %cst_6 = arith.constant dense<0.000000e+00> : vector<128x128xf32>
    %11 = tpu.matmul %9, %10, %cst_6 {dimension_numbers = #tpu.dot_dimension_numbers<[1], [0], [0], [1], [0, 0, 1, 1], [], []>} : vector<128x162xbf16>, vector<162x128xbf16>, vector<128x128xf32> -> vector<128x128xf32>
    %c0_7 = arith.constant 0 : index
    %c0_8 = arith.constant 0 : index
    %12 = vector.load %arg4[%c0_7, %c0_8] : memref<128x128xf32, #tpu.memory_space<vmem>>, vector<128x128xf32>
    tpu.vector_store %arg4[%c0_7, %c0_8], %11 {strides = array<i32>} : memref<128x128xf32, #tpu.memory_space<vmem>>, vector<128x128xf32>,
    return
  }
  func.func @transform_0(%arg0: i32) -> (i32, i32) {
    %c0_i32 = arith.constant 0 : i32
    %c0_i32_0 = arith.constant 0 : i32
    return %arg0, %c0_i32 : i32, i32
  }
  func.func @transform_1(%arg0: i32) -> (i32, i32) {
    %c0_i32 = arith.constant 0 : i32
    %c0_i32_0 = arith.constant 0 : i32
    %c0_i32_1 = arith.constant 0 : i32
    return %c0_i32, %c0_i32_0 : i32, i32
  }
  func.func @transform_2(%arg0: i32) -> (i32, i32) {
    %c0_i32 = arith.constant 0 : i32
    %c0_i32_0 = arith.constant 0 : i32
    %c0_i32_1 = arith.constant 0 : i32
    return %c0_i32, %c0_i32_0 : i32, i32
  }
  func.func @transform_3(%arg0: i32) -> (i32, i32) {
    %c0_i32 = arith.constant 0 : i32
    %c0_i32_0 = arith.constant 0 : i32
    return %arg0, %c0_i32 : i32, i32
  }
}

module attributes {stable_mosaic.version = 11 : i64} {
  func.func @_conv_bn_kernel(%arg0: i32, %arg1: memref<512x81xf32, #tpu.memory_space<vmem>>, %arg2: memref<2x81xf32, #tpu.memory_space<vmem>>, %arg3: memref<81x128xbf16, #tpu.memory_space<vmem>>, %arg4: memref<512x128xf32, #tpu.memory_space<vmem>>) attributes {dimension_semantics = [#tpu.dimension_semantics<parallel>], iteration_bounds = array<i64: 1>, scalar_prefetch = 0 : i64, scratch_operands = 0 : i64, tpu.core_type = #tpu.core_type<tc>, window_params = [{transform_indices = @transform_0, window_bounds = array<i64: 512, 81>}, {pipeline_mode = #tpu.pipeline_mode<synchronous>, transform_indices = @transform_1, window_bounds = array<i64: 2, 81>}, {pipeline_mode = #tpu.pipeline_mode<synchronous>, transform_indices = @transform_2, window_bounds = array<i64: 81, 128>}, {transform_indices = @transform_3, window_bounds = array<i64: 512, 128>}]} {
    %c0 = arith.constant 0 : index
    %c0_0 = arith.constant 0 : index
    %0 = vector.load %arg1[%c0, %c0_0] : memref<512x81xf32, #tpu.memory_space<vmem>>, vector<512x81xf32>
    %c0_1 = arith.constant 0 : index
    %c0_2 = arith.constant 0 : index
    %1 = vector.load %arg2[%c0_1, %c0_2] : memref<2x81xf32, #tpu.memory_space<vmem>>, vector<1x81xf32>
    %2 = vector.broadcast %1 : vector<1x81xf32> to vector<512x81xf32>
    %3 = arith.mulf %0, %2 : vector<512x81xf32>
    %c1 = arith.constant 1 : index
    %c0_3 = arith.constant 0 : index
    %4 = vector.load %arg2[%c1, %c0_3] : memref<2x81xf32, #tpu.memory_space<vmem>>, vector<1x81xf32>
    %5 = vector.broadcast %4 : vector<1x81xf32> to vector<512x81xf32>
    %6 = arith.addf %3, %5 : vector<512x81xf32>
    %cst = arith.constant 0.000000e+00 : f32
    %7 = vector.broadcast %cst : f32 to vector<512x81xf32>
    %8 = arith.maximumf %6, %7 : vector<512x81xf32>
    %9 = arith.truncf %8 : vector<512x81xf32> to vector<512x81xbf16>
    %c0_4 = arith.constant 0 : index
    %c0_5 = arith.constant 0 : index
    %10 = vector.load %arg3[%c0_4, %c0_5] : memref<81x128xbf16, #tpu.memory_space<vmem>>, vector<81x128xbf16>
    %cst_6 = arith.constant dense<0.000000e+00> : vector<512x128xf32>
    %11 = tpu.matmul %9, %10, %cst_6 {dimension_numbers = #tpu.dot_dimension_numbers<[1], [0], [0], [1], [0, 0, 1, 1], [], []>} : vector<512x81xbf16>, vector<81x128xbf16>, vector<512x128xf32> -> vector<512x128xf32>
    %c0_7 = arith.constant 0 : index
    %c0_8 = arith.constant 0 : index
    %12 = vector.load %arg4[%c0_7, %c0_8] : memref<512x128xf32, #tpu.memory_space<vmem>>, vector<512x128xf32>
    tpu.vector_store %arg4[%c0_7, %c0_8], %11 {strides = array<i32>} : memref<512x128xf32, #tpu.memory_space<vmem>>, vector<512x128xf32>,
    return
  }
  func.func @transform_0(%arg0: i32) -> (i32, i32) {
    %c0_i32 = arith.constant 0 : i32
    %c0_i32_0 = arith.constant 0 : i32
    return %arg0, %c0_i32 : i32, i32
  }
  func.func @transform_1(%arg0: i32) -> (i32, i32) {
    %c0_i32 = arith.constant 0 : i32
    %c0_i32_0 = arith.constant 0 : i32
    %c0_i32_1 = arith.constant 0 : i32
    return %c0_i32, %c0_i32_0 : i32, i32
  }
  func.func @transform_2(%arg0: i32) -> (i32, i32) {
    %c0_i32 = arith.constant 0 : i32
    %c0_i32_0 = arith.constant 0 : i32
    %c0_i32_1 = arith.constant 0 : i32
    return %c0_i32, %c0_i32_0 : i32, i32
  }
  func.func @transform_3(%arg0: i32) -> (i32, i32) {
    %c0_i32 = arith.constant 0 : i32
    %c0_i32_0 = arith.constant 0 : i32
    return %arg0, %c0_i32 : i32, i32
  }
}

module attributes {stable_mosaic.version = 11 : i64} {
  func.func @_conv_bn_kernel(%arg0: i32, %arg1: memref<578x64xf32, #tpu.memory_space<vmem>>, %arg2: memref<2x64xf32, #tpu.memory_space<vmem>>, %arg3: memref<64x128xbf16, #tpu.memory_space<vmem>>, %arg4: memref<578x128xf32, #tpu.memory_space<vmem>>) attributes {dimension_semantics = [#tpu.dimension_semantics<parallel>], iteration_bounds = array<i64: 1>, scalar_prefetch = 0 : i64, scratch_operands = 0 : i64, tpu.core_type = #tpu.core_type<tc>, window_params = [{transform_indices = @transform_0, window_bounds = array<i64: 578, 64>}, {pipeline_mode = #tpu.pipeline_mode<synchronous>, transform_indices = @transform_1, window_bounds = array<i64: 2, 64>}, {pipeline_mode = #tpu.pipeline_mode<synchronous>, transform_indices = @transform_2, window_bounds = array<i64: 64, 128>}, {transform_indices = @transform_3, window_bounds = array<i64: 578, 128>}]} {
    %c0 = arith.constant 0 : index
    %c0_0 = arith.constant 0 : index
    %0 = vector.load %arg1[%c0, %c0_0] : memref<578x64xf32, #tpu.memory_space<vmem>>, vector<578x64xf32>
    %c0_1 = arith.constant 0 : index
    %c0_2 = arith.constant 0 : index
    %1 = vector.load %arg2[%c0_1, %c0_2] : memref<2x64xf32, #tpu.memory_space<vmem>>, vector<1x64xf32>
    %2 = vector.broadcast %1 : vector<1x64xf32> to vector<578x64xf32>
    %3 = arith.mulf %0, %2 : vector<578x64xf32>
    %c1 = arith.constant 1 : index
    %c0_3 = arith.constant 0 : index
    %4 = vector.load %arg2[%c1, %c0_3] : memref<2x64xf32, #tpu.memory_space<vmem>>, vector<1x64xf32>
    %5 = vector.broadcast %4 : vector<1x64xf32> to vector<578x64xf32>
    %6 = arith.addf %3, %5 : vector<578x64xf32>
    %cst = arith.constant 0.000000e+00 : f32
    %7 = vector.broadcast %cst : f32 to vector<578x64xf32>
    %8 = arith.maximumf %6, %7 : vector<578x64xf32>
    %9 = arith.truncf %8 : vector<578x64xf32> to vector<578x64xbf16>
    %c0_4 = arith.constant 0 : index
    %c0_5 = arith.constant 0 : index
    %10 = vector.load %arg3[%c0_4, %c0_5] : memref<64x128xbf16, #tpu.memory_space<vmem>>, vector<64x128xbf16>
    %cst_6 = arith.constant dense<0.000000e+00> : vector<578x128xf32>
    %11 = tpu.matmul %9, %10, %cst_6 {dimension_numbers = #tpu.dot_dimension_numbers<[1], [0], [0], [1], [0, 0, 1, 1], [], []>} : vector<578x64xbf16>, vector<64x128xbf16>, vector<578x128xf32> -> vector<578x128xf32>
    %c0_7 = arith.constant 0 : index
    %c0_8 = arith.constant 0 : index
    %12 = vector.load %arg4[%c0_7, %c0_8] : memref<578x128xf32, #tpu.memory_space<vmem>>, vector<578x128xf32>
    tpu.vector_store %arg4[%c0_7, %c0_8], %11 {strides = array<i32>} : memref<578x128xf32, #tpu.memory_space<vmem>>, vector<578x128xf32>,
    return
  }
  func.func @transform_0(%arg0: i32) -> (i32, i32) {
    %c0_i32 = arith.constant 0 : i32
    %c0_i32_0 = arith.constant 0 : i32
    return %arg0, %c0_i32 : i32, i32
  }
  func.func @transform_1(%arg0: i32) -> (i32, i32) {
    %c0_i32 = arith.constant 0 : i32
    %c0_i32_0 = arith.constant 0 : i32
    %c0_i32_1 = arith.constant 0 : i32
    return %c0_i32, %c0_i32_0 : i32, i32
  }
  func.func @transform_2(%arg0: i32) -> (i32, i32) {
    %c0_i32 = arith.constant 0 : i32
    %c0_i32_0 = arith.constant 0 : i32
    %c0_i32_1 = arith.constant 0 : i32
    return %c0_i32, %c0_i32_0 : i32, i32
  }
  func.func @transform_3(%arg0: i32) -> (i32, i32) {
    %c0_i32 = arith.constant 0 : i32
    %c0_i32_0 = arith.constant 0 : i32
    return %arg0, %c0_i32 : i32, i32
  }
}

</mosaic_0001>

<bundles_post_ra>
// kernel: _lambda_.14
= control target key start
LH: loop header
LB: loop body
LE: loop exit
PB: predicated region body
PF: predicated region fallthrough
CT: control target
= control target key end

     0   :  { %vm113_vm0 = vcmask 1040384   ;;  %vm88_vm1 = vcmask 801792   ;;  %s385_s1 = inlined_call_operand.vmem [shape: bf16[98,128], index: 1, kind: input, shape index: {}]   ;;  %s386_s0 = inlined_call_operand.vmem [shape: f32[128,98], index: 0, kind: input, shape index: {}]   ;;  %s387_s2 = inlined_call_operand.vmem [shape: f32[128,128], index: 2, kind: output, shape index: {}]  }
   0x1   :  { %v48_v0 = vld [vmem:[%s385_s1 + $0x30] sm:$0x1]  ;;  %v223_v4 = vld [vmem:[%s385_s1 + $0x28] sm:$0xff]  ;;  %v222_v5 = vld [vmem:[%s385_s1 + $0x20] sm:$0xff] }
   0x2   :  { %v74_v1 = vunpack.c.l.b16 %v48_v0  ;;  %v221_v6 = vld [vmem:[%s385_s1 + $0x18] sm:$0xff]  ;;  %v220_v7 = vld [vmem:[%s385_s1 + $0x10] sm:$0xff]  ;;  %v219_v8 = vld [vmem:[%s385_s1 + $0x8] sm:$0xff] }
   0x3   :  { %v218_v9 = vld [vmem:[%s385_s1] sm:$0xff]  ;;  %v13_v11 = vld [vmem:[%s386_s0 + $0x8] sm:$0xff]  ;;  %v14_v22 = vld [vmem:[%s386_s0 + $0x10] sm:$0xff] }
   0x4   :  { %v81_v2 = vpack.c.b16 %v74_v1, %v74_v1  ;;  %v12_v10 = vld [vmem:[%s386_s0] sm:$0xff]  ;;  %v17_v13 = vld [vmem:[%s386_s0 + $0x28] sm:$0xff]  ;;  %v15_v23 = vld [vmem:[%s386_s0 + $0x18] sm:$0xff] }
   0x5   :  { %v16_v12 = vld [vmem:[%s386_s0 + $0x20] sm:$0xff]  ;;  %v21_v15 = vld [vmem:[%s386_s0 + $0x48] sm:$0xff]  ;;  %v28_v18 = vpack.c.bf16 %v13_v11, %v12_v10  ;;  %v18_v24 = vld [vmem:[%s386_s0 + $0x30] sm:$0xff]  ;;  %v29_v30 = vpack.c.bf16 %v15_v23, %v14_v22 }
   0x6   :  { %v115_v3 = vsel %vm113_vm0, %v81_v2, 0  ;;  %v20_v14 = vld [vmem:[%s386_s0 + $0x40] sm:$0xff]  ;;  %v25_v17 = vld [vmem:[%s386_s0 + $0x68] sm:$0xff]  ;;  %v30_v19 = vpack.c.bf16 %v17_v13, %v16_v12  ;;  %v19_v25 = vld [vmem:[%s386_s0 + $0x38] sm:$0xff] }
   0x7   :  { %118 = vmatpush.bf16.msra.mxu0 %v115_v3  ;;  %224 = vmatpush.bf16.msra.mxu1 %v115_v3  ;;  %v24_v16 = vld [vmem:[%s386_s0 + $0x60] sm:$0xff]  ;;  %v32_v20 = vpack.c.bf16 %v21_v15, %v20_v14  ;;  %v22_v26 = vld [vmem:[%s386_s0 + $0x50] sm:$0xff]  ;;  %v23_v27 = vld [vmem:[%s386_s0 + $0x58] sm:$0xff]  ;;  %v31_v31 = vpack.c.bf16 %v19_v25, %v18_v24 }
   0x8   :  { %225 = vmatpush.bf16.msra.mxu2 %v115_v3  ;;  %226 = vmatpush.bf16.msra.mxu3 %v115_v3  ;;  %v34_v21 = vpack.c.bf16 %v25_v17, %v24_v16  ;;  %v26_v28 = vld [vmem:[%s386_s0 + $0x70] sm:$0xff]  ;;  %v27_v29 = vld [vmem:[%s386_s0 + $0x78] sm:$0xff]  ;;  %v33_v32 = vpack.c.bf16 %v23_v27, %v22_v26 }
   0x9   :  { %v35_v33 = vpack.c.bf16 %v27_v29, %v26_v28 }
   0xb   :  { %119 = vmatpush.bf16.msra.mxu0 %v223_v4  ;;  %227 = vmatpush.bf16.msra.mxu1 %v223_v4 }
   0xc   :  { %228 = vmatpush.bf16.msra.mxu2 %v223_v4  ;;  %229 = vmatpush.bf16.msra.mxu3 %v223_v4 }
   0xf   :  { %120 = vmatpush.bf16.msra.mxu0 %v222_v5  ;;  %230 = vmatpush.bf16.msra.mxu1 %v222_v5 }
  0x10   :  { %231 = vmatpush.bf16.msra.mxu2 %v222_v5  ;;  %232 = vmatpush.bf16.msra.mxu3 %v222_v5 }
  0x13   :  { %121 = vmatpush.bf16.msra.mxu0 %v221_v6  ;;  %233 = vmatpush.bf16.msra.mxu1 %v221_v6 }
  0x14   :  { %234 = vmatpush.bf16.msra.mxu2 %v221_v6  ;;  %235 = vmatpush.bf16.msra.mxu3 %v221_v6 }
  0x17   :  { %122 = vmatpush.bf16.msra.mxu0 %v220_v7  ;;  %236 = vmatpush.bf16.msra.mxu1 %v220_v7 }
  0x18   :  { %237 = vmatpush.bf16.msra.mxu2 %v220_v7  ;;  %238 = vmatpush.bf16.msra.mxu3 %v220_v7 }
  0x1b   :  { %123 = vmatpush.bf16.msra.mxu0 %v219_v8  ;;  %239 = vmatpush.bf16.msra.mxu1 %v219_v8 }
  0x1c   :  { %240 = vmatpush.bf16.msra.mxu2 %v219_v8  ;;  %241 = vmatpush.bf16.msra.mxu3 %v219_v8 }
  0x1f   :  { %124 = vmatpush.bf16.msra.mxu0 %v218_v9  ;;  %242 = vmatpush.bf16.msra.mxu1 %v218_v9 }
  0x20   :  { %243 = vmatpush.bf16.msra.mxu2 %v218_v9  ;;  %244 = vmatpush.bf16.msra.mxu3 %v218_v9 }
  0x22   :  { %210 = vmatmul.msk.bf16.vlgmr.msra.gmra.mxu0 %vm88_vm1, %v28_v18  ;;  %212 = vmatmul.msk.bf16.vlgmr.msra.gmra.mxu1 %vm88_vm1, %v30_v19 }
  0x23   :  { %214 = vmatmul.msk.bf16.vlgmr.msra.gmra.mxu2 %vm88_vm1, %v32_v20  ;;  %216 = vmatmul.msk.bf16.vlgmr.msra.gmra.mxu3 %vm88_vm1, %v34_v21 }
  0x32   :  { %211 = vmatmul.msk.bf16.gmra.mxu0 %vm88_vm1, %v29_v30  ;;  %213 = vmatmul.msk.bf16.gmra.mxu1 %vm88_vm1, %v31_v31 }
  0x33   :  { %215 = vmatmul.msk.bf16.gmra.mxu2 %vm88_vm1, %v33_v32  ;;  %217 = vmatmul.msk.bf16.gmra.mxu3 %vm88_vm1, %v35_v33 }
  0x9f   :  { %v126_v34 = vpop.f32.mrf.mxu0  ;;  %v136_v35 = vpop.f32.mrf.mxu1 }
  0xa0   :  { %166 = vst [vmem:[%s387_s2] sm:$0xff] %v126_v34 }
  0xa1   :  { %170 = vst [vmem:[%s387_s2 + $0x20] sm:$0xff] %v136_v35 }
  0xa6   :  { %v146_v36 = vpop.f32.mrf.mxu2  ;;  %v156_v37 = vpop.f32.mrf.mxu3 }
  0xa7   :  { %174 = vst [vmem:[%s387_s2 + $0x40] sm:$0xff] %v146_v36  ;;  %v128_v38 = vpop.f32.mrf.mxu0  ;;  %v138_v39 = vpop.f32.mrf.mxu1 }
  0xa8   :  { %178 = vst [vmem:[%s387_s2 + $0x60] sm:$0xff] %v156_v37 }
  0xa9   :  { %167 = vst [vmem:[%s387_s2 + $0x8] sm:$0xff] %v128_v38 }
  0xaa   :  { %171 = vst [vmem:[%s387_s2 + $0x28] sm:$0xff] %v138_v39 }
  0xae   :  { %v148_v40 = vpop.f32.mrf.mxu2  ;;  %v158_v41 = vpop.f32.mrf.mxu3 }
  0xaf   :  { %175 = vst [vmem:[%s387_s2 + $0x48] sm:$0xff] %v148_v40  ;;  %v131_v42 = vpop.f32.mrf.mxu0  ;;  %v141_v43 = vpop.f32.mrf.mxu1 }
  0xb0   :  { %179 = vst [vmem:[%s387_s2 + $0x68] sm:$0xff] %v158_v41 }
  0xb1   :  { %168 = vst [vmem:[%s387_s2 + $0x10] sm:$0xff] %v131_v42 }
  0xb2   :  { %172 = vst [vmem:[%s387_s2 + $0x30] sm:$0xff] %v141_v43 }
  0xb6   :  { %v151_v44 = vpop.f32.mrf.mxu2  ;;  %v161_v45 = vpop.f32.mrf.mxu3 }
  0xb7   :  { %176 = vst [vmem:[%s387_s2 + $0x50] sm:$0xff] %v151_v44  ;;  %v133_v46 = vpop.f32.mrf.mxu0  ;;  %v143_v47 = vpop.f32.mrf.mxu1 }
  0xb8   :  { %180 = vst [vmem:[%s387_s2 + $0x70] sm:$0xff] %v161_v45 }
  0xb9   :  { %169 = vst [vmem:[%s387_s2 + $0x18] sm:$0xff] %v133_v46 }
  0xba   :  { %173 = vst [vmem:[%s387_s2 + $0x38] sm:$0xff] %v143_v47 }
  0xbe   :  { %v153_v48 = vpop.f32.mrf.mxu2  ;;  %v163_v49 = vpop.f32.mrf.mxu3 }
  0xbf   :  { %177 = vst [vmem:[%s387_s2 + $0x58] sm:$0xff] %v153_v48 }
  0xc0   :  { %181 = vst [vmem:[%s387_s2 + $0x78] sm:$0xff] %v163_v49 }

// kernel: _lambda_.15
= control target key start
LH: loop header
LB: loop body
LE: loop exit
PB: predicated region body
PF: predicated region fallthrough
CT: control target
= control target key end

     0   :  { %vm244_vm0 = vcmask 130048   ;;  %s727_s2 = inlined_call_operand.vmem [shape: bf16[144,128], index: 2, kind: input, shape index: {}]   ;;  %s728_s0 = inlined_call_operand.vmem [shape: f32[128,144], index: 0, kind: input, shape index: {}]   ;;  %s729_s1 = inlined_call_operand.vmem [shape: f32[2,144], index: 1, kind: input, shape index: {}]   ;;  %s730_s3 = inlined_call_operand.vmem [shape: f32[128,128], index: 3, kind: output, shape index: {}]  }
   0x1   :  { %v439_v0 = vld [vmem:[%s727_s2 + $0x38] sm:$0xff]  ;;  %v440_v1 = vld [vmem:[%s727_s2 + $0x40] sm:$0xff]  ;;  %v438_v2 = vld [vmem:[%s727_s2 + $0x30] sm:$0xff] }
   0x2   :  { %v16_v3 = vld [vmem:[%s728_s0 + $0x8] sm:$0xff]  ;;  %v18_v4 = vld [vmem:[%s728_s0 + $0x18] sm:$0xff]  ;;  %269 = vmatpush.bf16.msra.mxu0 %v439_v0  ;;  %441 = vmatpush.bf16.msra.mxu2 %v439_v0  ;;  %v47_v5 = vld [vmem:[%s729_s1] ss:$2 sm:$0x3] }
   0x3   :  { %v387_v6 = vld [vmem:[%s729_s1 + $0x1] ss:$2 sm:$0x3]  ;;  %325 = vmatpush.bf16.msra.mxu1 %v440_v1  ;;  %v491_v7 = vperm.slane %v47_v5, 1  ;;  %449 = vmatpush.bf16.msra.mxu3 %v440_v1  ;;  %v437_v11 = vld [vmem:[%s727_s2 + $0x28] sm:$0xff]  ;;  %v38_v15 = vld [vmem:[%s728_s0 + $0xb8] sm:$0xff] }
   0x4   :  { %v493_v8 = vperm.slane %v387_v6, 1  ;;  %v36_v14 = vld [vmem:[%s728_s0 + $0xa8] sm:$0xff]  ;;  %v436_v19 = vld [vmem:[%s727_s2 + $0x20] sm:$0xff]  ;;  %v22_v20 = vld [vmem:[%s728_s0 + $0x38] sm:$0xff]  ;;  %v520_v25 = vperm.slane %v47_v5, 0  ;;  %v544_v39 = vperm.slane %v387_v6, 0 }
   0x5   :  { %v54_v9 = vmul.f32 %v491_v7, %v16_v3  ;;  %v56_v10 = vmul.f32 %v491_v7, %v18_v4  ;;  %v20_v18 = vld [vmem:[%s728_s0 + $0x28] sm:$0xff]  ;;  %v74_v22 = vmul.f32 %v491_v7, %v36_v14  ;;  %v76_v23 = vmul.f32 %v491_v7, %v38_v15  ;;  %v15_v27 = vld [vmem:[%s728_s0] sm:$0xff]  ;;  %v17_v28 = vld [vmem:[%s728_s0 + $0x10] sm:$0xff] }
   0x6   :  { %270 = vmatpush.bf16.msra.mxu0 %v438_v2  ;;  %442 = vmatpush.bf16.msra.mxu2 %v438_v2  ;;  %v58_v24 = vmul.f32 %v491_v7, %v20_v18  ;;  %v60_v26 = vmul.f32 %v491_v7, %v22_v20  ;;  %v435_v31 = vld [vmem:[%s727_s2 + $0x18] sm:$0xff]  ;;  %v31_v32 = vld [vmem:[%s728_s0 + $0x80] sm:$0xff]  ;;  %v33_v33 = vld [vmem:[%s728_s0 + $0x90] sm:$0xff]  ;;  %v53_v37 = vmul.f32 %v520_v25, %v15_v27 }
   0x7   :  { %v93_v12 = vadd.f32 %v493_v8, %v54_v9  ;;  %v95_v13 = vadd.f32 %v493_v8, %v56_v10  ;;  %v113_v29 = vadd.f32 %v493_v8, %v74_v22  ;;  %v115_v30 = vadd.f32 %v493_v8, %v76_v23  ;;  %v40_v44 = vld [vmem:[%s728_s0 + $0xc8] sm:$0xff]  ;;  %v42_v45 = vld [vmem:[%s728_s0 + $0xd8] sm:$0xff]  ;;  %v434_v46 = vld [vmem:[%s727_s2 + $0x10] sm:$0xff] }
   0x8   :  { %v97_v36 = vadd.f32 %v493_v8, %v58_v24  ;;  %v55_v38 = vmul.f32 %v520_v25, %v17_v28  ;;  %v99_v40 = vadd.f32 %v493_v8, %v60_v26  ;;  %v69_v41 = vmul.f32 %v520_v25, %v31_v32  ;;  %v433_v55 = vld [vmem:[%s727_s2 + $0x8] sm:$0xff]  ;;  %v432_v0 = vld [vmem:[%s727_s2] sm:$0xff]  ;;  %v26_v1 = vld [vmem:[%s728_s0 + $0x58] sm:$0xff] }
   0x9   :  { %v125_v16 = vmax.f32 %v93_v12, 0.0  ;;  %v127_v17 = vmax.f32 %v95_v13, 0.0  ;;  %v145_v34 = vmax.f32 %v113_v29, 0.0  ;;  %v147_v35 = vmax.f32 %v115_v30, 0.0  ;;  %v24_v63 = vld [vmem:[%s728_s0 + $0x48] sm:$0xff]  ;;  %v19_v10 = vld [vmem:[%s728_s0 + $0x20] sm:$0xff] }
   0xa   :  { %271 = vmatpush.bf16.msra.mxu0 %v437_v11  ;;  %443 = vmatpush.bf16.msra.mxu2 %v437_v11  ;;  %v71_v42 = vmul.f32 %v520_v25, %v33_v33  ;;  %v78_v47 = vmul.f32 %v491_v7, %v40_v44  ;;  %v80_v48 = vmul.f32 %v491_v7, %v42_v45  ;;  %v129_v51 = vmax.f32 %v97_v36, 0.0  ;;  %v21_v11 = vld [vmem:[%s728_s0 + $0x30] sm:$0xff]  ;;  %v35_v12 = vld [vmem:[%s728_s0 + $0xa0] sm:$0xff]  ;;  %v46_v22 = vld [vmem:[%s728_s0 + $0xf8] sm:$0xff] }
   0xb   :  { %v157_v21 = vpack.c.bf16 %v127_v17, %v125_v16  ;;  %v167_v43 = vpack.c.bf16 %v147_v35, %v145_v34  ;;  %v92_v49 = vadd.f32 %v544_v39, %v53_v37  ;;  %v94_v50 = vadd.f32 %v544_v39, %v55_v38  ;;  %v37_v13 = vld [vmem:[%s728_s0 + $0xb0] sm:$0xff]  ;;  %v32_v23 = vld [vmem:[%s728_s0 + $0x88] sm:$0xff]  ;;  %v34_v24 = vld [vmem:[%s728_s0 + $0x98] sm:$0xff] }
   0xc   :  { %v131_v52 = vmax.f32 %v99_v40, 0.0  ;;  %v108_v53 = vadd.f32 %v544_v39, %v69_v41  ;;  %v110_v54 = vadd.f32 %v544_v39, %v71_v42  ;;  %v117_v56 = vadd.f32 %v493_v8, %v78_v47 }
   0xd   :  { %424 = vmatmul.msk.bf16.vlgmr.msra.gmra.mxu1 %vm244_vm0, %v157_v21  ;;  %429 = vmatmul.msk.bf16.vlgmr.msra.gmra.mxu3 %vm244_vm0, %v167_v43  ;;  %v119_v57 = vadd.f32 %v493_v8, %v80_v48  ;;  %v124_v58 = vmax.f32 %v92_v49, 0.0  ;;  %v126_v60 = vmax.f32 %v94_v50, 0.0  ;;  %v62_v4 = vmul.f32 %v491_v7, %v24_v63  ;;  %v44_v21 = vld [vmem:[%s728_s0 + $0xe8] sm:$0xff]  ;;  %v30_v49 = vld [vmem:[%s728_s0 + $0x78] sm:$0xff] }
   0xe   :  { %272 = vmatpush.bf16.msra.mxu0 %v436_v19  ;;  %444 = vmatpush.bf16.msra.mxu2 %v436_v19  ;;  %v159_v59 = vpack.c.bf16 %v131_v52, %v129_v51  ;;  %v140_v61 = vmax.f32 %v108_v53, 0.0  ;;  %v142_v62 = vmax.f32 %v110_v54, 0.0  ;;  %v149_v2 = vmax.f32 %v117_v56, 0.0  ;;  %v28_v48 = vld [vmem:[%s728_s0 + $0x68] sm:$0xff] }
   0xf   :  { %v151_v3 = vmax.f32 %v119_v57, 0.0  ;;  %v156_v5 = vpack.c.bf16 %v126_v60, %v124_v58  ;;  %v64_v9 = vmul.f32 %v491_v7, %v26_v1  ;;  %v101_v15 = vadd.f32 %v493_v8, %v62_v4  ;;  %v23_v57 = vld [vmem:[%s728_s0 + $0x40] sm:$0xff]  ;;  %v25_v58 = vld [vmem:[%s728_s0 + $0x50] sm:$0xff] }
  0x10   :  { %v164_v6 = vpack.c.bf16 %v142_v62, %v140_v61  ;;  %v57_v16 = vmul.f32 %v520_v25, %v19_v10  ;;  %v59_v17 = vmul.f32 %v520_v25, %v21_v11  ;;  %v73_v19 = vmul.f32 %v520_v25, %v35_v12 }
  0x11   :  { %v169_v14 = vpack.c.bf16 %v151_v3, %v149_v2  ;;  %v103_v18 = vadd.f32 %v493_v8, %v64_v9  ;;  %v75_v20 = vmul.f32 %v520_v25, %v37_v13  ;;  %v70_v26 = vmul.f32 %v491_v7, %v32_v23 }
  0x12   :  { %273 = vmatpush.bf16.msra.mxu0 %v435_v31  ;;  %445 = vmatpush.bf16.msra.mxu2 %v435_v31  ;;  %v82_v27 = vmul.f32 %v491_v7, %v44_v21  ;;  %v84_v28 = vmul.f32 %v491_v7, %v46_v22  ;;  %v72_v29 = vmul.f32 %v491_v7, %v34_v24  ;;  %v133_v30 = vmax.f32 %v101_v15, 0.0 }
  0x13   :  { %v96_v31 = vadd.f32 %v544_v39, %v57_v16  ;;  %v98_v32 = vadd.f32 %v544_v39, %v59_v17  ;;  %v109_v33 = vadd.f32 %v493_v8, %v70_v26  ;;  %v135_v34 = vmax.f32 %v103_v18, 0.0  ;;  %v27_v17 = vld [vmem:[%s728_s0 + $0x60] sm:$0xff]  ;;  %v29_v18 = vld [vmem:[%s728_s0 + $0x70] sm:$0xff] }
  0x14   :  { %v112_v35 = vadd.f32 %v544_v39, %v73_v19  ;;  %v114_v36 = vadd.f32 %v544_v39, %v75_v20  ;;  %v111_v37 = vadd.f32 %v493_v8, %v72_v29  ;;  %v121_v40 = vadd.f32 %v493_v8, %v82_v27  ;;  %v43_v19 = vld [vmem:[%s728_s0 + $0xe0] sm:$0xff]  ;;  %v45_v20 = vld [vmem:[%s728_s0 + $0xf0] sm:$0xff] }
  0x15   :  { %v141_v38 = vmax.f32 %v109_v33, 0.0  ;;  %v123_v41 = vadd.f32 %v493_v8, %v84_v28  ;;  %v128_v43 = vmax.f32 %v96_v31, 0.0  ;;  %v130_v44 = vmax.f32 %v98_v32, 0.0 }
  0x16   :  { %274 = vmatpush.bf16.msra.mxu0 %v434_v46  ;;  %446 = vmatpush.bf16.msra.mxu2 %v434_v46  ;;  %v143_v42 = vmax.f32 %v111_v37, 0.0  ;;  %v161_v45 = vpack.c.bf16 %v135_v34, %v133_v30  ;;  %v144_v46 = vmax.f32 %v112_v35, 0.0  ;;  %v146_v47 = vmax.f32 %v114_v36, 0.0 }
  0x17   :  { %v153_v51 = vmax.f32 %v121_v40, 0.0  ;;  %v155_v52 = vmax.f32 %v123_v41, 0.0  ;;  %v66_v53 = vmul.f32 %v491_v7, %v28_v48  ;;  %v68_v54 = vmul.f32 %v491_v7, %v30_v49  ;;  %v41_v7 = vld [vmem:[%s728_s0 + $0xd0] sm:$0xff] }
  0x18   :  { %v165_v50 = vpack.c.bf16 %v143_v42, %v141_v38  ;;  %v166_v56 = vpack.c.bf16 %v146_v47, %v144_v46  ;;  %v61_v63 = vmul.f32 %v520_v25, %v23_v57  ;;  %v79_v2 = vmul.f32 %v520_v25, %v41_v7 }
  0x19   :  { %v171_v60 = vpack.c.bf16 %v155_v52, %v153_v51  ;;  %v105_v61 = vadd.f32 %v493_v8, %v66_v53  ;;  %v107_v62 = vadd.f32 %v493_v8, %v68_v54  ;;  %v65_v21 = vmul.f32 %v520_v25, %v27_v17 }
  0x1a   :  { %275 = vmatpush.bf16.msra.mxu0 %v433_v55  ;;  %447 = vmatpush.bf16.msra.mxu2 %v433_v55  ;;  %v158_v55 = vpack.c.bf16 %v130_v44, %v128_v43  ;;  %v118_v9 = vadd.f32 %v544_v39, %v79_v2  ;;  %v67_v22 = vmul.f32 %v520_v25, %v29_v18 }
  0x1b   :  { %v137_v3 = vmax.f32 %v105_v61, 0.0  ;;  %v139_v4 = vmax.f32 %v107_v62, 0.0  ;;  %v81_v23 = vmul.f32 %v520_v25, %v43_v19  ;;  %v83_v24 = vmul.f32 %v520_v25, %v45_v20 }
  0x1c   :  { %v104_v26 = vadd.f32 %v544_v39, %v65_v21  ;;  %v106_v27 = vadd.f32 %v544_v39, %v67_v22 }
  0x1d   :  { %425 = vmatmul.msk.bf16.gmra.mxu1 %vm244_vm0, %v159_v59  ;;  %430 = vmatmul.msk.bf16.gmra.mxu3 %vm244_vm0, %v169_v14  ;;  %v39_v59 = vld [vmem:[%s728_s0 + $0xc0] sm:$0xff]  ;;  %v163_v10 = vpack.c.bf16 %v139_v4, %v137_v3  ;;  %v150_v14 = vmax.f32 %v118_v9, 0.0  ;;  %v120_v28 = vadd.f32 %v544_v39, %v81_v23  ;;  %v122_v29 = vadd.f32 %v544_v39, %v83_v24 }
  0x1e   :  { %276 = vmatpush.bf16.msra.mxu0 %v432_v0  ;;  %448 = vmatpush.bf16.msra.mxu2 %v432_v0  ;;  %v63_v0 = vmul.f32 %v520_v25, %v25_v58  ;;  %v77_v1 = vmul.f32 %v520_v25, %v39_v59  ;;  %v136_v30 = vmax.f32 %v104_v26, 0.0  ;;  %v138_v31 = vmax.f32 %v106_v27, 0.0 }
  0x1f   :  { %v152_v32 = vmax.f32 %v120_v28, 0.0  ;;  %v154_v33 = vmax.f32 %v122_v29, 0.0 }
  0x20   :  { %v116_v8 = vadd.f32 %v544_v39, %v77_v1  ;;  %v162_v34 = vpack.c.bf16 %v138_v31, %v136_v30 }
  0x21   :  { %277 = vmatmul.bf16.vlgmr.msra.gmra.mxu0 %v156_v5  ;;  %297 = vmatmul.bf16.vlgmr.msra.gmra.mxu2 %v164_v6  ;;  %v100_v5 = vadd.f32 %v544_v39, %v61_v63  ;;  %v102_v6 = vadd.f32 %v544_v39, %v63_v0  ;;  %v170_v35 = vpack.c.bf16 %v154_v33, %v152_v32 }
  0x22   :  { %v148_v13 = vmax.f32 %v116_v8, 0.0 }
  0x23   :  { %v132_v11 = vmax.f32 %v100_v5, 0.0  ;;  %v134_v12 = vmax.f32 %v102_v6, 0.0 }
  0x24   :  { %v168_v16 = vpack.c.bf16 %v150_v14, %v148_v13 }
  0x25   :  { %v160_v15 = vpack.c.bf16 %v134_v12, %v132_v11 }
  0x2d   :  { %426 = vmatmul.msk.bf16.gmra.mxu1 %vm244_vm0, %v161_v45  ;;  %431 = vmatmul.msk.bf16.gmra.mxu3 %vm244_vm0, %v171_v60 }
  0x31   :  { %282 = vmatmul.bf16.gmra.mxu0 %v158_v55  ;;  %302 = vmatmul.bf16.gmra.mxu2 %v166_v56 }
  0x3d   :  { %427 = vmatmul.msk.bf16.gmra.mxu1 %vm244_vm0, %v163_v10 }
  0x41   :  { %287 = vmatmul.bf16.gmra.mxu0 %v160_v15  ;;  %307 = vmatmul.bf16.gmra.mxu2 %v168_v16 }
  0x4d   :  { %428 = vmatmul.msk.bf16.gmra.mxu1 %vm244_vm0, %v165_v50 }
  0x51   :  { %292 = vmatmul.bf16.gmra.mxu0 %v162_v34  ;;  %312 = vmatmul.bf16.gmra.mxu2 %v170_v35 }
  0x8a   :  { %v327_v36 = vpop.f32.mrf.mxu1 }
  0x90   :  { %v352_v45 = vpop.f32.mrf.mxu3 }
  0x92   :  { %v329_v25 = vpop.f32.mrf.mxu1 }
  0x98   :  { %v354_v51 = vpop.f32.mrf.mxu3 }
  0x9a   :  { %v332_v37 = vpop.f32.mrf.mxu1 }
  0x9e   :  { %v278_v38 = vpop.f32.mrf.mxu0 }
  0x9f   :  { %v328_v40 = vadd.f32 %v327_v36, %v278_v38 }
  0xa0   :  { %v357_v58 = vpop.f32.mrf.mxu3 }
  0xa1   :  { %367 = vst [vmem:[%s730_s3] sm:$0xff] %v328_v40 }
  0xa2   :  { %v334_v39 = vpop.f32.mrf.mxu1 }
  0xa4   :  { %v298_v41 = vpop.f32.mrf.mxu2 }
  0xa6   :  { %v280_v42 = vpop.f32.mrf.mxu0 }
  0xa7   :  { %v330_v43 = vadd.f32 %v329_v25, %v280_v42 }
  0xa8   :  { %v359_v1 = vpop.f32.mrf.mxu3 }
  0xa9   :  { %368 = vst [vmem:[%s730_s3 + $0x8] sm:$0xff] %v330_v43 }
  0xaa   :  { %v337_v44 = vpop.f32.mrf.mxu1 }
  0xac   :  { %v300_v46 = vpop.f32.mrf.mxu2 }
  0xae   :  { %v283_v47 = vpop.f32.mrf.mxu0 }
  0xaf   :  { %v333_v48 = vadd.f32 %v332_v37, %v283_v47 }
  0xb0   :  { %v362_v9 = vpop.f32.mrf.mxu3 }
  0xb1   :  { %369 = vst [vmem:[%s730_s3 + $0x10] sm:$0xff] %v333_v48 }
  0xb2   :  { %v339_v49 = vpop.f32.mrf.mxu1 }
  0xb4   :  { %v303_v50 = vpop.f32.mrf.mxu2 }
  0xb5   :  { %v353_v52 = vadd.f32 %v352_v45, %v303_v50 }
  0xb6   :  { %v285_v53 = vpop.f32.mrf.mxu0 }
  0xb7   :  { %377 = vst [vmem:[%s730_s3 + $0x50] sm:$0xff] %v353_v52  ;;  %v335_v54 = vadd.f32 %v334_v39, %v285_v53 }
  0xb8   :  { %v364_v16 = vpop.f32.mrf.mxu3 }
  0xb9   :  { %370 = vst [vmem:[%s730_s3 + $0x18] sm:$0xff] %v335_v54 }
  0xba   :  { %v342_v55 = vpop.f32.mrf.mxu1 }
  0xbc   :  { %v305_v56 = vpop.f32.mrf.mxu2 }
  0xbd   :  { %v355_v57 = vadd.f32 %v354_v51, %v305_v56 }
  0xbe   :  { %v288_v59 = vpop.f32.mrf.mxu0 }
  0xbf   :  { %378 = vst [vmem:[%s730_s3 + $0x58] sm:$0xff] %v355_v57  ;;  %v338_v7 = vadd.f32 %v337_v44, %v288_v59 }
  0xc1   :  { %371 = vst [vmem:[%s730_s3 + $0x20] sm:$0xff] %v338_v7 }
  0xc2   :  { %v344_v60 = vpop.f32.mrf.mxu1 }
  0xc4   :  { %v308_v61 = vpop.f32.mrf.mxu2 }
  0xc5   :  { %v358_v62 = vadd.f32 %v357_v58, %v308_v61 }
  0xc6   :  { %v290_v63 = vpop.f32.mrf.mxu0 }
  0xc7   :  { %379 = vst [vmem:[%s730_s3 + $0x60] sm:$0xff] %v358_v62  ;;  %v340_v0 = vadd.f32 %v339_v49, %v290_v63 }
  0xc9   :  { %372 = vst [vmem:[%s730_s3 + $0x28] sm:$0xff] %v340_v0 }
  0xca   :  { %v347_v2 = vpop.f32.mrf.mxu1 }
  0xcb   :  { %v348_v3 = vadd.f32 %v347_v2, %v298_v41 }
  0xcc   :  { %v310_v4 = vpop.f32.mrf.mxu2 }
  0xcd   :  { %375 = vst [vmem:[%s730_s3 + $0x40] sm:$0xff] %v348_v3  ;;  %v360_v5 = vadd.f32 %v359_v1, %v310_v4 }
  0xce   :  { %v293_v6 = vpop.f32.mrf.mxu0 }
  0xcf   :  { %380 = vst [vmem:[%s730_s3 + $0x68] sm:$0xff] %v360_v5  ;;  %v343_v8 = vadd.f32 %v342_v55, %v293_v6 }
  0xd1   :  { %373 = vst [vmem:[%s730_s3 + $0x30] sm:$0xff] %v343_v8 }
  0xd2   :  { %v349_v10 = vpop.f32.mrf.mxu1 }
  0xd3   :  { %v350_v11 = vadd.f32 %v349_v10, %v300_v46 }
  0xd4   :  { %v313_v12 = vpop.f32.mrf.mxu2 }
  0xd5   :  { %376 = vst [vmem:[%s730_s3 + $0x48] sm:$0xff] %v350_v11  ;;  %v363_v13 = vadd.f32 %v362_v9, %v313_v12 }
  0xd6   :  { %v295_v14 = vpop.f32.mrf.mxu0 }
  0xd7   :  { %381 = vst [vmem:[%s730_s3 + $0x70] sm:$0xff] %v363_v13  ;;  %v345_v15 = vadd.f32 %v344_v60, %v295_v14 }
  0xd9   :  { %374 = vst [vmem:[%s730_s3 + $0x38] sm:$0xff] %v345_v15 }
  0xdc   :  { %v315_v17 = vpop.f32.mrf.mxu2 }
  0xdd   :  { %v365_v18 = vadd.f32 %v364_v16, %v315_v17 }
  0xdf   :  { %382 = vst [vmem:[%s730_s3 + $0x78] sm:$0xff] %v365_v18 }

// kernel: _lambda_.16
= control target key start
LH: loop header
LB: loop body
LE: loop exit
PB: predicated region body
PF: predicated region fallthrough
CT: control target
= control target key end

     0   :  { %vm289_vm0 = vcmask 1041408   ;;  %vm264_vm1 = vcmask 424960   ;;  %s773_s2 = inlined_call_operand.vmem [shape: bf16[180,128], index: 2, kind: input, shape index: {}]   ;;  %s774_s0 = inlined_call_operand.vmem [shape: f32[128,180], index: 0, kind: input, shape index: {}]   ;;  %s775_s1 = inlined_call_operand.vmem [shape: f32[2,180], index: 1, kind: input, shape index: {}]   ;;  %s776_s3 = inlined_call_operand.vmem [shape: f32[128,128], index: 3, kind: output, shape index: {}]  }
   0x1   :  { %v471_v0 = vld [vmem:[%s773_s2 + $0x38] sm:$0xff]  ;;  %v470_v3 = vld [vmem:[%s773_s2 + $0x30] sm:$0xff]  ;;  %v16_v5 = vld [vmem:[%s774_s0 + $0x8] sm:$0xff] }
   0x2   :  { %v194_v1 = vld [vmem:[%s773_s2 + $0x58] sm:$0x3]  ;;  %293 = vmatpush.bf16.msra.mxu0 %v471_v0  ;;  %475 = vmatpush.bf16.msra.mxu2 %v471_v0  ;;  %v47_v7 = vld [vmem:[%s775_s1] ss:$2 sm:$0x3]  ;;  %v474_v12 = vld [vmem:[%s773_s2 + $0x50] sm:$0xff] }
   0x3   :  { %v240_v2 = vunpack.c.l.b16 %v194_v1  ;;  %v18_v6 = vld [vmem:[%s774_s0 + $0x18] sm:$0xff]  ;;  %v525_v8 = vperm.slane %v47_v7, 1  ;;  %v411_v9 = vld [vmem:[%s775_s1 + $0x1] ss:$2 sm:$0x3]  ;;  %v469_v13 = vld [vmem:[%s773_s2 + $0x28] sm:$0xff] }
   0x4   :  { %v530_v11 = vperm.slane %v411_v9, 1  ;;  %v36_v18 = vld [vmem:[%s774_s0 + $0xa8] sm:$0xff]  ;;  %v468_v20 = vld [vmem:[%s773_s2 + $0x20] sm:$0xff]  ;;  %v38_v21 = vld [vmem:[%s774_s0 + $0xb8] sm:$0xff]  ;;  %v554_v22 = vperm.slane %v47_v7, 0  ;;  %v579_v36 = vperm.slane %v411_v9, 0 }
   0x5   :  { %v252_v4 = vpack.c.b16 %v240_v2, %v240_v2  ;;  %v54_v14 = vmul.f32 %v525_v8, %v16_v5  ;;  %v56_v15 = vmul.f32 %v525_v8, %v18_v6  ;;  %v473_v19 = vld [vmem:[%s773_s2 + $0x48] sm:$0xff]  ;;  %v74_v23 = vmul.f32 %v525_v8, %v36_v18  ;;  %v472_v24 = vld [vmem:[%s773_s2 + $0x40] sm:$0xff]  ;;  %v467_v29 = vld [vmem:[%s773_s2 + $0x18] sm:$0xff] }
   0x6   :  { %294 = vmatpush.bf16.msra.mxu0 %v470_v3  ;;  %476 = vmatpush.bf16.msra.mxu2 %v470_v3  ;;  %v15_v27 = vld [vmem:[%s774_s0] sm:$0xff]  ;;  %v76_v28 = vmul.f32 %v525_v8, %v38_v21  ;;  %v17_v30 = vld [vmem:[%s774_s0 + $0x10] sm:$0xff]  ;;  %v20_v41 = vld [vmem:[%s774_s0 + $0x28] sm:$0xff] }
   0x7   :  { %v291_v10 = vsel %vm289_vm0, %v252_v4, 0  ;;  %v93_v16 = vadd.f32 %v530_v11, %v54_v14  ;;  %v95_v17 = vadd.f32 %v530_v11, %v56_v15  ;;  %v31_v31 = vld [vmem:[%s774_s0 + $0x80] sm:$0xff]  ;;  %v113_v32 = vadd.f32 %v530_v11, %v74_v23  ;;  %v33_v33 = vld [vmem:[%s774_s0 + $0x90] sm:$0xff]  ;;  %v22_v45 = vld [vmem:[%s774_s0 + $0x38] sm:$0xff] }
   0x8   :  { %346 = vmatpush.bf16.msra.mxu1 %v291_v10  ;;  %483 = vmatpush.bf16.msra.mxu3 %v291_v10  ;;  %v115_v34 = vadd.f32 %v530_v11, %v76_v28  ;;  %v53_v35 = vmul.f32 %v554_v22, %v15_v27  ;;  %v55_v39 = vmul.f32 %v554_v22, %v17_v30  ;;  %v466_v43 = vld [vmem:[%s773_s2 + $0x10] sm:$0xff]  ;;  %v40_v47 = vld [vmem:[%s774_s0 + $0xc8] sm:$0xff]  ;;  %v42_v48 = vld [vmem:[%s774_s0 + $0xd8] sm:$0xff] }
   0x9   :  { %v125_v25 = vmax.f32 %v93_v16, 0.0  ;;  %v127_v26 = vmax.f32 %v95_v17, 0.0  ;;  %v145_v37 = vmax.f32 %v113_v32, 0.0  ;;  %v69_v40 = vmul.f32 %v554_v22, %v31_v31  ;;  %v465_v54 = vld [vmem:[%s773_s2 + $0x8] sm:$0xff]  ;;  %v464_v62 = vld [vmem:[%s773_s2] sm:$0xff]  ;;  %v21_v7 = vld [vmem:[%s774_s0 + $0x30] sm:$0xff] }
   0xa   :  { %295 = vmatpush.bf16.msra.mxu0 %v469_v13  ;;  %477 = vmatpush.bf16.msra.mxu2 %v469_v13  ;;  %v147_v42 = vmax.f32 %v115_v34, 0.0  ;;  %v71_v44 = vmul.f32 %v554_v22, %v33_v33  ;;  %v58_v49 = vmul.f32 %v525_v8, %v20_v41  ;;  %v92_v50 = vadd.f32 %v579_v36, %v53_v35  ;;  %v19_v6 = vld [vmem:[%s774_s0 + $0x20] sm:$0xff]  ;;  %v26_v21 = vld [vmem:[%s774_s0 + $0x58] sm:$0xff] }
   0xb   :  { %v157_v38 = vpack.c.bf16 %v127_v26, %v125_v25  ;;  %v94_v51 = vadd.f32 %v579_v36, %v55_v39  ;;  %v108_v52 = vadd.f32 %v579_v36, %v69_v40  ;;  %v60_v53 = vmul.f32 %v525_v8, %v22_v45  ;;  %v35_v10 = vld [vmem:[%s774_s0 + $0xa0] sm:$0xff]  ;;  %v46_v25 = vld [vmem:[%s774_s0 + $0xf8] sm:$0xff] }
   0xc   :  { %347 = vmatpush.bf16.msra.mxu1 %v474_v12  ;;  %484 = vmatpush.bf16.msra.mxu3 %v474_v12  ;;  %v167_v46 = vpack.c.bf16 %v147_v42, %v145_v37  ;;  %v110_v55 = vadd.f32 %v579_v36, %v71_v44  ;;  %v78_v56 = vmul.f32 %v525_v8, %v40_v47  ;;  %v124_v58 = vmax.f32 %v92_v50, 0.0  ;;  %v37_v12 = vld [vmem:[%s774_s0 + $0xb0] sm:$0xff]  ;;  %v32_v47 = vld [vmem:[%s774_s0 + $0x88] sm:$0xff] }
   0xd   :  { %v80_v57 = vmul.f32 %v525_v8, %v42_v48  ;;  %v126_v59 = vmax.f32 %v94_v51, 0.0  ;;  %v97_v60 = vadd.f32 %v530_v11, %v58_v49  ;;  %v99_v61 = vadd.f32 %v530_v11, %v60_v53  ;;  %v34_v48 = vld [vmem:[%s774_s0 + $0x98] sm:$0xff]  ;;  %v23_v49 = vld [vmem:[%s774_s0 + $0x40] sm:$0xff]  ;;  %v25_v50 = vld [vmem:[%s774_s0 + $0x50] sm:$0xff] }
   0xe   :  { %296 = vmatpush.bf16.msra.mxu0 %v468_v20  ;;  %478 = vmatpush.bf16.msra.mxu2 %v468_v20  ;;  %v140_v63 = vmax.f32 %v108_v52, 0.0  ;;  %v142_v0 = vmax.f32 %v110_v55, 0.0  ;;  %v117_v1 = vadd.f32 %v530_v11, %v78_v56  ;;  %v57_v15 = vmul.f32 %v554_v22, %v19_v6  ;;  %v24_v20 = vld [vmem:[%s774_s0 + $0x48] sm:$0xff]  ;;  %v39_v51 = vld [vmem:[%s774_s0 + $0xc0] sm:$0xff]  ;;  %v41_v56 = vld [vmem:[%s774_s0 + $0xd0] sm:$0xff] }
   0xf   :  { %v119_v2 = vadd.f32 %v530_v11, %v80_v57  ;;  %v156_v3 = vpack.c.bf16 %v126_v59, %v124_v58  ;;  %v129_v4 = vmax.f32 %v97_v60, 0.0  ;;  %v131_v5 = vmax.f32 %v99_v61, 0.0 }
  0x10   :  { %348 = vmatpush.bf16.msra.mxu1 %v473_v19  ;;  %485 = vmatpush.bf16.msra.mxu3 %v473_v19  ;;  %v164_v9 = vpack.c.bf16 %v142_v0, %v140_v63  ;;  %v149_v13 = vmax.f32 %v117_v1, 0.0  ;;  %v59_v16 = vmul.f32 %v554_v22, %v21_v7  ;;  %v73_v18 = vmul.f32 %v554_v22, %v35_v10  ;;  %v28_v0 = vld [vmem:[%s774_s0 + $0x68] sm:$0xff]  ;;  %v30_v1 = vld [vmem:[%s774_s0 + $0x78] sm:$0xff] }
  0x11   :  { %v151_v14 = vmax.f32 %v119_v2, 0.0  ;;  %v159_v17 = vpack.c.bf16 %v131_v5, %v129_v4  ;;  %v75_v19 = vmul.f32 %v554_v22, %v37_v12  ;;  %v96_v26 = vadd.f32 %v579_v36, %v57_v15 }
  0x12   :  { %297 = vmatpush.bf16.msra.mxu0 %v467_v29  ;;  %479 = vmatpush.bf16.msra.mxu2 %v467_v29  ;;  %v98_v27 = vadd.f32 %v579_v36, %v59_v16  ;;  %v112_v28 = vadd.f32 %v579_v36, %v73_v18  ;;  %v62_v30 = vmul.f32 %v525_v8, %v24_v20 }
  0x13   :  { %v169_v23 = vpack.c.bf16 %v151_v14, %v149_v13  ;;  %v114_v29 = vadd.f32 %v579_v36, %v75_v19  ;;  %v64_v31 = vmul.f32 %v525_v8, %v26_v21  ;;  %v84_v33 = vmul.f32 %v525_v8, %v46_v25  ;;  %v29_v25 = vld [vmem:[%s774_s0 + $0x70] sm:$0xff] }
  0x14   :  { %349 = vmatpush.bf16.msra.mxu1 %v472_v24  ;;  %486 = vmatpush.bf16.msra.mxu3 %v472_v24  ;;  %v44_v24 = vld [vmem:[%s774_s0 + $0xe8] sm:$0xff]  ;;  %v128_v34 = vmax.f32 %v96_v26, 0.0  ;;  %v130_v35 = vmax.f32 %v98_v27, 0.0  ;;  %v144_v37 = vmax.f32 %v112_v28, 0.0  ;;  %v101_v39 = vadd.f32 %v530_v11, %v62_v30  ;;  %v43_v26 = vld [vmem:[%s774_s0 + $0xe0] sm:$0xff] }
  0x15   :  { %v82_v32 = vmul.f32 %v525_v8, %v44_v24  ;;  %v103_v40 = vadd.f32 %v530_v11, %v64_v31  ;;  %v123_v42 = vadd.f32 %v530_v11, %v84_v33  ;;  %v72_v55 = vmul.f32 %v525_v8, %v34_v48 }
  0x16   :  { %298 = vmatpush.bf16.msra.mxu0 %v466_v43  ;;  %480 = vmatpush.bf16.msra.mxu2 %v466_v43  ;;  %v158_v43 = vpack.c.bf16 %v130_v35, %v128_v34  ;;  %v133_v45 = vmax.f32 %v101_v39, 0.0  ;;  %v61_v60 = vmul.f32 %v554_v22, %v23_v49  ;;  %v63_v61 = vmul.f32 %v554_v22, %v25_v50 }
  0x17   :  { %456 = vmatmul.msk.bf16.vlgmr.msra.gmra.mxu1 %vm264_vm1, %v157_v38  ;;  %461 = vmatmul.msk.bf16.vlgmr.msra.gmra.mxu3 %vm264_vm1, %v167_v46  ;;  %v146_v38 = vmax.f32 %v114_v29, 0.0  ;;  %v121_v41 = vadd.f32 %v530_v11, %v82_v32  ;;  %v135_v46 = vmax.f32 %v103_v40, 0.0  ;;  %v155_v53 = vmax.f32 %v123_v42, 0.0 }
  0x18   :  { %v111_v58 = vadd.f32 %v530_v11, %v72_v55  ;;  %v79_v63 = vmul.f32 %v554_v22, %v41_v56  ;;  %v100_v6 = vadd.f32 %v579_v36, %v61_v60  ;;  %v102_v7 = vadd.f32 %v579_v36, %v63_v61 }
  0x19   :  { %v166_v44 = vpack.c.bf16 %v146_v38, %v144_v37  ;;  %v153_v52 = vmax.f32 %v121_v41, 0.0  ;;  %v161_v59 = vpack.c.bf16 %v135_v46, %v133_v45  ;;  %v68_v10 = vmul.f32 %v525_v8, %v30_v1 }
  0x1a   :  { %299 = vmatpush.bf16.msra.mxu0 %v465_v54  ;;  %481 = vmatpush.bf16.msra.mxu2 %v465_v54  ;;  %v70_v54 = vmul.f32 %v525_v8, %v32_v47  ;;  %v143_v4 = vmax.f32 %v111_v58, 0.0  ;;  %v118_v13 = vadd.f32 %v579_v36, %v79_v63  ;;  %v132_v14 = vmax.f32 %v100_v6, 0.0 }
  0x1b   :  { %v171_v2 = vpack.c.bf16 %v155_v53, %v153_v52  ;;  %v134_v15 = vmax.f32 %v102_v7, 0.0  ;;  %v67_v29 = vmul.f32 %v554_v22, %v29_v25  ;;  %v81_v30 = vmul.f32 %v554_v22, %v43_v26 }
  0x1c   :  { %v109_v57 = vadd.f32 %v530_v11, %v70_v54  ;;  %v150_v19 = vmax.f32 %v118_v13, 0.0 }
  0x1d   :  { %v160_v20 = vpack.c.bf16 %v134_v15, %v132_v14  ;;  %v106_v33 = vadd.f32 %v579_v36, %v67_v29  ;;  %v120_v34 = vadd.f32 %v579_v36, %v81_v30 }
  0x1e   :  { %300 = vmatpush.bf16.msra.mxu0 %v464_v62  ;;  %482 = vmatpush.bf16.msra.mxu2 %v464_v62  ;;  %v77_v62 = vmul.f32 %v554_v22, %v39_v51 }
  0x1f   :  { %v138_v38 = vmax.f32 %v106_v33, 0.0  ;;  %v152_v39 = vmax.f32 %v120_v34, 0.0 }
  0x20   :  { %v116_v12 = vadd.f32 %v579_v36, %v77_v62 }
  0x21   :  { %301 = vmatmul.bf16.vlgmr.msra.gmra.mxu0 %v156_v3  ;;  %321 = vmatmul.bf16.vlgmr.msra.gmra.mxu2 %v164_v9  ;;  %v141_v3 = vmax.f32 %v109_v57, 0.0  ;;  %v66_v9 = vmul.f32 %v525_v8, %v28_v0  ;;  %v27_v8 = vld [vmem:[%s774_s0 + $0x60] sm:$0xff] }
  0x22   :  { %v148_v18 = vmax.f32 %v116_v12, 0.0  ;;  %v65_v28 = vmul.f32 %v554_v22, %v27_v8 }
  0x23   :  { %v165_v5 = vpack.c.bf16 %v143_v4, %v141_v3  ;;  %v105_v16 = vadd.f32 %v530_v11, %v66_v9 }
  0x24   :  { %v168_v24 = vpack.c.bf16 %v150_v19, %v148_v18  ;;  %v104_v32 = vadd.f32 %v579_v36, %v65_v28 }
  0x25   :  { %v137_v21 = vmax.f32 %v105_v16, 0.0 }
  0x26   :  { %v136_v37 = vmax.f32 %v104_v32, 0.0 }
  0x27   :  { %457 = vmatmul.msk.bf16.gmra.mxu1 %vm264_vm1, %v159_v17  ;;  %462 = vmatmul.msk.bf16.gmra.mxu3 %vm264_vm1, %v169_v23  ;;  %v107_v17 = vadd.f32 %v530_v11, %v68_v10  ;;  %v45_v11 = vld [vmem:[%s774_s0 + $0xf0] sm:$0xff] }
  0x28   :  { %v83_v31 = vmul.f32 %v554_v22, %v45_v11  ;;  %v162_v41 = vpack.c.bf16 %v138_v38, %v136_v37 }
  0x29   :  { %v139_v23 = vmax.f32 %v107_v17, 0.0 }
  0x2a   :  { %v122_v35 = vadd.f32 %v579_v36, %v83_v31 }
  0x2b   :  { %v163_v27 = vpack.c.bf16 %v139_v23, %v137_v21 }
  0x2c   :  { %v154_v40 = vmax.f32 %v122_v35, 0.0 }
  0x2e   :  { %v170_v42 = vpack.c.bf16 %v154_v40, %v152_v39 }
  0x31   :  { %306 = vmatmul.bf16.gmra.mxu0 %v158_v43  ;;  %326 = vmatmul.bf16.gmra.mxu2 %v166_v44 }
  0x37   :  { %458 = vmatmul.msk.bf16.gmra.mxu1 %vm264_vm1, %v161_v59  ;;  %463 = vmatmul.msk.bf16.gmra.mxu3 %vm264_vm1, %v171_v2 }
  0x41   :  { %311 = vmatmul.bf16.gmra.mxu0 %v160_v20  ;;  %331 = vmatmul.bf16.gmra.mxu2 %v168_v24 }
  0x47   :  { %459 = vmatmul.msk.bf16.gmra.mxu1 %vm264_vm1, %v163_v27 }
  0x51   :  { %316 = vmatmul.bf16.gmra.mxu0 %v162_v41  ;;  %336 = vmatmul.bf16.gmra.mxu2 %v170_v42 }
  0x57   :  { %460 = vmatmul.msk.bf16.gmra.mxu1 %vm264_vm1, %v165_v5 }
  0x94   :  { %v351_v22 = vpop.f32.mrf.mxu1 }
  0x9a   :  { %v376_v50 = vpop.f32.mrf.mxu3 }
  0x9c   :  { %v353_v43 = vpop.f32.mrf.mxu1 }
  0x9e   :  { %v302_v44 = vpop.f32.mrf.mxu0 }
  0x9f   :  { %v352_v45 = vadd.f32 %v351_v22, %v302_v44 }
  0xa1   :  { %391 = vst [vmem:[%s776_s3] sm:$0xff] %v352_v45 }
  0xa2   :  { %v378_v56 = vpop.f32.mrf.mxu3 }
  0xa4   :  { %v356_v46 = vpop.f32.mrf.mxu1  ;;  %v322_v36 = vpop.f32.mrf.mxu2 }
  0xa6   :  { %v304_v47 = vpop.f32.mrf.mxu0 }
  0xa7   :  { %v354_v48 = vadd.f32 %v353_v43, %v304_v47 }
  0xa9   :  { %392 = vst [vmem:[%s776_s3 + $0x8] sm:$0xff] %v354_v48 }
  0xaa   :  { %v381_v0 = vpop.f32.mrf.mxu3 }
  0xac   :  { %v358_v49 = vpop.f32.mrf.mxu1  ;;  %v324_v51 = vpop.f32.mrf.mxu2 }
  0xae   :  { %v307_v52 = vpop.f32.mrf.mxu0 }
  0xaf   :  { %v357_v53 = vadd.f32 %v356_v46, %v307_v52 }
  0xb1   :  { %393 = vst [vmem:[%s776_s3 + $0x10] sm:$0xff] %v357_v53 }
  0xb2   :  { %v383_v7 = vpop.f32.mrf.mxu3 }
  0xb4   :  { %v361_v54 = vpop.f32.mrf.mxu1  ;;  %v327_v55 = vpop.f32.mrf.mxu2 }
  0xb5   :  { %v377_v57 = vadd.f32 %v376_v50, %v327_v55 }
  0xb6   :  { %v309_v58 = vpop.f32.mrf.mxu0 }
  0xb7   :  { %v359_v59 = vadd.f32 %v358_v49, %v309_v58  ;;  %401 = vst [vmem:[%s776_s3 + $0x50] sm:$0xff] %v377_v57 }
  0xb9   :  { %394 = vst [vmem:[%s776_s3 + $0x18] sm:$0xff] %v359_v59 }
  0xba   :  { %v386_v16 = vpop.f32.mrf.mxu3 }
  0xbc   :  { %v363_v60 = vpop.f32.mrf.mxu1  ;;  %v329_v61 = vpop.f32.mrf.mxu2 }
  0xbd   :  { %v379_v62 = vadd.f32 %v378_v56, %v329_v61 }
  0xbe   :  { %v312_v63 = vpop.f32.mrf.mxu0 }
  0xbf   :  { %v362_v1 = vadd.f32 %v361_v54, %v312_v63  ;;  %402 = vst [vmem:[%s776_s3 + $0x58] sm:$0xff] %v379_v62 }
  0xc1   :  { %395 = vst [vmem:[%s776_s3 + $0x20] sm:$0xff] %v362_v1 }
  0xc2   :  { %v388_v8 = vpop.f32.mrf.mxu3 }
  0xc4   :  { %v366_v2 = vpop.f32.mrf.mxu1  ;;  %v332_v3 = vpop.f32.mrf.mxu2 }
  0xc5   :  { %v382_v4 = vadd.f32 %v381_v0, %v332_v3 }
  0xc6   :  { %v314_v5 = vpop.f32.mrf.mxu0 }
  0xc7   :  { %v364_v6 = vadd.f32 %v363_v60, %v314_v5  ;;  %403 = vst [vmem:[%s776_s3 + $0x60] sm:$0xff] %v382_v4 }
  0xc9   :  { %396 = vst [vmem:[%s776_s3 + $0x28] sm:$0xff] %v364_v6 }
  0xcc   :  { %v368_v9 = vpop.f32.mrf.mxu1  ;;  %v334_v10 = vpop.f32.mrf.mxu2 }
  0xcd   :  { %v384_v12 = vadd.f32 %v383_v7, %v334_v10 }
  0xce   :  { %v317_v13 = vpop.f32.mrf.mxu0 }
  0xcf   :  { %v367_v14 = vadd.f32 %v366_v2, %v317_v13  ;;  %404 = vst [vmem:[%s776_s3 + $0x68] sm:$0xff] %v384_v12 }
  0xd1   :  { %397 = vst [vmem:[%s776_s3 + $0x30] sm:$0xff] %v367_v14 }
  0xd4   :  { %v371_v15 = vpop.f32.mrf.mxu1  ;;  %v337_v18 = vpop.f32.mrf.mxu2 }
  0xd5   :  { %v372_v17 = vadd.f32 %v371_v15, %v322_v36  ;;  %v387_v19 = vadd.f32 %v386_v16, %v337_v18 }
  0xd6   :  { %v319_v20 = vpop.f32.mrf.mxu0 }
  0xd7   :  { %399 = vst [vmem:[%s776_s3 + $0x40] sm:$0xff] %v372_v17  ;;  %v369_v21 = vadd.f32 %v368_v9, %v319_v20 }
  0xd8   :  { %405 = vst [vmem:[%s776_s3 + $0x70] sm:$0xff] %v387_v19 }
  0xd9   :  { %398 = vst [vmem:[%s776_s3 + $0x38] sm:$0xff] %v369_v21 }
  0xdc   :  { %v373_v23 = vpop.f32.mrf.mxu1  ;;  %v339_v25 = vpop.f32.mrf.mxu2 }
  0xdd   :  { %v374_v24 = vadd.f32 %v373_v23, %v324_v51  ;;  %v389_v26 = vadd.f32 %v388_v8, %v339_v25 }
  0xdf   :  { %400 = vst [vmem:[%s776_s3 + $0x48] sm:$0xff] %v374_v24 }
  0xe0   :  { %406 = vst [vmem:[%s776_s3 + $0x78] sm:$0xff] %v389_v26 }

// kernel: _lambda_.17
= control target key start
LH: loop header
LB: loop body
LE: loop exit
PB: predicated region body
PF: predicated region fallthrough
CT: control target
= control target key end

     0   :  { %vm128_vm0 = vcmask 1043456   ;;  %vm103_vm1 = vcmask 195584   ;;  %s394_s2 = inlined_call_operand.vmem [shape: bf16[24,128], index: 2, kind: input, shape index: {}]   ;;  %s395_s0 = inlined_call_operand.vmem [shape: f32[128,24], index: 0, kind: input, shape index: {}]   ;;  %s396_s1 = inlined_call_operand.vmem [shape: f32[2,24], index: 1, kind: input, shape index: {}]   ;;  %s397_s3 = inlined_call_operand.vmem [shape: f32[128,128], index: 3, kind: output, shape index: {}]  }
   0x1   :  { %v93_v0 = vld [vmem:[%s394_s2 + $0x8] sm:$0xf]  ;;  %v15_v1 = vld [vmem:[%s395_s0] sm:$0xff]  ;;  %v17_v37 = vld [vmem:[%s395_s0 + $0x10] sm:$0xff] }
   0x2   :  { %v99_v2 = vunpack.c.l.b16 %v93_v0  ;;  %v16_v3 = vld [vmem:[%s395_s0 + $0x8] sm:$0xff]  ;;  %v254_v4 = vld [vmem:[%s396_s1] ss:$0 sm:$0xff]  ;;  %v259_v5 = vld [vmem:[%s396_s1 + $0x1] ss:$0 sm:$0xff] }
   0x3   :  { %v19_v6 = vld [vmem:[%s395_s0 + $0x20] sm:$0xff]  ;;  %v33_v8 = vmul.f32 %v254_v4, %v15_v1  ;;  %v34_v9 = vmul.f32 %v254_v4, %v16_v3  ;;  %v20_v10 = vld [vmem:[%s395_s0 + $0x28] sm:$0xff]  ;;  %v18_v41 = vld [vmem:[%s395_s0 + $0x18] sm:$0xff]  ;;  %v35_v48 = vmul.f32 %v254_v4, %v17_v37 }
   0x4   :  { %v101_v7 = vpack.c.b16 %v99_v2, %v99_v2  ;;  %v37_v11 = vmul.f32 %v254_v4, %v19_v6  ;;  %v23_v12 = vld [vmem:[%s395_s0 + $0x40] sm:$0xff]  ;;  %v24_v13 = vld [vmem:[%s395_s0 + $0x48] sm:$0xff]  ;;  %v38_v14 = vmul.f32 %v254_v4, %v20_v10  ;;  %v21_v42 = vld [vmem:[%s395_s0 + $0x30] sm:$0xff]  ;;  %v36_v49 = vmul.f32 %v254_v4, %v18_v41 }
   0x5   :  { %v41_v15 = vmul.f32 %v254_v4, %v23_v12  ;;  %v42_v16 = vmul.f32 %v254_v4, %v24_v13  ;;  %v27_v17 = vld [vmem:[%s395_s0 + $0x60] sm:$0xff]  ;;  %v51_v19 = vadd.f32 %v259_v5, %v33_v8  ;;  %v52_v20 = vadd.f32 %v259_v5, %v34_v9  ;;  %v28_v22 = vld [vmem:[%s395_s0 + $0x68] sm:$0xff]  ;;  %v22_v43 = vld [vmem:[%s395_s0 + $0x38] sm:$0xff] }
   0x6   :  { %v130_v18 = vsel %vm128_vm0, %v101_v7, 0  ;;  %v55_v21 = vadd.f32 %v259_v5, %v37_v11  ;;  %v213_v23 = vld [vmem:[%s394_s2] sm:$0xff]  ;;  %v56_v24 = vadd.f32 %v259_v5, %v38_v14  ;;  %v45_v30 = vmul.f32 %v254_v4, %v27_v17  ;;  %v25_v45 = vld [vmem:[%s395_s0 + $0x50] sm:$0xff]  ;;  %v26_v46 = vld [vmem:[%s395_s0 + $0x58] sm:$0xff] }
   0x7   :  { %138 = vmatpush.bf16.msra.mxu0 %v130_v18  ;;  %214 = vmatpush.bf16.msra.mxu1 %v130_v18  ;;  %v59_v25 = vadd.f32 %v259_v5, %v41_v15  ;;  %v60_v26 = vadd.f32 %v259_v5, %v42_v16  ;;  %v67_v27 = vmax.f32 %v51_v19, 0.0  ;;  %v68_v28 = vmax.f32 %v52_v20, 0.0  ;;  %v29_v52 = vld [vmem:[%s395_s0 + $0x70] sm:$0xff]  ;;  %v30_v53 = vld [vmem:[%s395_s0 + $0x78] sm:$0xff] }
   0x8   :  { %215 = vmatpush.bf16.msra.mxu2 %v130_v18  ;;  %216 = vmatpush.bf16.msra.mxu3 %v130_v18  ;;  %v71_v29 = vmax.f32 %v55_v21, 0.0  ;;  %v72_v31 = vmax.f32 %v56_v24, 0.0  ;;  %v46_v34 = vmul.f32 %v254_v4, %v28_v22  ;;  %v63_v36 = vadd.f32 %v259_v5, %v45_v30 }
   0x9   :  { %v75_v32 = vmax.f32 %v59_v25, 0.0  ;;  %v76_v33 = vmax.f32 %v60_v26, 0.0  ;;  %v83_v35 = vpack.c.bf16 %v68_v28, %v67_v27  ;;  %v39_v50 = vmul.f32 %v254_v4, %v21_v42 }
   0xa   :  { %v85_v38 = vpack.c.bf16 %v72_v31, %v71_v29  ;;  %v64_v40 = vadd.f32 %v259_v5, %v46_v34  ;;  %v79_v44 = vmax.f32 %v63_v36, 0.0  ;;  %v40_v51 = vmul.f32 %v254_v4, %v22_v43 }
   0xb   :  { %139 = vmatpush.bf16.msra.mxu0 %v213_v23  ;;  %217 = vmatpush.bf16.msra.mxu1 %v213_v23  ;;  %v87_v39 = vpack.c.bf16 %v76_v33, %v75_v32  ;;  %v43_v55 = vmul.f32 %v254_v4, %v25_v45  ;;  %v44_v56 = vmul.f32 %v254_v4, %v26_v46 }
   0xc   :  { %218 = vmatpush.bf16.msra.mxu2 %v213_v23  ;;  %219 = vmatpush.bf16.msra.mxu3 %v213_v23  ;;  %v80_v47 = vmax.f32 %v64_v40, 0.0  ;;  %v47_v57 = vmul.f32 %v254_v4, %v29_v52  ;;  %v48_v58 = vmul.f32 %v254_v4, %v30_v53  ;;  %v53_v59 = vadd.f32 %v259_v5, %v35_v48 }
   0xd   :  { %v54_v60 = vadd.f32 %v259_v5, %v36_v49  ;;  %v57_v61 = vadd.f32 %v259_v5, %v39_v50  ;;  %v58_v62 = vadd.f32 %v259_v5, %v40_v51  ;;  %v61_v63 = vadd.f32 %v259_v5, %v43_v55 }
   0xe   :  { %205 = vmatmul.msk.bf16.vlgmr.msra.gmra.mxu0 %vm103_vm1, %v83_v35  ;;  %207 = vmatmul.msk.bf16.vlgmr.msra.gmra.mxu1 %vm103_vm1, %v85_v38  ;;  %v89_v54 = vpack.c.bf16 %v80_v47, %v79_v44  ;;  %v62_v0 = vadd.f32 %v259_v5, %v44_v56  ;;  %v65_v1 = vadd.f32 %v259_v5, %v47_v57  ;;  %v69_v3 = vmax.f32 %v53_v59, 0.0 }
   0xf   :  { %209 = vmatmul.msk.bf16.vlgmr.msra.gmra.mxu2 %vm103_vm1, %v87_v39  ;;  %v66_v2 = vadd.f32 %v259_v5, %v48_v58  ;;  %v70_v6 = vmax.f32 %v54_v60, 0.0  ;;  %v73_v7 = vmax.f32 %v57_v61, 0.0  ;;  %v74_v4 = vmax.f32 %v58_v62, 0.0 }
  0x10   :  { %211 = vmatmul.msk.bf16.vlgmr.msra.gmra.mxu3 %vm103_vm1, %v89_v54  ;;  %v77_v8 = vmax.f32 %v61_v63, 0.0  ;;  %v78_v9 = vmax.f32 %v62_v0, 0.0  ;;  %v81_v10 = vmax.f32 %v65_v1, 0.0 }
  0x11   :  { %v82_v11 = vmax.f32 %v66_v2, 0.0  ;;  %v84_v12 = vpack.c.bf16 %v70_v6, %v69_v3  ;;  %v86_v13 = vpack.c.bf16 %v74_v4, %v73_v7 }
  0x12   :  { %v88_v14 = vpack.c.bf16 %v78_v9, %v77_v8 }
  0x13   :  { %v90_v15 = vpack.c.bf16 %v82_v11, %v81_v10 }
  0x1e   :  { %206 = vmatmul.msk.bf16.gmra.mxu0 %vm103_vm1, %v84_v12  ;;  %208 = vmatmul.msk.bf16.gmra.mxu1 %vm103_vm1, %v86_v13 }
  0x1f   :  { %210 = vmatmul.msk.bf16.gmra.mxu2 %vm103_vm1, %v88_v14 }
  0x20   :  { %212 = vmatmul.msk.bf16.gmra.mxu3 %vm103_vm1, %v90_v15 }
  0x8b   :  { %v141_v5 = vpop.f32.mrf.mxu0  ;;  %v151_v16 = vpop.f32.mrf.mxu1 }
  0x8c   :  { %181 = vst [vmem:[%s397_s3] sm:$0xff] %v141_v5 }
  0x8d   :  { %185 = vst [vmem:[%s397_s3 + $0x20] sm:$0xff] %v151_v16 }
  0x92   :  { %v161_v17 = vpop.f32.mrf.mxu2 }
  0x93   :  { %189 = vst [vmem:[%s397_s3 + $0x40] sm:$0xff] %v161_v17  ;;  %v143_v18 = vpop.f32.mrf.mxu0  ;;  %v153_v19 = vpop.f32.mrf.mxu1 }
  0x94   :  { %v171_v20 = vpop.f32.mrf.mxu3  ;;  %182 = vst [vmem:[%s397_s3 + $0x8] sm:$0xff] %v143_v18 }
  0x95   :  { %193 = vst [vmem:[%s397_s3 + $0x60] sm:$0xff] %v171_v20 }
  0x96   :  { %186 = vst [vmem:[%s397_s3 + $0x28] sm:$0xff] %v153_v19 }
  0x9a   :  { %v163_v21 = vpop.f32.mrf.mxu2 }
  0x9b   :  { %190 = vst [vmem:[%s397_s3 + $0x48] sm:$0xff] %v163_v21  ;;  %v146_v22 = vpop.f32.mrf.mxu0  ;;  %v156_v23 = vpop.f32.mrf.mxu1 }
  0x9c   :  { %v173_v24 = vpop.f32.mrf.mxu3  ;;  %183 = vst [vmem:[%s397_s3 + $0x10] sm:$0xff] %v146_v22 }
  0x9d   :  { %194 = vst [vmem:[%s397_s3 + $0x68] sm:$0xff] %v173_v24 }
  0x9e   :  { %187 = vst [vmem:[%s397_s3 + $0x30] sm:$0xff] %v156_v23 }
  0xa2   :  { %v166_v25 = vpop.f32.mrf.mxu2 }
  0xa3   :  { %191 = vst [vmem:[%s397_s3 + $0x50] sm:$0xff] %v166_v25  ;;  %v148_v26 = vpop.f32.mrf.mxu0  ;;  %v158_v27 = vpop.f32.mrf.mxu1 }
  0xa4   :  { %v176_v28 = vpop.f32.mrf.mxu3  ;;  %184 = vst [vmem:[%s397_s3 + $0x18] sm:$0xff] %v148_v26 }
  0xa5   :  { %195 = vst [vmem:[%s397_s3 + $0x70] sm:$0xff] %v176_v28 }
  0xa6   :  { %188 = vst [vmem:[%s397_s3 + $0x38] sm:$0xff] %v158_v27 }
  0xaa   :  { %v168_v29 = vpop.f32.mrf.mxu2 }
  0xab   :  { %192 = vst [vmem:[%s397_s3 + $0x58] sm:$0xff] %v168_v29 }
  0xac   :  { %v178_v30 = vpop.f32.mrf.mxu3 }
  0xad   :  { %196 = vst [vmem:[%s397_s3 + $0x78] sm:$0xff] %v178_v30 }

// kernel: _lambda_.18
= control target key start
LH: loop header
LB: loop body
LE: loop exit
PB: predicated region body
PF: predicated region fallthrough
CT: control target
= control target key end

     0   :  { %vm99_vm0 = vcmask 1045504   ;;  %vm92_vm1 = vcmask 883712   ;;  %s250_s2 = inlined_call_operand.vmem [shape: bf16[108,128], index: 2, kind: input, shape index: {}]   ;;  %s251_s1 = inlined_call_operand.vmem [shape: f32[2,108], index: 1, kind: input, shape index: {}]   ;;  %s252_s0 = inlined_call_operand.vmem [shape: f32[32,108], index: 0, kind: input, shape index: {}]   ;;  %s253_s3 = inlined_call_operand.vmem [shape: f32[32,128], index: 3, kind: output, shape index: {}]  }
   0x1   :  { %v156_v0 = vld [vmem:[%s250_s2 + $0x30] sm:$0xf]  ;;  %v166_v1 = vld [vmem:[%s250_s2 + $0x30] sm:$0x30]  ;;  %v165_v4 = vld [vmem:[%s250_s2 + $0x28] sm:$0xff] }
   0x2   :  { %v157_v2 = vor.u32 %v166_v1, %v156_v0  ;;  %v164_v5 = vld [vmem:[%s250_s2 + $0x20] sm:$0xff]  ;;  %v163_v6 = vld [vmem:[%s250_s2 + $0x18] sm:$0xff]  ;;  %v16_v9 = vld [vmem:[%s252_s0 + $0x8] sm:$0xff] }
   0x3   :  { %v15_v7 = vld [vmem:[%s252_s0] sm:$0xff]  ;;  %v17_v10 = vld [vmem:[%s252_s0 + $0x10] sm:$0xff]  ;;  %v18_v11 = vld [vmem:[%s252_s0 + $0x18] sm:$0xff] }
   0x4   :  { %v101_v3 = vsel %vm99_vm0, %v157_v2, 0  ;;  %v174_v8 = vld [vmem:[%s251_s1] ss:$0 sm:$0xff]  ;;  %v175_v14 = vld [vmem:[%s251_s1 + $0x1] ss:$0 sm:$0xff]  ;;  %v162_v17 = vld [vmem:[%s250_s2 + $0x10] sm:$0xff] }
   0x5   :  { %104 = vmatpush.bf16.msra.mxu0 %v101_v3  ;;  %167 = vmatpush.bf16.msra.mxu1 %v101_v3  ;;  %v21_v12 = vmul.f32 %v174_v8, %v15_v7  ;;  %v22_v13 = vmul.f32 %v174_v8, %v16_v9  ;;  %v23_v15 = vmul.f32 %v174_v8, %v17_v10  ;;  %v161_v22 = vld [vmem:[%s250_s2 + $0x8] sm:$0xff]  ;;  %v160_v27 = vld [vmem:[%s250_s2] sm:$0xff] }
   0x6   :  { %v24_v16 = vmul.f32 %v174_v8, %v18_v11 }
   0x7   :  { %v27_v18 = vadd.f32 %v175_v14, %v21_v12  ;;  %v28_v19 = vadd.f32 %v175_v14, %v22_v13  ;;  %v29_v20 = vadd.f32 %v175_v14, %v23_v15 }
   0x8   :  { %v30_v21 = vadd.f32 %v175_v14, %v24_v16 }
   0x9   :  { %105 = vmatpush.bf16.msra.mxu0 %v165_v4  ;;  %168 = vmatpush.bf16.msra.mxu1 %v165_v4  ;;  %v31_v23 = vmax.f32 %v27_v18, 0.0  ;;  %v32_v24 = vmax.f32 %v28_v19, 0.0  ;;  %v33_v25 = vmax.f32 %v29_v20, 0.0 }
   0xa   :  { %v34_v26 = vmax.f32 %v30_v21, 0.0 }
   0xb   :  { %v35_v28 = vpack.c.bf16 %v32_v24, %v31_v23 }
   0xc   :  { %v36_v29 = vpack.c.bf16 %v34_v26, %v33_v25 }
   0xd   :  { %106 = vmatpush.bf16.msra.mxu0 %v164_v5  ;;  %169 = vmatpush.bf16.msra.mxu1 %v164_v5 }
  0x11   :  { %107 = vmatpush.bf16.msra.mxu0 %v163_v6  ;;  %170 = vmatpush.bf16.msra.mxu1 %v163_v6 }
  0x15   :  { %108 = vmatpush.bf16.msra.mxu0 %v162_v17  ;;  %171 = vmatpush.bf16.msra.mxu1 %v162_v17 }
  0x19   :  { %109 = vmatpush.bf16.msra.mxu0 %v161_v22  ;;  %172 = vmatpush.bf16.msra.mxu1 %v161_v22 }
  0x1d   :  { %110 = vmatpush.bf16.msra.mxu0 %v160_v27  ;;  %173 = vmatpush.bf16.msra.mxu1 %v160_v27 }
  0x20   :  { %158 = vmatmul.msk.bf16.vlgmr.msra.gmra.mxu0 %vm92_vm1, %v35_v28  ;;  %159 = vmatmul.msk.bf16.vlgmr.msra.gmra.mxu1 %vm92_vm1, %v36_v29 }
  0x9d   :  { %v112_v30 = vpop.f32.mrf.mxu0  ;;  %v117_v31 = vpop.f32.mrf.mxu1 }
  0x9e   :  { %122 = vst [vmem:[%s253_s3] sm:$0xff] %v112_v30 }
  0x9f   :  { %124 = vst [vmem:[%s253_s3 + $0x10] sm:$0xff] %v117_v31 }
  0xa5   :  { %v114_v32 = vpop.f32.mrf.mxu0  ;;  %v119_v33 = vpop.f32.mrf.mxu1 }
  0xa6   :  { %123 = vst [vmem:[%s253_s3 + $0x8] sm:$0xff] %v114_v32 }
  0xa7   :  { %125 = vst [vmem:[%s253_s3 + $0x18] sm:$0xff] %v119_v33 }

// kernel: _lambda_.20
= control target key start
LH: loop header
LB: loop body
LE: loop exit
PB: predicated region body
PF: predicated region fallthrough
CT: control target
= control target key end

     0   :  { %vm136_vm0 = vcmask 130048   ;;  %s336_s2 = inlined_call_operand.vmem [shape: bf16[144,128], index: 2, kind: input, shape index: {}]   ;;  %s337_s0 = inlined_call_operand.vmem [shape: f32[32,144], index: 0, kind: input, shape index: {}]   ;;  %s338_s1 = inlined_call_operand.vmem [shape: f32[2,144], index: 1, kind: input, shape index: {}]   ;;  %s339_s3 = inlined_call_operand.vmem [shape: f32[32,128], index: 3, kind: output, shape index: {}]  }
   0x1   :  { %v235_v0 = vld [vmem:[%s336_s2 + $0x38] sm:$0xff]  ;;  %v234_v1 = vld [vmem:[%s336_s2 + $0x30] sm:$0xff]  ;;  %v236_v2 = vld [vmem:[%s336_s2 + $0x40] sm:$0xff] }
   0x2   :  { %143 = vmatpush.bf16.msra.mxu0 %v235_v0  ;;  %237 = vmatpush.bf16.msra.mxu2 %v235_v0  ;;  %v16_v3 = vld [vmem:[%s337_s0 + $0x8] sm:$0xff]  ;;  %v18_v4 = vld [vmem:[%s337_s0 + $0x18] sm:$0xff]  ;;  %v23_v5 = vld [vmem:[%s338_s1] ss:$2 sm:$0x3] }
   0x3   :  { %169 = vmatpush.bf16.msra.mxu1 %v236_v2  ;;  %v26_v6 = vperm.slane %v23_v5, 1  ;;  %v189_v7 = vld [vmem:[%s338_s1 + $0x1] ss:$2 sm:$0x3]  ;;  %v233_v11 = vld [vmem:[%s336_s2 + $0x28] sm:$0xff]  ;;  %v22_v18 = vld [vmem:[%s337_s0 + $0x38] sm:$0xff] }
   0x4   :  { %v41_v8 = vperm.slane %v189_v7, 1  ;;  %v232_v16 = vld [vmem:[%s336_s2 + $0x20] sm:$0xff]  ;;  %v20_v17 = vld [vmem:[%s337_s0 + $0x28] sm:$0xff]  ;;  %v25_v20 = vperm.slane %v23_v5, 0  ;;  %v17_v24 = vld [vmem:[%s337_s0 + $0x10] sm:$0xff]  ;;  %v40_v30 = vperm.slane %v189_v7, 0 }
   0x5   :  { %v30_v9 = vmul.f32 %v26_v6, %v16_v3  ;;  %v32_v10 = vmul.f32 %v26_v6, %v18_v4  ;;  %v34_v21 = vmul.f32 %v26_v6, %v20_v17  ;;  %v36_v22 = vmul.f32 %v26_v6, %v22_v18  ;;  %v15_v23 = vld [vmem:[%s337_s0] sm:$0xff]  ;;  %v231_v25 = vld [vmem:[%s336_s2 + $0x18] sm:$0xff]  ;;  %v21_v27 = vld [vmem:[%s337_s0 + $0x30] sm:$0xff] }
   0x6   :  { %144 = vmatpush.bf16.msra.mxu0 %v234_v1  ;;  %238 = vmatpush.bf16.msra.mxu2 %v234_v1  ;;  %v19_v26 = vld [vmem:[%s337_s0 + $0x20] sm:$0xff]  ;;  %v29_v28 = vmul.f32 %v25_v20, %v15_v23  ;;  %v31_v29 = vmul.f32 %v25_v20, %v17_v24  ;;  %v35_v34 = vmul.f32 %v25_v20, %v21_v27  ;;  %v230_v35 = vld [vmem:[%s336_s2 + $0x10] sm:$0xff]  ;;  %v229_v42 = vld [vmem:[%s336_s2 + $0x8] sm:$0xff] }
   0x7   :  { %v45_v12 = vadd.f32 %v41_v8, %v30_v9  ;;  %v47_v13 = vadd.f32 %v41_v8, %v32_v10  ;;  %v49_v31 = vadd.f32 %v41_v8, %v34_v21  ;;  %v51_v32 = vadd.f32 %v41_v8, %v36_v22  ;;  %v228_v48 = vld [vmem:[%s336_s2] sm:$0xff] }
   0x8   :  { %v33_v33 = vmul.f32 %v25_v20, %v19_v26  ;;  %v44_v36 = vadd.f32 %v40_v30, %v29_v28  ;;  %v46_v37 = vadd.f32 %v40_v30, %v31_v29  ;;  %v50_v41 = vadd.f32 %v40_v30, %v35_v34 }
   0x9   :  { %v53_v14 = vmax.f32 %v45_v12, 0.0  ;;  %v55_v15 = vmax.f32 %v47_v13, 0.0  ;;  %v57_v38 = vmax.f32 %v49_v31, 0.0  ;;  %v59_v39 = vmax.f32 %v51_v32, 0.0 }
   0xa   :  { %145 = vmatpush.bf16.msra.mxu0 %v233_v11  ;;  %239 = vmatpush.bf16.msra.mxu2 %v233_v11  ;;  %v48_v40 = vadd.f32 %v40_v30, %v33_v33  ;;  %v52_v43 = vmax.f32 %v44_v36, 0.0  ;;  %v54_v45 = vmax.f32 %v46_v37, 0.0  ;;  %v58_v47 = vmax.f32 %v50_v41, 0.0 }
   0xb   :  { %v61_v19 = vpack.c.bf16 %v55_v15, %v53_v14  ;;  %v63_v44 = vpack.c.bf16 %v59_v39, %v57_v38 }
   0xc   :  { %v56_v46 = vmax.f32 %v48_v40, 0.0  ;;  %v60_v49 = vpack.c.bf16 %v54_v45, %v52_v43 }
   0xd   :  { %226 = vmatmul.msk.bf16.vlgmr.msra.gmra.mxu1 %vm136_vm0, %v61_v19 }
   0xe   :  { %146 = vmatpush.bf16.msra.mxu0 %v232_v16  ;;  %240 = vmatpush.bf16.msra.mxu2 %v232_v16  ;;  %v62_v50 = vpack.c.bf16 %v58_v47, %v56_v46 }
  0x12   :  { %147 = vmatpush.bf16.msra.mxu0 %v231_v25  ;;  %241 = vmatpush.bf16.msra.mxu2 %v231_v25 }
  0x16   :  { %148 = vmatpush.bf16.msra.mxu0 %v230_v35  ;;  %242 = vmatpush.bf16.msra.mxu2 %v230_v35 }
  0x1a   :  { %149 = vmatpush.bf16.msra.mxu0 %v229_v42  ;;  %243 = vmatpush.bf16.msra.mxu2 %v229_v42 }
  0x1d   :  { %227 = vmatmul.msk.bf16.gmra.mxu1 %vm136_vm0, %v63_v44 }
  0x1e   :  { %150 = vmatpush.bf16.msra.mxu0 %v228_v48  ;;  %244 = vmatpush.bf16.msra.mxu2 %v228_v48 }
  0x21   :  { %151 = vmatmul.bf16.vlgmr.msra.gmra.mxu0 %v60_v49  ;;  %156 = vmatmul.bf16.vlgmr.msra.gmra.mxu2 %v62_v50 }
  0x8a   :  { %v171_v51 = vpop.f32.mrf.mxu1 }
  0x92   :  { %v173_v52 = vpop.f32.mrf.mxu1 }
  0x9a   :  { %v176_v55 = vpop.f32.mrf.mxu1 }
  0x9e   :  { %v152_v53 = vpop.f32.mrf.mxu0 }
  0x9f   :  { %v172_v54 = vadd.f32 %v171_v51, %v152_v53 }
  0xa1   :  { %181 = vst [vmem:[%s339_s3] sm:$0xff] %v172_v54 }
  0xa2   :  { %v178_v60 = vpop.f32.mrf.mxu1 }
  0xa4   :  { %v157_v56 = vpop.f32.mrf.mxu2 }
  0xa5   :  { %v177_v57 = vadd.f32 %v176_v55, %v157_v56 }
  0xa6   :  { %v154_v58 = vpop.f32.mrf.mxu0 }
  0xa7   :  { %183 = vst [vmem:[%s339_s3 + $0x10] sm:$0xff] %v177_v57  ;;  %v174_v59 = vadd.f32 %v173_v52, %v154_v58 }
  0xa9   :  { %182 = vst [vmem:[%s339_s3 + $0x8] sm:$0xff] %v174_v59 }
  0xac   :  { %v159_v61 = vpop.f32.mrf.mxu2 }
  0xad   :  { %v179_v62 = vadd.f32 %v178_v60, %v159_v61 }
  0xaf   :  { %184 = vst [vmem:[%s339_s3 + $0x18] sm:$0xff] %v179_v62 }

// kernel: _lambda_.21
= control target key start
LH: loop header
LB: loop body
LE: loop exit
PB: predicated region body
PF: predicated region fallthrough
CT: control target
= control target key end

     0   :  { %vm56_vm0 = vcmask 1041408   ;;  %vm49_vm1 = vcmask 162816   ;;  %s154_s2 = inlined_call_operand.vmem [shape: bf16[20,128], index: 2, kind: input, shape index: {}]   ;;  %s155_s0 = inlined_call_operand.vmem [shape: f32[32,20], index: 0, kind: input, shape index: {}]   ;;  %s156_s1 = inlined_call_operand.vmem [shape: f32[2,20], index: 1, kind: input, shape index: {}]   ;;  %s157_s3 = inlined_call_operand.vmem [shape: f32[32,128], index: 3, kind: output, shape index: {}]  }
   0x1   :  { %v39_v0 = vld [vmem:[%s154_s2 + $0x8] sm:$0x3]  ;;  %v15_v1 = vld [vmem:[%s155_s0] sm:$0xff]  ;;  %v17_v6 = vld [vmem:[%s155_s0 + $0x10] sm:$0xff] }
   0x2   :  { %v45_v2 = vunpack.c.l.b16 %v39_v0  ;;  %v16_v3 = vld [vmem:[%s155_s0 + $0x8] sm:$0xff]  ;;  %v96_v4 = vld [vmem:[%s156_s1] ss:$0 sm:$0xff]  ;;  %v97_v5 = vld [vmem:[%s156_s1 + $0x1] ss:$0 sm:$0xff] }
   0x3   :  { %v21_v8 = vmul.f32 %v96_v4, %v15_v1  ;;  %v22_v9 = vmul.f32 %v96_v4, %v16_v3  ;;  %v18_v10 = vld [vmem:[%s155_s0 + $0x18] sm:$0xff]  ;;  %v23_v11 = vmul.f32 %v96_v4, %v17_v6  ;;  %v93_v17 = vld [vmem:[%s154_s2] sm:$0xff] }
   0x4   :  { %v47_v7 = vpack.c.b16 %v45_v2, %v45_v2  ;;  %v24_v12 = vmul.f32 %v96_v4, %v18_v10 }
   0x5   :  { %v27_v14 = vadd.f32 %v97_v5, %v21_v8  ;;  %v28_v15 = vadd.f32 %v97_v5, %v22_v9  ;;  %v29_v16 = vadd.f32 %v97_v5, %v23_v11 }
   0x6   :  { %v58_v13 = vsel %vm56_vm0, %v47_v7, 0  ;;  %v30_v18 = vadd.f32 %v97_v5, %v24_v12 }
   0x7   :  { %66 = vmatpush.bf16.msra.mxu0 %v58_v13  ;;  %94 = vmatpush.bf16.msra.mxu1 %v58_v13  ;;  %v31_v19 = vmax.f32 %v27_v14, 0.0  ;;  %v32_v20 = vmax.f32 %v28_v15, 0.0  ;;  %v33_v21 = vmax.f32 %v29_v16, 0.0 }
   0x8   :  { %v34_v22 = vmax.f32 %v30_v18, 0.0 }
   0x9   :  { %v35_v23 = vpack.c.bf16 %v32_v20, %v31_v19 }
   0xa   :  { %v36_v24 = vpack.c.bf16 %v34_v22, %v33_v21 }
   0xb   :  { %67 = vmatpush.bf16.msra.mxu0 %v93_v17  ;;  %95 = vmatpush.bf16.msra.mxu1 %v93_v17 }
   0xe   :  { %91 = vmatmul.msk.bf16.vlgmr.msra.gmra.mxu0 %vm49_vm1, %v35_v23  ;;  %92 = vmatmul.msk.bf16.vlgmr.msra.gmra.mxu1 %vm49_vm1, %v36_v24 }
  0x8b   :  { %v69_v25 = vpop.f32.mrf.mxu0  ;;  %v74_v26 = vpop.f32.mrf.mxu1 }
  0x8c   :  { %79 = vst [vmem:[%s157_s3] sm:$0xff] %v69_v25 }
  0x8d   :  { %81 = vst [vmem:[%s157_s3 + $0x10] sm:$0xff] %v74_v26 }
  0x93   :  { %v71_v27 = vpop.f32.mrf.mxu0  ;;  %v76_v28 = vpop.f32.mrf.mxu1 }
  0x94   :  { %80 = vst [vmem:[%s157_s3 + $0x8] sm:$0xff] %v71_v27 }
  0x95   :  { %82 = vst [vmem:[%s157_s3 + $0x18] sm:$0xff] %v76_v28 }

// kernel: _lambda_.22
= control target key start
LH: loop header
LB: loop body
LE: loop exit
PB: predicated region body
PF: predicated region fallthrough
CT: control target
= control target key end

     0   :  { %vm163_vm0 = vcmask 1044480   ;;  %vm138_vm1 = vcmask 736256   ;;  %s481_s2 = inlined_call_operand.vmem [shape: bf16[90,128], index: 2, kind: input, shape index: {}]   ;;  %s482_s1 = inlined_call_operand.vmem [shape: f32[2,90], index: 1, kind: input, shape index: {}]   ;;  %s483_s0 = inlined_call_operand.vmem [shape: f32[128,90], index: 0, kind: input, shape index: {}]   ;;  %s484_s3 = inlined_call_operand.vmem [shape: f32[128,128], index: 3, kind: output, shape index: {}]  }
   0x1   :  { %v258_v0 = vld [vmem:[%s481_s2 + $0x28] sm:$0xf]  ;;  %v273_v1 = vld [vmem:[%s481_s2 + $0x28] sm:$0x10]  ;;  %v272_v4 = vld [vmem:[%s481_s2 + $0x20] sm:$0xff] }
   0x2   :  { %v259_v2 = vor.u32 %v273_v1, %v258_v0  ;;  %v326_v5 = vld [vmem:[%s482_s1] ss:$0 sm:$0xff]  ;;  %v271_v6 = vld [vmem:[%s481_s2 + $0x18] sm:$0xff]  ;;  %v16_v8 = vld [vmem:[%s483_s0 + $0x8] sm:$0xff] }
   0x3   :  { %v15_v7 = vld [vmem:[%s483_s0] sm:$0xff]  ;;  %v20_v10 = vld [vmem:[%s483_s0 + $0x28] sm:$0xff]  ;;  %v34_v17 = vmul.f32 %v326_v5, %v16_v8  ;;  %v270_v21 = vld [vmem:[%s481_s2 + $0x10] sm:$0xff] }
   0x4   :  { %v165_v3 = vsel %vm163_vm0, %v259_v2, 0  ;;  %v19_v9 = vld [vmem:[%s483_s0 + $0x20] sm:$0xff]  ;;  %v24_v12 = vld [vmem:[%s483_s0 + $0x48] sm:$0xff]  ;;  %v33_v15 = vmul.f32 %v326_v5, %v15_v7  ;;  %v38_v19 = vmul.f32 %v326_v5, %v20_v10  ;;  %v17_v45 = vld [vmem:[%s483_s0 + $0x10] sm:$0xff] }
   0x5   :  { %169 = vmatpush.bf16.msra.mxu0 %v165_v3  ;;  %274 = vmatpush.bf16.msra.mxu1 %v165_v3  ;;  %v23_v11 = vld [vmem:[%s483_s0 + $0x40] sm:$0xff]  ;;  %v28_v14 = vld [vmem:[%s483_s0 + $0x68] sm:$0xff]  ;;  %v37_v18 = vmul.f32 %v326_v5, %v19_v9  ;;  %v42_v22 = vmul.f32 %v326_v5, %v24_v12  ;;  %v18_v46 = vld [vmem:[%s483_s0 + $0x18] sm:$0xff]  ;;  %v35_v55 = vmul.f32 %v326_v5, %v17_v45 }
   0x6   :  { %275 = vmatpush.bf16.msra.mxu2 %v165_v3  ;;  %276 = vmatpush.bf16.msra.mxu3 %v165_v3  ;;  %v27_v13 = vld [vmem:[%s483_s0 + $0x60] sm:$0xff]  ;;  %v41_v20 = vmul.f32 %v326_v5, %v23_v11  ;;  %v46_v24 = vmul.f32 %v326_v5, %v28_v14  ;;  %v269_v30 = vld [vmem:[%s481_s2 + $0x8] sm:$0xff]  ;;  %v21_v49 = vld [vmem:[%s483_s0 + $0x30] sm:$0xff]  ;;  %v36_v56 = vmul.f32 %v326_v5, %v18_v46 }
   0x7   :  { %v359_v16 = vld [vmem:[%s482_s1 + $0x1] ss:$0 sm:$0xff]  ;;  %v45_v23 = vmul.f32 %v326_v5, %v27_v13  ;;  %v22_v50 = vld [vmem:[%s483_s0 + $0x38] sm:$0xff]  ;;  %v25_v51 = vld [vmem:[%s483_s0 + $0x50] sm:$0xff]  ;;  %v39_v57 = vmul.f32 %v326_v5, %v21_v49 }
   0x8   :  { %v51_v25 = vadd.f32 %v359_v16, %v33_v15  ;;  %v52_v26 = vadd.f32 %v359_v16, %v34_v17  ;;  %v55_v27 = vadd.f32 %v359_v16, %v37_v18  ;;  %v56_v28 = vadd.f32 %v359_v16, %v38_v19  ;;  %v268_v38 = vld [vmem:[%s481_s2] sm:$0xff]  ;;  %v26_v52 = vld [vmem:[%s483_s0 + $0x58] sm:$0xff]  ;;  %v29_v53 = vld [vmem:[%s483_s0 + $0x70] sm:$0xff] }
   0x9   :  { %170 = vmatpush.bf16.msra.mxu0 %v272_v4  ;;  %277 = vmatpush.bf16.msra.mxu1 %v272_v4  ;;  %v59_v29 = vadd.f32 %v359_v16, %v41_v20  ;;  %v60_v31 = vadd.f32 %v359_v16, %v42_v22  ;;  %v63_v32 = vadd.f32 %v359_v16, %v45_v23  ;;  %v30_v54 = vld [vmem:[%s483_s0 + $0x78] sm:$0xff] }
   0xa   :  { %278 = vmatpush.bf16.msra.mxu2 %v272_v4  ;;  %279 = vmatpush.bf16.msra.mxu3 %v272_v4  ;;  %v64_v33 = vadd.f32 %v359_v16, %v46_v24  ;;  %v67_v34 = vmax.f32 %v51_v25, 0.0  ;;  %v68_v35 = vmax.f32 %v52_v26, 0.0  ;;  %v71_v36 = vmax.f32 %v55_v27, 0.0 }
   0xb   :  { %v72_v37 = vmax.f32 %v56_v28, 0.0  ;;  %v75_v39 = vmax.f32 %v59_v29, 0.0  ;;  %v76_v40 = vmax.f32 %v60_v31, 0.0  ;;  %v79_v41 = vmax.f32 %v63_v32, 0.0 }
   0xc   :  { %v80_v42 = vmax.f32 %v64_v33, 0.0  ;;  %v83_v43 = vpack.c.bf16 %v68_v35, %v67_v34  ;;  %v40_v58 = vmul.f32 %v326_v5, %v22_v50  ;;  %v43_v59 = vmul.f32 %v326_v5, %v25_v51 }
   0xd   :  { %171 = vmatpush.bf16.msra.mxu0 %v271_v6  ;;  %280 = vmatpush.bf16.msra.mxu1 %v271_v6  ;;  %v85_v44 = vpack.c.bf16 %v72_v37, %v71_v36  ;;  %v87_v47 = vpack.c.bf16 %v76_v40, %v75_v39  ;;  %v44_v60 = vmul.f32 %v326_v5, %v26_v52 }
   0xe   :  { %281 = vmatpush.bf16.msra.mxu2 %v271_v6  ;;  %282 = vmatpush.bf16.msra.mxu3 %v271_v6  ;;  %v89_v48 = vpack.c.bf16 %v80_v42, %v79_v41  ;;  %v47_v61 = vmul.f32 %v326_v5, %v29_v53  ;;  %v48_v62 = vmul.f32 %v326_v5, %v30_v54 }
   0xf   :  { %v53_v63 = vadd.f32 %v359_v16, %v35_v55  ;;  %v54_v0 = vadd.f32 %v359_v16, %v36_v56  ;;  %v57_v1 = vadd.f32 %v359_v16, %v39_v57  ;;  %v58_v2 = vadd.f32 %v359_v16, %v40_v58 }
  0x10   :  { %v61_v3 = vadd.f32 %v359_v16, %v43_v59  ;;  %v62_v4 = vadd.f32 %v359_v16, %v44_v60  ;;  %v65_v6 = vadd.f32 %v359_v16, %v47_v61  ;;  %v66_v7 = vadd.f32 %v359_v16, %v48_v62 }
  0x11   :  { %172 = vmatpush.bf16.msra.mxu0 %v270_v21  ;;  %283 = vmatpush.bf16.msra.mxu1 %v270_v21  ;;  %v69_v8 = vmax.f32 %v53_v63, 0.0  ;;  %v70_v9 = vmax.f32 %v54_v0, 0.0  ;;  %v73_v10 = vmax.f32 %v57_v1, 0.0  ;;  %v74_v5 = vmax.f32 %v58_v2, 0.0 }
  0x12   :  { %284 = vmatpush.bf16.msra.mxu2 %v270_v21  ;;  %285 = vmatpush.bf16.msra.mxu3 %v270_v21  ;;  %v77_v11 = vmax.f32 %v61_v3, 0.0  ;;  %v78_v12 = vmax.f32 %v62_v4, 0.0  ;;  %v81_v13 = vmax.f32 %v65_v6, 0.0  ;;  %v82_v14 = vmax.f32 %v66_v7, 0.0 }
  0x13   :  { %v84_v15 = vpack.c.bf16 %v70_v9, %v69_v8  ;;  %v86_v17 = vpack.c.bf16 %v74_v5, %v73_v10 }
  0x14   :  { %v88_v18 = vpack.c.bf16 %v78_v12, %v77_v11  ;;  %v90_v19 = vpack.c.bf16 %v82_v14, %v81_v13 }
  0x15   :  { %173 = vmatpush.bf16.msra.mxu0 %v269_v30  ;;  %286 = vmatpush.bf16.msra.mxu1 %v269_v30 }
  0x16   :  { %287 = vmatpush.bf16.msra.mxu2 %v269_v30  ;;  %288 = vmatpush.bf16.msra.mxu3 %v269_v30 }
  0x19   :  { %174 = vmatpush.bf16.msra.mxu0 %v268_v38  ;;  %289 = vmatpush.bf16.msra.mxu1 %v268_v38 }
  0x1a   :  { %290 = vmatpush.bf16.msra.mxu2 %v268_v38  ;;  %291 = vmatpush.bf16.msra.mxu3 %v268_v38 }
  0x1c   :  { %260 = vmatmul.msk.bf16.vlgmr.msra.gmra.mxu0 %vm138_vm1, %v83_v43  ;;  %262 = vmatmul.msk.bf16.vlgmr.msra.gmra.mxu1 %vm138_vm1, %v85_v44 }
  0x1d   :  { %264 = vmatmul.msk.bf16.vlgmr.msra.gmra.mxu2 %vm138_vm1, %v87_v47  ;;  %266 = vmatmul.msk.bf16.vlgmr.msra.gmra.mxu3 %vm138_vm1, %v89_v48 }
  0x2c   :  { %261 = vmatmul.msk.bf16.gmra.mxu0 %vm138_vm1, %v84_v15  ;;  %263 = vmatmul.msk.bf16.gmra.mxu1 %vm138_vm1, %v86_v17 }
  0x2d   :  { %265 = vmatmul.msk.bf16.gmra.mxu2 %vm138_vm1, %v88_v18  ;;  %267 = vmatmul.msk.bf16.gmra.mxu3 %vm138_vm1, %v90_v19 }
  0x99   :  { %v176_v16 = vpop.f32.mrf.mxu0  ;;  %v186_v20 = vpop.f32.mrf.mxu1 }
  0x9a   :  { %216 = vst [vmem:[%s484_s3] sm:$0xff] %v176_v16 }
  0x9b   :  { %220 = vst [vmem:[%s484_s3 + $0x20] sm:$0xff] %v186_v20 }
  0xa0   :  { %v196_v21 = vpop.f32.mrf.mxu2  ;;  %v206_v22 = vpop.f32.mrf.mxu3 }
  0xa1   :  { %224 = vst [vmem:[%s484_s3 + $0x40] sm:$0xff] %v196_v21  ;;  %v178_v23 = vpop.f32.mrf.mxu0  ;;  %v188_v24 = vpop.f32.mrf.mxu1 }
  0xa2   :  { %228 = vst [vmem:[%s484_s3 + $0x60] sm:$0xff] %v206_v22 }
  0xa3   :  { %217 = vst [vmem:[%s484_s3 + $0x8] sm:$0xff] %v178_v23 }
  0xa4   :  { %221 = vst [vmem:[%s484_s3 + $0x28] sm:$0xff] %v188_v24 }
  0xa8   :  { %v198_v25 = vpop.f32.mrf.mxu2  ;;  %v208_v26 = vpop.f32.mrf.mxu3 }
  0xa9   :  { %225 = vst [vmem:[%s484_s3 + $0x48] sm:$0xff] %v198_v25  ;;  %v181_v27 = vpop.f32.mrf.mxu0  ;;  %v191_v28 = vpop.f32.mrf.mxu1 }
  0xaa   :  { %229 = vst [vmem:[%s484_s3 + $0x68] sm:$0xff] %v208_v26 }
  0xab   :  { %218 = vst [vmem:[%s484_s3 + $0x10] sm:$0xff] %v181_v27 }
  0xac   :  { %222 = vst [vmem:[%s484_s3 + $0x30] sm:$0xff] %v191_v28 }
  0xb0   :  { %v201_v29 = vpop.f32.mrf.mxu2  ;;  %v211_v30 = vpop.f32.mrf.mxu3 }
  0xb1   :  { %226 = vst [vmem:[%s484_s3 + $0x50] sm:$0xff] %v201_v29  ;;  %v183_v31 = vpop.f32.mrf.mxu0  ;;  %v193_v32 = vpop.f32.mrf.mxu1 }
  0xb2   :  { %230 = vst [vmem:[%s484_s3 + $0x70] sm:$0xff] %v211_v30 }
  0xb3   :  { %219 = vst [vmem:[%s484_s3 + $0x18] sm:$0xff] %v183_v31 }
  0xb4   :  { %223 = vst [vmem:[%s484_s3 + $0x38] sm:$0xff] %v193_v32 }
  0xb8   :  { %v203_v33 = vpop.f32.mrf.mxu2  ;;  %v213_v34 = vpop.f32.mrf.mxu3 }
  0xb9   :  { %227 = vst [vmem:[%s484_s3 + $0x58] sm:$0xff] %v203_v33 }
  0xba   :  { %231 = vst [vmem:[%s484_s3 + $0x78] sm:$0xff] %v213_v34 }

// kernel: _lambda_.24
= control target key start
LH: loop header
LB: loop body
LE: loop exit
PB: predicated region body
PF: predicated region fallthrough
CT: control target
= control target key end

     0   :  { %vm178_vm0 = vcmask 1046528   ;;  %vm153_vm1 = vcmask 1031168   ;;  %s518_s2 = inlined_call_operand.vmem [shape: bf16[126,128], index: 2, kind: input, shape index: {}]   ;;  %s519_s1 = inlined_call_operand.vmem [shape: f32[2,126], index: 1, kind: input, shape index: {}]   ;;  %s520_s0 = inlined_call_operand.vmem [shape: f32[128,126], index: 0, kind: input, shape index: {}]   ;;  %s521_s3 = inlined_call_operand.vmem [shape: f32[128,128], index: 3, kind: output, shape index: {}]  }
   0x1   :  { %v281_v0 = vld [vmem:[%s518_s2 + $0x38] sm:$0xf]  ;;  %v298_v1 = vld [vmem:[%s518_s2 + $0x38] sm:$0x70]  ;;  %v297_v4 = vld [vmem:[%s518_s2 + $0x30] sm:$0xff] }
   0x2   :  { %v282_v2 = vor.u32 %v298_v1, %v281_v0  ;;  %v296_v5 = vld [vmem:[%s518_s2 + $0x28] sm:$0xff]  ;;  %v295_v6 = vld [vmem:[%s518_s2 + $0x20] sm:$0xff]  ;;  %v294_v8 = vld [vmem:[%s518_s2 + $0x18] sm:$0xff] }
   0x3   :  { %v363_v7 = vld [vmem:[%s519_s1] ss:$0 sm:$0xff]  ;;  %v15_v10 = vld [vmem:[%s520_s0 + $0x8] sm:$0xff]  ;;  %v396_v18 = vld [vmem:[%s519_s1 + $0x1] ss:$0 sm:$0xff] }
   0x4   :  { %v180_v3 = vsel %vm178_vm0, %v282_v2, 0  ;;  %v14_v9 = vld [vmem:[%s520_s0] sm:$0xff]  ;;  %v19_v12 = vld [vmem:[%s520_s0 + $0x28] sm:$0xff]  ;;  %v33_v19 = vmul.f32 %v363_v7, %v15_v10  ;;  %v293_v23 = vld [vmem:[%s518_s2 + $0x10] sm:$0xff] }
   0x5   :  { %182 = vmatpush.bf16.msra.mxu0 %v180_v3  ;;  %299 = vmatpush.bf16.msra.mxu1 %v180_v3  ;;  %v18_v11 = vld [vmem:[%s520_s0 + $0x20] sm:$0xff]  ;;  %v23_v14 = vld [vmem:[%s520_s0 + $0x48] sm:$0xff]  ;;  %v32_v17 = vmul.f32 %v363_v7, %v14_v9  ;;  %v37_v21 = vmul.f32 %v363_v7, %v19_v12  ;;  %v16_v47 = vld [vmem:[%s520_s0 + $0x10] sm:$0xff] }
   0x6   :  { %300 = vmatpush.bf16.msra.mxu2 %v180_v3  ;;  %301 = vmatpush.bf16.msra.mxu3 %v180_v3  ;;  %v22_v13 = vld [vmem:[%s520_s0 + $0x40] sm:$0xff]  ;;  %v27_v16 = vld [vmem:[%s520_s0 + $0x68] sm:$0xff]  ;;  %v36_v20 = vmul.f32 %v363_v7, %v18_v11  ;;  %v41_v24 = vmul.f32 %v363_v7, %v23_v14  ;;  %v51_v28 = vadd.f32 %v396_v18, %v33_v19  ;;  %v17_v48 = vld [vmem:[%s520_s0 + $0x18] sm:$0xff] }
   0x7   :  { %v26_v15 = vld [vmem:[%s520_s0 + $0x60] sm:$0xff]  ;;  %v40_v22 = vmul.f32 %v363_v7, %v22_v13  ;;  %v45_v26 = vmul.f32 %v363_v7, %v27_v16  ;;  %v50_v27 = vadd.f32 %v396_v18, %v32_v17  ;;  %v55_v30 = vadd.f32 %v396_v18, %v37_v21  ;;  %v292_v32 = vld [vmem:[%s518_s2 + $0x8] sm:$0xff]  ;;  %v20_v51 = vld [vmem:[%s520_s0 + $0x30] sm:$0xff] }
   0x8   :  { %v44_v25 = vmul.f32 %v363_v7, %v26_v15  ;;  %v54_v29 = vadd.f32 %v396_v18, %v36_v20  ;;  %v59_v33 = vadd.f32 %v396_v18, %v41_v24  ;;  %v67_v37 = vmax.f32 %v51_v28, 0.0  ;;  %v291_v40 = vld [vmem:[%s518_s2] sm:$0xff]  ;;  %v21_v52 = vld [vmem:[%s520_s0 + $0x38] sm:$0xff]  ;;  %v24_v53 = vld [vmem:[%s520_s0 + $0x50] sm:$0xff] }
   0x9   :  { %183 = vmatpush.bf16.msra.mxu0 %v297_v4  ;;  %302 = vmatpush.bf16.msra.mxu1 %v297_v4  ;;  %v58_v31 = vadd.f32 %v396_v18, %v40_v22  ;;  %v63_v35 = vadd.f32 %v396_v18, %v45_v26  ;;  %v66_v36 = vmax.f32 %v50_v27, 0.0  ;;  %v71_v39 = vmax.f32 %v55_v30, 0.0  ;;  %v25_v54 = vld [vmem:[%s520_s0 + $0x58] sm:$0xff]  ;;  %v28_v55 = vld [vmem:[%s520_s0 + $0x70] sm:$0xff] }
   0xa   :  { %303 = vmatpush.bf16.msra.mxu2 %v297_v4  ;;  %304 = vmatpush.bf16.msra.mxu3 %v297_v4  ;;  %v62_v34 = vadd.f32 %v396_v18, %v44_v25  ;;  %v70_v38 = vmax.f32 %v54_v29, 0.0  ;;  %v75_v42 = vmax.f32 %v59_v33, 0.0  ;;  %v29_v56 = vld [vmem:[%s520_s0 + $0x78] sm:$0xff]  ;;  %v34_v57 = vmul.f32 %v363_v7, %v16_v47 }
   0xb   :  { %v74_v41 = vmax.f32 %v58_v31, 0.0  ;;  %v79_v44 = vmax.f32 %v63_v35, 0.0  ;;  %v82_v45 = vpack.c.bf16 %v67_v37, %v66_v36  ;;  %v35_v58 = vmul.f32 %v363_v7, %v17_v48 }
   0xc   :  { %v78_v43 = vmax.f32 %v62_v34, 0.0  ;;  %v84_v46 = vpack.c.bf16 %v71_v39, %v70_v38  ;;  %v38_v59 = vmul.f32 %v363_v7, %v20_v51  ;;  %v39_v60 = vmul.f32 %v363_v7, %v21_v52 }
   0xd   :  { %184 = vmatpush.bf16.msra.mxu0 %v296_v5  ;;  %305 = vmatpush.bf16.msra.mxu1 %v296_v5  ;;  %v86_v49 = vpack.c.bf16 %v75_v42, %v74_v41  ;;  %v42_v61 = vmul.f32 %v363_v7, %v24_v53  ;;  %v43_v62 = vmul.f32 %v363_v7, %v25_v54 }
   0xe   :  { %306 = vmatpush.bf16.msra.mxu2 %v296_v5  ;;  %307 = vmatpush.bf16.msra.mxu3 %v296_v5  ;;  %v88_v50 = vpack.c.bf16 %v79_v44, %v78_v43  ;;  %v46_v63 = vmul.f32 %v363_v7, %v28_v55  ;;  %v47_v0 = vmul.f32 %v363_v7, %v29_v56 }
   0xf   :  { %v52_v1 = vadd.f32 %v396_v18, %v34_v57  ;;  %v53_v2 = vadd.f32 %v396_v18, %v35_v58  ;;  %v56_v3 = vadd.f32 %v396_v18, %v38_v59  ;;  %v57_v4 = vadd.f32 %v396_v18, %v39_v60 }
  0x10   :  { %v60_v5 = vadd.f32 %v396_v18, %v42_v61  ;;  %v65_v9 = vadd.f32 %v396_v18, %v47_v0 }
  0x11   :  { %185 = vmatpush.bf16.msra.mxu0 %v295_v6  ;;  %308 = vmatpush.bf16.msra.mxu1 %v295_v6  ;;  %v68_v10 = vmax.f32 %v52_v1, 0.0  ;;  %v69_v11 = vmax.f32 %v53_v2, 0.0  ;;  %v72_v12 = vmax.f32 %v56_v3, 0.0  ;;  %v73_v7 = vmax.f32 %v57_v4, 0.0 }
  0x12   :  { %309 = vmatpush.bf16.msra.mxu2 %v295_v6  ;;  %310 = vmatpush.bf16.msra.mxu3 %v295_v6  ;;  %v61_v6 = vadd.f32 %v396_v18, %v43_v62  ;;  %v76_v13 = vmax.f32 %v60_v5, 0.0  ;;  %v81_v16 = vmax.f32 %v65_v9, 0.0 }
  0x13   :  { %v83_v17 = vpack.c.bf16 %v69_v11, %v68_v10  ;;  %v85_v19 = vpack.c.bf16 %v73_v7, %v72_v12 }
  0x14   :  { %v77_v14 = vmax.f32 %v61_v6, 0.0 }
  0x15   :  { %186 = vmatpush.bf16.msra.mxu0 %v294_v8  ;;  %311 = vmatpush.bf16.msra.mxu1 %v294_v8 }
  0x16   :  { %312 = vmatpush.bf16.msra.mxu2 %v294_v8  ;;  %313 = vmatpush.bf16.msra.mxu3 %v294_v8  ;;  %v64_v8 = vadd.f32 %v396_v18, %v46_v63  ;;  %v87_v20 = vpack.c.bf16 %v77_v14, %v76_v13 }
  0x18   :  { %v80_v15 = vmax.f32 %v64_v8, 0.0 }
  0x19   :  { %187 = vmatpush.bf16.msra.mxu0 %v293_v23  ;;  %314 = vmatpush.bf16.msra.mxu1 %v293_v23 }
  0x1a   :  { %315 = vmatpush.bf16.msra.mxu2 %v293_v23  ;;  %316 = vmatpush.bf16.msra.mxu3 %v293_v23  ;;  %v89_v21 = vpack.c.bf16 %v81_v16, %v80_v15 }
  0x1d   :  { %188 = vmatpush.bf16.msra.mxu0 %v292_v32  ;;  %317 = vmatpush.bf16.msra.mxu1 %v292_v32 }
  0x1e   :  { %318 = vmatpush.bf16.msra.mxu2 %v292_v32  ;;  %319 = vmatpush.bf16.msra.mxu3 %v292_v32 }
  0x21   :  { %189 = vmatpush.bf16.msra.mxu0 %v291_v40  ;;  %320 = vmatpush.bf16.msra.mxu1 %v291_v40 }
  0x22   :  { %321 = vmatpush.bf16.msra.mxu2 %v291_v40  ;;  %322 = vmatpush.bf16.msra.mxu3 %v291_v40 }
  0x24   :  { %283 = vmatmul.msk.bf16.vlgmr.msra.gmra.mxu0 %vm153_vm1, %v82_v45  ;;  %285 = vmatmul.msk.bf16.vlgmr.msra.gmra.mxu1 %vm153_vm1, %v84_v46 }
  0x25   :  { %287 = vmatmul.msk.bf16.vlgmr.msra.gmra.mxu2 %vm153_vm1, %v86_v49  ;;  %289 = vmatmul.msk.bf16.vlgmr.msra.gmra.mxu3 %vm153_vm1, %v88_v50 }
  0x34   :  { %284 = vmatmul.msk.bf16.gmra.mxu0 %vm153_vm1, %v83_v17  ;;  %286 = vmatmul.msk.bf16.gmra.mxu1 %vm153_vm1, %v85_v19 }
  0x35   :  { %288 = vmatmul.msk.bf16.gmra.mxu2 %vm153_vm1, %v87_v20  ;;  %290 = vmatmul.msk.bf16.gmra.mxu3 %vm153_vm1, %v89_v21 }
  0xa1   :  { %v191_v18 = vpop.f32.mrf.mxu0  ;;  %v201_v22 = vpop.f32.mrf.mxu1 }
  0xa2   :  { %231 = vst [vmem:[%s521_s3] sm:$0xff] %v191_v18 }
  0xa3   :  { %235 = vst [vmem:[%s521_s3 + $0x20] sm:$0xff] %v201_v22 }
  0xa8   :  { %v211_v23 = vpop.f32.mrf.mxu2  ;;  %v221_v24 = vpop.f32.mrf.mxu3 }
  0xa9   :  { %239 = vst [vmem:[%s521_s3 + $0x40] sm:$0xff] %v211_v23  ;;  %v193_v25 = vpop.f32.mrf.mxu0  ;;  %v203_v26 = vpop.f32.mrf.mxu1 }
  0xaa   :  { %243 = vst [vmem:[%s521_s3 + $0x60] sm:$0xff] %v221_v24 }
  0xab   :  { %232 = vst [vmem:[%s521_s3 + $0x8] sm:$0xff] %v193_v25 }
  0xac   :  { %236 = vst [vmem:[%s521_s3 + $0x28] sm:$0xff] %v203_v26 }
  0xb0   :  { %v213_v27 = vpop.f32.mrf.mxu2  ;;  %v223_v28 = vpop.f32.mrf.mxu3 }
  0xb1   :  { %240 = vst [vmem:[%s521_s3 + $0x48] sm:$0xff] %v213_v27  ;;  %v196_v29 = vpop.f32.mrf.mxu0  ;;  %v206_v30 = vpop.f32.mrf.mxu1 }
  0xb2   :  { %244 = vst [vmem:[%s521_s3 + $0x68] sm:$0xff] %v223_v28 }
  0xb3   :  { %233 = vst [vmem:[%s521_s3 + $0x10] sm:$0xff] %v196_v29 }
  0xb4   :  { %237 = vst [vmem:[%s521_s3 + $0x30] sm:$0xff] %v206_v30 }
  0xb8   :  { %v216_v31 = vpop.f32.mrf.mxu2  ;;  %v226_v32 = vpop.f32.mrf.mxu3 }
  0xb9   :  { %241 = vst [vmem:[%s521_s3 + $0x50] sm:$0xff] %v216_v31  ;;  %v198_v33 = vpop.f32.mrf.mxu0  ;;  %v208_v34 = vpop.f32.mrf.mxu1 }
  0xba   :  { %245 = vst [vmem:[%s521_s3 + $0x70] sm:$0xff] %v226_v32 }
  0xbb   :  { %234 = vst [vmem:[%s521_s3 + $0x18] sm:$0xff] %v198_v33 }
  0xbc   :  { %238 = vst [vmem:[%s521_s3 + $0x38] sm:$0xff] %v208_v34 }
  0xc0   :  { %v218_v35 = vpop.f32.mrf.mxu2  ;;  %v228_v36 = vpop.f32.mrf.mxu3 }
  0xc1   :  { %242 = vst [vmem:[%s521_s3 + $0x58] sm:$0xff] %v218_v35 }
  0xc2   :  { %246 = vst [vmem:[%s521_s3 + $0x78] sm:$0xff] %v228_v36 }

// kernel: _lambda_.25
= control target key start
LH: loop header
LB: loop body
LE: loop exit
PB: predicated region body
PF: predicated region fallthrough
CT: control target
= control target key end

     0   :  { %vm281_vm0 = vcmask 1040384   ;;  %vm256_vm1 = vcmask 277504   ;;  %s756_s2 = inlined_call_operand.vmem [shape: bf16[162,128], index: 2, kind: input, shape index: {}]   ;;  %s757_s0 = inlined_call_operand.vmem [shape: f32[128,162], index: 0, kind: input, shape index: {}]   ;;  %s758_s1 = inlined_call_operand.vmem [shape: f32[2,162], index: 1, kind: input, shape index: {}]   ;;  %s759_s3 = inlined_call_operand.vmem [shape: f32[128,128], index: 3, kind: output, shape index: {}]  }
   0x1   :  { %v459_v0 = vld [vmem:[%s756_s2 + $0x38] sm:$0xff]  ;;  %v192_v1 = vld [vmem:[%s756_s2 + $0x50] sm:$0x1]  ;;  %v16_v4 = vld [vmem:[%s757_s0 + $0x8] sm:$0xff] }
   0x2   :  { %v234_v2 = vunpack.c.l.b16 %v192_v1  ;;  %285 = vmatpush.bf16.msra.mxu0 %v459_v0  ;;  %462 = vmatpush.bf16.msra.mxu2 %v459_v0  ;;  %v458_v3 = vld [vmem:[%s756_s2 + $0x30] sm:$0xff]  ;;  %v18_v5 = vld [vmem:[%s757_s0 + $0x18] sm:$0xff]  ;;  %v47_v7 = vld [vmem:[%s758_s1] ss:$2 sm:$0x3] }
   0x3   :  { %v403_v8 = vld [vmem:[%s758_s1 + $0x1] ss:$2 sm:$0x3]  ;;  %v514_v9 = vperm.slane %v47_v7, 1  ;;  %v461_v12 = vld [vmem:[%s756_s2 + $0x48] sm:$0xff]  ;;  %v38_v19 = vld [vmem:[%s757_s0 + $0xb8] sm:$0xff] }
   0x4   :  { %v245_v6 = vpack.c.b16 %v234_v2, %v234_v2  ;;  %v516_v10 = vperm.slane %v403_v8, 1  ;;  %v457_v13 = vld [vmem:[%s756_s2 + $0x28] sm:$0xff]  ;;  %v460_v20 = vld [vmem:[%s756_s2 + $0x40] sm:$0xff]  ;;  %v455_v27 = vld [vmem:[%s756_s2 + $0x18] sm:$0xff]  ;;  %v548_v29 = vperm.slane %v47_v7, 0  ;;  %v567_v37 = vperm.slane %v403_v8, 0 }
   0x5   :  { %v54_v14 = vmul.f32 %v514_v9, %v16_v4  ;;  %v56_v15 = vmul.f32 %v514_v9, %v18_v5  ;;  %v36_v18 = vld [vmem:[%s757_s0 + $0xa8] sm:$0xff]  ;;  %v456_v21 = vld [vmem:[%s756_s2 + $0x20] sm:$0xff]  ;;  %v76_v25 = vmul.f32 %v514_v9, %v38_v19  ;;  %v22_v30 = vld [vmem:[%s757_s0 + $0x38] sm:$0xff] }
   0x6   :  { %v283_v11 = vsel %vm281_vm0, %v245_v6, 0  ;;  %286 = vmatpush.bf16.msra.mxu0 %v458_v3  ;;  %463 = vmatpush.bf16.msra.mxu2 %v458_v3  ;;  %v74_v24 = vmul.f32 %v514_v9, %v36_v18  ;;  %v20_v28 = vld [vmem:[%s757_s0 + $0x28] sm:$0xff]  ;;  %v15_v31 = vld [vmem:[%s757_s0] sm:$0xff]  ;;  %v17_v32 = vld [vmem:[%s757_s0 + $0x10] sm:$0xff]  ;;  %v60_v41 = vmul.f32 %v514_v9, %v22_v30 }
   0x7   :  { %339 = vmatpush.bf16.msra.mxu1 %v283_v11  ;;  %470 = vmatpush.bf16.msra.mxu3 %v283_v11  ;;  %v93_v16 = vadd.f32 %v516_v10, %v54_v14  ;;  %v95_v17 = vadd.f32 %v516_v10, %v56_v15  ;;  %v115_v34 = vadd.f32 %v516_v10, %v76_v25  ;;  %v31_v35 = vld [vmem:[%s757_s0 + $0x80] sm:$0xff]  ;;  %v33_v36 = vld [vmem:[%s757_s0 + $0x90] sm:$0xff]  ;;  %v40_v44 = vld [vmem:[%s757_s0 + $0xc8] sm:$0xff] }
   0x8   :  { %v113_v33 = vadd.f32 %v516_v10, %v74_v24  ;;  %v58_v40 = vmul.f32 %v514_v9, %v20_v28  ;;  %v53_v42 = vmul.f32 %v548_v29, %v15_v31  ;;  %v55_v43 = vmul.f32 %v548_v29, %v17_v32  ;;  %v42_v45 = vld [vmem:[%s757_s0 + $0xd8] sm:$0xff]  ;;  %v454_v46 = vld [vmem:[%s756_s2 + $0x10] sm:$0xff]  ;;  %v453_v56 = vld [vmem:[%s756_s2 + $0x8] sm:$0xff] }
   0x9   :  { %v125_v22 = vmax.f32 %v93_v16, 0.0  ;;  %v127_v23 = vmax.f32 %v95_v17, 0.0  ;;  %v147_v39 = vmax.f32 %v115_v34, 0.0  ;;  %v69_v47 = vmul.f32 %v548_v29, %v31_v35  ;;  %v452_v1 = vld [vmem:[%s756_s2] sm:$0xff]  ;;  %v24_v8 = vld [vmem:[%s757_s0 + $0x48] sm:$0xff]  ;;  %v26_v11 = vld [vmem:[%s757_s0 + $0x58] sm:$0xff] }
   0xa   :  { %287 = vmatpush.bf16.msra.mxu0 %v457_v13  ;;  %464 = vmatpush.bf16.msra.mxu2 %v457_v13  ;;  %v145_v38 = vmax.f32 %v113_v33, 0.0  ;;  %v71_v48 = vmul.f32 %v548_v29, %v33_v36  ;;  %v78_v50 = vmul.f32 %v514_v9, %v40_v44  ;;  %v80_v51 = vmul.f32 %v514_v9, %v42_v45  ;;  %v19_v13 = vld [vmem:[%s757_s0 + $0x20] sm:$0xff]  ;;  %v21_v14 = vld [vmem:[%s757_s0 + $0x30] sm:$0xff] }
   0xb   :  { %340 = vmatpush.bf16.msra.mxu1 %v461_v12  ;;  %471 = vmatpush.bf16.msra.mxu3 %v461_v12  ;;  %v157_v26 = vpack.c.bf16 %v127_v23, %v125_v22  ;;  %v97_v52 = vadd.f32 %v516_v10, %v58_v40  ;;  %v99_v53 = vadd.f32 %v516_v10, %v60_v41  ;;  %v35_v15 = vld [vmem:[%s757_s0 + $0xa0] sm:$0xff]  ;;  %v37_v16 = vld [vmem:[%s757_s0 + $0xb0] sm:$0xff]  ;;  %v44_v22 = vld [vmem:[%s757_s0 + $0xe8] sm:$0xff] }
   0xc   :  { %v167_v49 = vpack.c.bf16 %v147_v39, %v145_v38  ;;  %v92_v54 = vadd.f32 %v567_v37, %v53_v42  ;;  %v94_v55 = vadd.f32 %v567_v37, %v55_v43  ;;  %v108_v57 = vadd.f32 %v567_v37, %v69_v47  ;;  %v46_v23 = vld [vmem:[%s757_s0 + $0xf8] sm:$0xff] }
   0xd   :  { %v110_v58 = vadd.f32 %v567_v37, %v71_v48  ;;  %v117_v59 = vadd.f32 %v516_v10, %v78_v50  ;;  %v119_v60 = vadd.f32 %v516_v10, %v80_v51  ;;  %v129_v61 = vmax.f32 %v97_v52, 0.0 }
   0xe   :  { %288 = vmatpush.bf16.msra.mxu0 %v456_v21  ;;  %465 = vmatpush.bf16.msra.mxu2 %v456_v21  ;;  %v131_v62 = vmax.f32 %v99_v53, 0.0  ;;  %v124_v63 = vmax.f32 %v92_v54, 0.0  ;;  %v126_v0 = vmax.f32 %v94_v55, 0.0  ;;  %v140_v2 = vmax.f32 %v108_v57, 0.0  ;;  %v28_v57 = vld [vmem:[%s757_s0 + $0x68] sm:$0xff] }
   0xf   :  { %341 = vmatpush.bf16.msra.mxu1 %v460_v20  ;;  %472 = vmatpush.bf16.msra.mxu3 %v460_v20  ;;  %v142_v3 = vmax.f32 %v110_v58, 0.0  ;;  %v149_v4 = vmax.f32 %v117_v59, 0.0  ;;  %v151_v5 = vmax.f32 %v119_v60, 0.0  ;;  %v62_v17 = vmul.f32 %v514_v9, %v24_v8  ;;  %v30_v59 = vld [vmem:[%s757_s0 + $0x78] sm:$0xff]  ;;  %v23_v60 = vld [vmem:[%s757_s0 + $0x40] sm:$0xff] }
  0x10   :  { %v159_v6 = vpack.c.bf16 %v131_v62, %v129_v61  ;;  %v156_v7 = vpack.c.bf16 %v126_v0, %v124_v63  ;;  %v64_v18 = vmul.f32 %v514_v9, %v26_v11  ;;  %v57_v20 = vmul.f32 %v548_v29, %v19_v13  ;;  %v25_v61 = vld [vmem:[%s757_s0 + $0x50] sm:$0xff]  ;;  %v39_v62 = vld [vmem:[%s757_s0 + $0xc0] sm:$0xff] }
  0x11   :  { %v164_v12 = vpack.c.bf16 %v142_v3, %v140_v2  ;;  %v169_v19 = vpack.c.bf16 %v151_v5, %v149_v4  ;;  %v59_v21 = vmul.f32 %v548_v29, %v21_v14  ;;  %v73_v24 = vmul.f32 %v548_v29, %v35_v15  ;;  %v41_v63 = vld [vmem:[%s757_s0 + $0xd0] sm:$0xff] }
  0x12   :  { %444 = vmatmul.msk.bf16.vlgmr.msra.gmra.mxu1 %vm256_vm1, %v157_v26  ;;  %289 = vmatpush.bf16.msra.mxu0 %v455_v27  ;;  %v75_v25 = vmul.f32 %v548_v29, %v37_v16  ;;  %v32_v26 = vld [vmem:[%s757_s0 + $0x88] sm:$0xff]  ;;  %v101_v31 = vadd.f32 %v516_v10, %v62_v17  ;;  %v103_v32 = vadd.f32 %v516_v10, %v64_v18 }
  0x13   :  { %466 = vmatpush.bf16.msra.mxu2 %v455_v27  ;;  %449 = vmatmul.msk.bf16.vlgmr.msra.gmra.mxu3 %vm256_vm1, %v167_v49  ;;  %v34_v27 = vld [vmem:[%s757_s0 + $0x98] sm:$0xff]  ;;  %v70_v28 = vmul.f32 %v514_v9, %v32_v26  ;;  %v82_v33 = vmul.f32 %v514_v9, %v44_v22  ;;  %v84_v34 = vmul.f32 %v514_v9, %v46_v23  ;;  %v29_v23 = vld [vmem:[%s757_s0 + $0x70] sm:$0xff] }
  0x14   :  { %v72_v30 = vmul.f32 %v514_v9, %v34_v27  ;;  %v96_v35 = vadd.f32 %v567_v37, %v57_v20  ;;  %v98_v36 = vadd.f32 %v567_v37, %v59_v21  ;;  %v112_v40 = vadd.f32 %v567_v37, %v73_v24  ;;  %v43_v24 = vld [vmem:[%s757_s0 + $0xe0] sm:$0xff] }
  0x15   :  { %v109_v38 = vadd.f32 %v516_v10, %v70_v28  ;;  %v114_v41 = vadd.f32 %v567_v37, %v75_v25  ;;  %v133_v44 = vmax.f32 %v101_v31, 0.0  ;;  %v121_v45 = vadd.f32 %v516_v10, %v82_v33  ;;  %v45_v25 = vld [vmem:[%s757_s0 + $0xf0] sm:$0xff] }
  0x16   :  { %290 = vmatpush.bf16.msra.mxu0 %v454_v46  ;;  %v111_v39 = vadd.f32 %v516_v10, %v72_v30  ;;  %v135_v47 = vmax.f32 %v103_v32, 0.0  ;;  %v128_v48 = vmax.f32 %v96_v35, 0.0  ;;  %v130_v49 = vmax.f32 %v98_v36, 0.0 }
  0x17   :  { %467 = vmatpush.bf16.msra.mxu2 %v454_v46  ;;  %v141_v42 = vmax.f32 %v109_v38, 0.0  ;;  %v123_v46 = vadd.f32 %v516_v10, %v84_v34  ;;  %v144_v51 = vmax.f32 %v112_v40, 0.0  ;;  %v146_v52 = vmax.f32 %v114_v41, 0.0 }
  0x18   :  { %v143_v43 = vmax.f32 %v111_v39, 0.0  ;;  %v153_v53 = vmax.f32 %v121_v45, 0.0  ;;  %v161_v55 = vpack.c.bf16 %v135_v47, %v133_v44  ;;  %v66_v0 = vmul.f32 %v514_v9, %v28_v57 }
  0x19   :  { %v155_v54 = vmax.f32 %v123_v46, 0.0  ;;  %v166_v58 = vpack.c.bf16 %v146_v52, %v144_v51  ;;  %v68_v2 = vmul.f32 %v514_v9, %v30_v59  ;;  %v61_v3 = vmul.f32 %v548_v29, %v23_v60 }
  0x1a   :  { %291 = vmatpush.bf16.msra.mxu0 %v453_v56  ;;  %v165_v50 = vpack.c.bf16 %v143_v43, %v141_v42  ;;  %v63_v4 = vmul.f32 %v548_v29, %v25_v61  ;;  %v77_v5 = vmul.f32 %v548_v29, %v39_v62  ;;  %v67_v27 = vmul.f32 %v548_v29, %v29_v23 }
  0x1b   :  { %468 = vmatpush.bf16.msra.mxu2 %v453_v56  ;;  %v158_v56 = vpack.c.bf16 %v130_v49, %v128_v48  ;;  %v107_v8 = vadd.f32 %v516_v10, %v68_v2  ;;  %v100_v11 = vadd.f32 %v567_v37, %v61_v3  ;;  %v81_v28 = vmul.f32 %v548_v29, %v43_v24 }
  0x1c   :  { %v116_v9 = vadd.f32 %v567_v37, %v77_v5  ;;  %v83_v30 = vmul.f32 %v548_v29, %v45_v25  ;;  %v106_v32 = vadd.f32 %v567_v37, %v67_v27 }
  0x1d   :  { %v139_v15 = vmax.f32 %v107_v8, 0.0  ;;  %v132_v16 = vmax.f32 %v100_v11, 0.0  ;;  %v120_v33 = vadd.f32 %v567_v37, %v81_v28 }
  0x1e   :  { %292 = vmatpush.bf16.msra.mxu0 %v452_v1  ;;  %v148_v18 = vmax.f32 %v116_v9, 0.0  ;;  %v122_v34 = vadd.f32 %v567_v37, %v83_v30  ;;  %v138_v36 = vmax.f32 %v106_v32, 0.0 }
  0x1f   :  { %469 = vmatpush.bf16.msra.mxu2 %v452_v1  ;;  %v171_v1 = vpack.c.bf16 %v155_v54, %v153_v53  ;;  %v152_v38 = vmax.f32 %v120_v33, 0.0 }
  0x20   :  { %v154_v39 = vmax.f32 %v122_v34, 0.0 }
  0x21   :  { %293 = vmatmul.bf16.vlgmr.msra.gmra.mxu0 %v156_v7  ;;  %v105_v7 = vadd.f32 %v516_v10, %v66_v0  ;;  %v27_v10 = vld [vmem:[%s757_s0 + $0x60] sm:$0xff] }
  0x22   :  { %445 = vmatmul.msk.bf16.gmra.mxu1 %vm256_vm1, %v159_v6  ;;  %313 = vmatmul.bf16.vlgmr.msra.gmra.mxu2 %v164_v12  ;;  %v79_v6 = vmul.f32 %v548_v29, %v41_v63  ;;  %v102_v12 = vadd.f32 %v567_v37, %v63_v4  ;;  %v65_v26 = vmul.f32 %v548_v29, %v27_v10 }
  0x23   :  { %450 = vmatmul.msk.bf16.gmra.mxu3 %vm256_vm1, %v169_v19  ;;  %v137_v14 = vmax.f32 %v105_v7, 0.0  ;;  %v170_v41 = vpack.c.bf16 %v154_v39, %v152_v38 }
  0x24   :  { %v118_v13 = vadd.f32 %v567_v37, %v79_v6  ;;  %v134_v17 = vmax.f32 %v102_v12, 0.0  ;;  %v104_v31 = vadd.f32 %v567_v37, %v65_v26 }
  0x25   :  { %v163_v20 = vpack.c.bf16 %v139_v15, %v137_v14 }
  0x26   :  { %v150_v19 = vmax.f32 %v118_v13, 0.0  ;;  %v160_v21 = vpack.c.bf16 %v134_v17, %v132_v16  ;;  %v136_v35 = vmax.f32 %v104_v31, 0.0 }
  0x28   :  { %v168_v22 = vpack.c.bf16 %v150_v19, %v148_v18  ;;  %v162_v40 = vpack.c.bf16 %v138_v36, %v136_v35 }
  0x31   :  { %298 = vmatmul.bf16.gmra.mxu0 %v158_v56 }
  0x32   :  { %446 = vmatmul.msk.bf16.gmra.mxu1 %vm256_vm1, %v161_v55  ;;  %318 = vmatmul.bf16.gmra.mxu2 %v166_v58 }
  0x33   :  { %451 = vmatmul.msk.bf16.gmra.mxu3 %vm256_vm1, %v171_v1 }
  0x41   :  { %303 = vmatmul.bf16.gmra.mxu0 %v160_v21 }
  0x42   :  { %447 = vmatmul.msk.bf16.gmra.mxu1 %vm256_vm1, %v163_v20  ;;  %323 = vmatmul.bf16.gmra.mxu2 %v168_v22 }
  0x51   :  { %308 = vmatmul.bf16.gmra.mxu0 %v162_v40 }
  0x52   :  { %448 = vmatmul.msk.bf16.gmra.mxu1 %vm256_vm1, %v165_v50  ;;  %328 = vmatmul.bf16.gmra.mxu2 %v170_v41 }
  0x8f   :  { %v343_v42 = vpop.f32.mrf.mxu1 }
  0x96   :  { %v368_v49 = vpop.f32.mrf.mxu3 }
  0x97   :  { %v345_v29 = vpop.f32.mrf.mxu1 }
  0x9e   :  { %v294_v44 = vpop.f32.mrf.mxu0  ;;  %v370_v55 = vpop.f32.mrf.mxu3 }
  0x9f   :  { %v348_v43 = vpop.f32.mrf.mxu1  ;;  %v344_v45 = vadd.f32 %v343_v42, %v294_v44 }
  0xa1   :  { %383 = vst [vmem:[%s759_s3] sm:$0xff] %v344_v45 }
  0xa5   :  { %v314_v37 = vpop.f32.mrf.mxu2 }
  0xa6   :  { %v296_v47 = vpop.f32.mrf.mxu0  ;;  %v373_v0 = vpop.f32.mrf.mxu3 }
  0xa7   :  { %v350_v46 = vpop.f32.mrf.mxu1  ;;  %v346_v48 = vadd.f32 %v345_v29, %v296_v47 }
  0xa9   :  { %384 = vst [vmem:[%s759_s3 + $0x8] sm:$0xff] %v346_v48 }
  0xad   :  { %v316_v50 = vpop.f32.mrf.mxu2 }
  0xae   :  { %v299_v52 = vpop.f32.mrf.mxu0  ;;  %v375_v7 = vpop.f32.mrf.mxu3 }
  0xaf   :  { %v353_v51 = vpop.f32.mrf.mxu1  ;;  %v349_v53 = vadd.f32 %v348_v43, %v299_v52 }
  0xb1   :  { %385 = vst [vmem:[%s759_s3 + $0x10] sm:$0xff] %v349_v53 }
  0xb5   :  { %v319_v54 = vpop.f32.mrf.mxu2 }
  0xb6   :  { %v369_v56 = vadd.f32 %v368_v49, %v319_v54  ;;  %v301_v58 = vpop.f32.mrf.mxu0  ;;  %v378_v15 = vpop.f32.mrf.mxu3 }
  0xb7   :  { %v355_v57 = vpop.f32.mrf.mxu1  ;;  %v351_v59 = vadd.f32 %v350_v46, %v301_v58 }
  0xb8   :  { %393 = vst [vmem:[%s759_s3 + $0x50] sm:$0xff] %v369_v56 }
  0xb9   :  { %386 = vst [vmem:[%s759_s3 + $0x18] sm:$0xff] %v351_v59 }
  0xbd   :  { %v321_v60 = vpop.f32.mrf.mxu2 }
  0xbe   :  { %v371_v61 = vadd.f32 %v370_v55, %v321_v60  ;;  %v304_v63 = vpop.f32.mrf.mxu0  ;;  %v380_v22 = vpop.f32.mrf.mxu3 }
  0xbf   :  { %v358_v62 = vpop.f32.mrf.mxu1  ;;  %v354_v1 = vadd.f32 %v353_v51, %v304_v63 }
  0xc0   :  { %394 = vst [vmem:[%s759_s3 + $0x58] sm:$0xff] %v371_v61 }
  0xc1   :  { %387 = vst [vmem:[%s759_s3 + $0x20] sm:$0xff] %v354_v1 }
  0xc5   :  { %v324_v2 = vpop.f32.mrf.mxu2 }
  0xc6   :  { %v374_v3 = vadd.f32 %v373_v0, %v324_v2  ;;  %v306_v5 = vpop.f32.mrf.mxu0 }
  0xc7   :  { %v360_v4 = vpop.f32.mrf.mxu1  ;;  %v356_v6 = vadd.f32 %v355_v57, %v306_v5 }
  0xc8   :  { %395 = vst [vmem:[%s759_s3 + $0x60] sm:$0xff] %v374_v3 }
  0xc9   :  { %388 = vst [vmem:[%s759_s3 + $0x28] sm:$0xff] %v356_v6 }
  0xcd   :  { %v326_v8 = vpop.f32.mrf.mxu2 }
  0xce   :  { %v376_v11 = vadd.f32 %v375_v7, %v326_v8  ;;  %v309_v9 = vpop.f32.mrf.mxu0 }
  0xcf   :  { %v363_v12 = vpop.f32.mrf.mxu1  ;;  %v359_v14 = vadd.f32 %v358_v62, %v309_v9 }
  0xd0   :  { %v364_v13 = vadd.f32 %v363_v12, %v314_v37  ;;  %396 = vst [vmem:[%s759_s3 + $0x68] sm:$0xff] %v376_v11 }
  0xd1   :  { %389 = vst [vmem:[%s759_s3 + $0x30] sm:$0xff] %v359_v14 }
  0xd2   :  { %391 = vst [vmem:[%s759_s3 + $0x40] sm:$0xff] %v364_v13 }
  0xd5   :  { %v329_v16 = vpop.f32.mrf.mxu2 }
  0xd6   :  { %v379_v17 = vadd.f32 %v378_v15, %v329_v16  ;;  %v311_v19 = vpop.f32.mrf.mxu0 }
  0xd7   :  { %v365_v18 = vpop.f32.mrf.mxu1  ;;  %v361_v21 = vadd.f32 %v360_v4, %v311_v19 }
  0xd8   :  { %v366_v20 = vadd.f32 %v365_v18, %v316_v50  ;;  %397 = vst [vmem:[%s759_s3 + $0x70] sm:$0xff] %v379_v17 }
  0xd9   :  { %390 = vst [vmem:[%s759_s3 + $0x38] sm:$0xff] %v361_v21 }
  0xda   :  { %392 = vst [vmem:[%s759_s3 + $0x48] sm:$0xff] %v366_v20 }
  0xdd   :  { %v331_v10 = vpop.f32.mrf.mxu2 }
  0xde   :  { %v381_v23 = vadd.f32 %v380_v22, %v331_v10 }
  0xe0   :  { %398 = vst [vmem:[%s759_s3 + $0x78] sm:$0xff] %v381_v23 }

// kernel: _lambda_.26
= control target key start
LH: loop header
LB: loop body
LE: loop exit
PB: predicated region body
PF: predicated region fallthrough
CT: control target
= control target key end

     0   :  { %vm448_vm0 = vcmask 1040384   ;;  %v769_v2 = vmov 0   ;;  %vm351_vm1 = vcmask 662528   ;;  %s1362_s2 = inlined_call_operand.vmem [shape: bf16[81,128], index: 2, kind: input, shape index: {}]   ;;  %s1363_s1 = inlined_call_operand.vmem [shape: f32[2,81], index: 1, kind: input, shape index: {}]   ;;  %s1364_s0 = inlined_call_operand.vmem [shape: f32[512,81], index: 0, kind: input, shape index: {}]   ;;  %s1365_s3 = inlined_call_operand.vmem [shape: f32[512,128], index: 3, kind: output, shape index: {}]  }
   0x1   :  { %v317_v0 = vld [vmem:[%s1362_s2 + $0x28] sm:$0x1]  ;;  %v450_v3 = vsel %vm448_vm0, 65535, %v769_v2  ;;  %v747_v6 = vld [vmem:[%s1362_s2 + $0x20] sm:$0xff]  ;;  %v746_v8 = vld [vmem:[%s1362_s2 + $0x18] sm:$0xff] }
   0x2   :  { %v339_v1 = vunpack.c.l.b16 %v317_v0  ;;  %v799_v7 = vld [vmem:[%s1363_s1] ss:$0 sm:$0xff]  ;;  %v16_v10 = vld [vmem:[%s1364_s0 + $0x8] sm:$0xff]  ;;  %v832_v18 = vld [vmem:[%s1363_s1 + $0x1] ss:$0 sm:$0xff] }
   0x3   :  { %v15_v9 = vld [vmem:[%s1364_s0] sm:$0xff]  ;;  %v32_v12 = vld [vmem:[%s1364_s0 + $0x88] sm:$0xff]  ;;  %v82_v19 = vmul.f32 %v799_v7, %v16_v10  ;;  %v745_v23 = vld [vmem:[%s1362_s2 + $0x10] sm:$0xff] }
   0x4   :  { %v345_v4 = vpack.c.b16 %v339_v1, %v339_v1  ;;  %v31_v11 = vld [vmem:[%s1364_s0 + $0x80] sm:$0xff]  ;;  %v48_v14 = vld [vmem:[%s1364_s0 + $0x108] sm:$0xff]  ;;  %v81_v17 = vmul.f32 %v799_v7, %v15_v9  ;;  %v98_v21 = vmul.f32 %v799_v7, %v32_v12  ;;  %v17_v47 = vld [vmem:[%s1364_s0 + $0x10] sm:$0xff] }
   0x5   :  { %v47_v13 = vld [vmem:[%s1364_s0 + $0x100] sm:$0xff]  ;;  %v64_v16 = vld [vmem:[%s1364_s0 + $0x188] sm:$0xff]  ;;  %v97_v20 = vmul.f32 %v799_v7, %v31_v11  ;;  %v114_v24 = vmul.f32 %v799_v7, %v48_v14  ;;  %v148_v28 = vadd.f32 %v832_v18, %v82_v19  ;;  %v18_v48 = vld [vmem:[%s1364_s0 + $0x18] sm:$0xff]  ;;  %v83_v57 = vmul.f32 %v799_v7, %v17_v47 }
   0x6   :  { %v452_v5 = vand.u32 %v450_v3, %v345_v4  ;;  %v63_v15 = vld [vmem:[%s1364_s0 + $0x180] sm:$0xff]  ;;  %v113_v22 = vmul.f32 %v799_v7, %v47_v13  ;;  %v130_v26 = vmul.f32 %v799_v7, %v64_v16  ;;  %v147_v27 = vadd.f32 %v832_v18, %v81_v17  ;;  %v744_v32 = vld [vmem:[%s1362_s2 + $0x8] sm:$0xff]  ;;  %v33_v51 = vld [vmem:[%s1364_s0 + $0x90] sm:$0xff] }
   0x7   :  { %v129_v25 = vmul.f32 %v799_v7, %v63_v15  ;;  %v163_v29 = vadd.f32 %v832_v18, %v97_v20  ;;  %v164_v30 = vadd.f32 %v832_v18, %v98_v21  ;;  %v180_v33 = vadd.f32 %v832_v18, %v114_v24  ;;  %v743_v40 = vld [vmem:[%s1362_s2] sm:$0xff]  ;;  %v34_v52 = vld [vmem:[%s1364_s0 + $0x98] sm:$0xff]  ;;  %v49_v53 = vld [vmem:[%s1364_s0 + $0x110] sm:$0xff] }
   0x8   :  { %456 = vmatpush.bf16.msra.mxu0 %v452_v5  ;;  %748 = vmatpush.bf16.msra.mxu1 %v452_v5  ;;  %v179_v31 = vadd.f32 %v832_v18, %v113_v22  ;;  %v196_v35 = vadd.f32 %v832_v18, %v130_v26  ;;  %v211_v36 = vmax.f32 %v147_v27, 0.0  ;;  %v212_v37 = vmax.f32 %v148_v28, 0.0  ;;  %v50_v54 = vld [vmem:[%s1364_s0 + $0x118] sm:$0xff]  ;;  %v65_v55 = vld [vmem:[%s1364_s0 + $0x190] sm:$0xff]  ;;  %v19_v21 = vld [vmem:[%s1364_s0 + $0x20] sm:$0xff] }
   0x9   :  { %749 = vmatpush.bf16.msra.mxu2 %v452_v5  ;;  %750 = vmatpush.bf16.msra.mxu3 %v452_v5  ;;  %v195_v34 = vadd.f32 %v832_v18, %v129_v25  ;;  %v227_v38 = vmax.f32 %v163_v29, 0.0  ;;  %v228_v39 = vmax.f32 %v164_v30, 0.0  ;;  %v244_v42 = vmax.f32 %v180_v33, 0.0  ;;  %v66_v56 = vld [vmem:[%s1364_s0 + $0x198] sm:$0xff]  ;;  %v20_v22 = vld [vmem:[%s1364_s0 + $0x28] sm:$0xff]  ;;  %v35_v25 = vld [vmem:[%s1364_s0 + $0xa0] sm:$0xff] }
   0xa   :  { %v243_v41 = vmax.f32 %v179_v31, 0.0  ;;  %v260_v44 = vmax.f32 %v196_v35, 0.0  ;;  %v275_v45 = vpack.c.bf16 %v212_v37, %v211_v36  ;;  %v84_v58 = vmul.f32 %v799_v7, %v18_v48  ;;  %v36_v26 = vld [vmem:[%s1364_s0 + $0xa8] sm:$0xff]  ;;  %v51_v27 = vld [vmem:[%s1364_s0 + $0x120] sm:$0xff] }
   0xb   :  { %v259_v43 = vmax.f32 %v195_v34, 0.0  ;;  %v283_v46 = vpack.c.bf16 %v228_v39, %v227_v38  ;;  %v99_v59 = vmul.f32 %v799_v7, %v33_v51  ;;  %v100_v60 = vmul.f32 %v799_v7, %v34_v52  ;;  %v52_v28 = vld [vmem:[%s1364_s0 + $0x128] sm:$0xff]  ;;  %v67_v29 = vld [vmem:[%s1364_s0 + $0x1a0] sm:$0xff] }
   0xc   :  { %457 = vmatpush.bf16.msra.mxu0 %v747_v6  ;;  %751 = vmatpush.bf16.msra.mxu1 %v747_v6  ;;  %v291_v49 = vpack.c.bf16 %v244_v42, %v243_v41  ;;  %v115_v61 = vmul.f32 %v799_v7, %v49_v53  ;;  %v116_v62 = vmul.f32 %v799_v7, %v50_v54  ;;  %v68_v30 = vld [vmem:[%s1364_s0 + $0x1a8] sm:$0xff] }
   0xd   :  { %752 = vmatpush.bf16.msra.mxu2 %v747_v6  ;;  %753 = vmatpush.bf16.msra.mxu3 %v747_v6  ;;  %v299_v50 = vpack.c.bf16 %v260_v44, %v259_v43  ;;  %v131_v63 = vmul.f32 %v799_v7, %v65_v55  ;;  %v132_v0 = vmul.f32 %v799_v7, %v66_v56 }
   0xe   :  { %v149_v1 = vadd.f32 %v832_v18, %v83_v57  ;;  %v150_v2 = vadd.f32 %v832_v18, %v84_v58  ;;  %v165_v3 = vadd.f32 %v832_v18, %v99_v59  ;;  %v166_v4 = vadd.f32 %v832_v18, %v100_v60  ;;  %v21_v57 = vld [vmem:[%s1364_s0 + $0x30] sm:$0xff]  ;;  %v22_v58 = vld [vmem:[%s1364_s0 + $0x38] sm:$0xff] }
   0xf   :  { %v181_v5 = vadd.f32 %v832_v18, %v115_v61  ;;  %v182_v6 = vadd.f32 %v832_v18, %v116_v62  ;;  %v198_v9 = vadd.f32 %v832_v18, %v132_v0  ;;  %v85_v31 = vmul.f32 %v799_v7, %v19_v21  ;;  %v37_v61 = vld [vmem:[%s1364_s0 + $0xb0] sm:$0xff]  ;;  %v38_v62 = vld [vmem:[%s1364_s0 + $0xb8] sm:$0xff] }
  0x10   :  { %458 = vmatpush.bf16.msra.mxu0 %v746_v8  ;;  %754 = vmatpush.bf16.msra.mxu1 %v746_v8  ;;  %v213_v10 = vmax.f32 %v149_v1, 0.0  ;;  %v214_v11 = vmax.f32 %v150_v2, 0.0  ;;  %v229_v12 = vmax.f32 %v165_v3, 0.0  ;;  %v230_v13 = vmax.f32 %v166_v4, 0.0  ;;  %v54_v0 = vld [vmem:[%s1364_s0 + $0x138] sm:$0xff]  ;;  %v69_v1 = vld [vmem:[%s1364_s0 + $0x1b0] sm:$0xff] }
  0x11   :  { %755 = vmatpush.bf16.msra.mxu2 %v746_v8  ;;  %756 = vmatpush.bf16.msra.mxu3 %v746_v8  ;;  %v197_v8 = vadd.f32 %v832_v18, %v131_v63  ;;  %v245_v14 = vmax.f32 %v181_v5, 0.0  ;;  %v246_v15 = vmax.f32 %v182_v6, 0.0  ;;  %v262_v17 = vmax.f32 %v198_v9, 0.0  ;;  %v53_v63 = vld [vmem:[%s1364_s0 + $0x130] sm:$0xff]  ;;  %v70_v2 = vld [vmem:[%s1364_s0 + $0x1b8] sm:$0xff] }
  0x12   :  { %v276_v19 = vpack.c.bf16 %v214_v11, %v213_v10  ;;  %v284_v20 = vpack.c.bf16 %v230_v13, %v229_v12  ;;  %v101_v33 = vmul.f32 %v799_v7, %v35_v25  ;;  %v102_v34 = vmul.f32 %v799_v7, %v36_v26 }
  0x13   :  { %v261_v16 = vmax.f32 %v197_v8, 0.0  ;;  %v117_v35 = vmul.f32 %v799_v7, %v51_v27  ;;  %v118_v36 = vmul.f32 %v799_v7, %v52_v28  ;;  %v133_v37 = vmul.f32 %v799_v7, %v67_v29 }
  0x14   :  { %459 = vmatpush.bf16.msra.mxu0 %v745_v23  ;;  %757 = vmatpush.bf16.msra.mxu1 %v745_v23  ;;  %v134_v38 = vmul.f32 %v799_v7, %v68_v30  ;;  %v151_v39 = vadd.f32 %v832_v18, %v85_v31  ;;  %v167_v41 = vadd.f32 %v832_v18, %v101_v33  ;;  %v23_v31 = vld [vmem:[%s1364_s0 + $0x40] sm:$0xff] }
  0x15   :  { %758 = vmatpush.bf16.msra.mxu2 %v745_v23  ;;  %759 = vmatpush.bf16.msra.mxu3 %v745_v23  ;;  %v292_v23 = vpack.c.bf16 %v246_v15, %v245_v14  ;;  %v300_v24 = vpack.c.bf16 %v262_v17, %v261_v16  ;;  %v168_v42 = vadd.f32 %v832_v18, %v102_v34 }
  0x16   :  { %v183_v43 = vadd.f32 %v832_v18, %v117_v35  ;;  %v184_v44 = vadd.f32 %v832_v18, %v118_v36  ;;  %v215_v47 = vmax.f32 %v151_v39, 0.0  ;;  %v87_v3 = vmul.f32 %v799_v7, %v21_v57  ;;  %v39_v35 = vld [vmem:[%s1364_s0 + $0xc0] sm:$0xff]  ;;  %v40_v36 = vld [vmem:[%s1364_s0 + $0xc8] sm:$0xff] }
  0x17   :  { %v88_v4 = vmul.f32 %v799_v7, %v22_v58  ;;  %v103_v5 = vmul.f32 %v799_v7, %v37_v61  ;;  %v104_v6 = vmul.f32 %v799_v7, %v38_v62  ;;  %v119_v8 = vmul.f32 %v799_v7, %v53_v63  ;;  %v71_v39 = vld [vmem:[%s1364_s0 + $0x1c0] sm:$0xff] }
  0x18   :  { %460 = vmatpush.bf16.msra.mxu0 %v744_v32  ;;  %760 = vmatpush.bf16.msra.mxu1 %v744_v32  ;;  %v247_v51 = vmax.f32 %v183_v43, 0.0  ;;  %v248_v52 = vmax.f32 %v184_v44, 0.0  ;;  %v120_v9 = vmul.f32 %v799_v7, %v54_v0  ;;  %v135_v10 = vmul.f32 %v799_v7, %v69_v1 }
  0x19   :  { %761 = vmatpush.bf16.msra.mxu2 %v744_v32  ;;  %762 = vmatpush.bf16.msra.mxu3 %v744_v32  ;;  %v86_v32 = vmul.f32 %v799_v7, %v20_v22  ;;  %v136_v11 = vmul.f32 %v799_v7, %v70_v2  ;;  %v153_v12 = vadd.f32 %v832_v18, %v87_v3  ;;  %v25_v3 = vld [vmem:[%s1364_s0 + $0x50] sm:$0xff] }
  0x1a   :  { %v293_v59 = vpack.c.bf16 %v248_v52, %v247_v51  ;;  %v154_v13 = vadd.f32 %v832_v18, %v88_v4  ;;  %v169_v14 = vadd.f32 %v832_v18, %v103_v5  ;;  %v170_v15 = vadd.f32 %v832_v18, %v104_v6  ;;  %v26_v4 = vld [vmem:[%s1364_s0 + $0x58] sm:$0xff] }
  0x1b   :  { %v185_v16 = vadd.f32 %v832_v18, %v119_v8  ;;  %v186_v17 = vadd.f32 %v832_v18, %v120_v9  ;;  %v217_v21 = vmax.f32 %v153_v12, 0.0  ;;  %v105_v43 = vmul.f32 %v799_v7, %v39_v35  ;;  %v41_v8 = vld [vmem:[%s1364_s0 + $0xd0] sm:$0xff]  ;;  %v42_v9 = vld [vmem:[%s1364_s0 + $0xd8] sm:$0xff] }
  0x1c   :  { %461 = vmatpush.bf16.msra.mxu0 %v743_v40  ;;  %763 = vmatpush.bf16.msra.mxu1 %v743_v40  ;;  %v218_v22 = vmax.f32 %v154_v13, 0.0  ;;  %v106_v44 = vmul.f32 %v799_v7, %v40_v36  ;;  %v73_v12 = vld [vmem:[%s1364_s0 + $0x1d0] sm:$0xff]  ;;  %v74_v13 = vld [vmem:[%s1364_s0 + $0x1d8] sm:$0xff] }
  0x1d   :  { %764 = vmatpush.bf16.msra.mxu2 %v743_v40  ;;  %765 = vmatpush.bf16.msra.mxu3 %v743_v40  ;;  %v152_v40 = vadd.f32 %v832_v18, %v86_v32  ;;  %v249_v25 = vmax.f32 %v185_v16, 0.0  ;;  %v250_v26 = vmax.f32 %v186_v17, 0.0  ;;  %v24_v32 = vld [vmem:[%s1364_s0 + $0x48] sm:$0xff]  ;;  %v171_v51 = vadd.f32 %v832_v18, %v105_v43 }
  0x1e   :  { %v278_v29 = vpack.c.bf16 %v218_v22, %v217_v21  ;;  %v172_v52 = vadd.f32 %v832_v18, %v106_v44  ;;  %v107_v16 = vmul.f32 %v799_v7, %v41_v8  ;;  %v108_v17 = vmul.f32 %v799_v7, %v42_v9 }
  0x1f   :  { %711 = vmatmul.msk.bf16.vlgmr.msra.gmra.mxu0 %vm351_vm1, %v275_v45  ;;  %719 = vmatmul.msk.bf16.vlgmr.msra.gmra.mxu1 %vm351_vm1, %v283_v46  ;;  %v199_v45 = vadd.f32 %v832_v18, %v133_v37  ;;  %v200_v46 = vadd.f32 %v832_v18, %v134_v38  ;;  %v216_v48 = vmax.f32 %v152_v40, 0.0  ;;  %v294_v33 = vpack.c.bf16 %v250_v26, %v249_v25  ;;  %v55_v37 = vld [vmem:[%s1364_s0 + $0x140] sm:$0xff]  ;;  %v56_v38 = vld [vmem:[%s1364_s0 + $0x148] sm:$0xff] }
  0x20   :  { %727 = vmatmul.msk.bf16.vlgmr.msra.gmra.mxu2 %vm351_vm1, %v291_v49  ;;  %735 = vmatmul.msk.bf16.vlgmr.msra.gmra.mxu3 %vm351_vm1, %v299_v50  ;;  %v231_v49 = vmax.f32 %v167_v41, 0.0  ;;  %v232_v50 = vmax.f32 %v168_v42, 0.0  ;;  %v72_v40 = vld [vmem:[%s1364_s0 + $0x1c8] sm:$0xff]  ;;  %v89_v41 = vmul.f32 %v799_v7, %v23_v31  ;;  %v90_v42 = vmul.f32 %v799_v7, %v24_v32 }
  0x21   :  { %v263_v53 = vmax.f32 %v199_v45, 0.0  ;;  %v264_v54 = vmax.f32 %v200_v46, 0.0  ;;  %v277_v55 = vpack.c.bf16 %v216_v48, %v215_v47  ;;  %v121_v45 = vmul.f32 %v799_v7, %v55_v37 }
  0x22   :  { %v285_v56 = vpack.c.bf16 %v232_v50, %v231_v49  ;;  %v122_v46 = vmul.f32 %v799_v7, %v56_v38  ;;  %v137_v47 = vmul.f32 %v799_v7, %v71_v39  ;;  %v138_v48 = vmul.f32 %v799_v7, %v72_v40 }
  0x23   :  { %v301_v60 = vpack.c.bf16 %v264_v54, %v263_v53  ;;  %v155_v49 = vadd.f32 %v832_v18, %v89_v41  ;;  %v156_v50 = vadd.f32 %v832_v18, %v90_v42  ;;  %v187_v53 = vadd.f32 %v832_v18, %v121_v45  ;;  %v27_v41 = vld [vmem:[%s1364_s0 + $0x60] sm:$0xff]  ;;  %v28_v42 = vld [vmem:[%s1364_s0 + $0x68] sm:$0xff] }
  0x24   :  { %v188_v54 = vadd.f32 %v832_v18, %v122_v46  ;;  %v139_v21 = vmul.f32 %v799_v7, %v73_v12  ;;  %v140_v22 = vmul.f32 %v799_v7, %v74_v13  ;;  %v173_v25 = vadd.f32 %v832_v18, %v107_v16  ;;  %v43_v45 = vld [vmem:[%s1364_s0 + $0xe0] sm:$0xff]  ;;  %v44_v46 = vld [vmem:[%s1364_s0 + $0xe8] sm:$0xff] }
  0x25   :  { %v219_v57 = vmax.f32 %v155_v49, 0.0  ;;  %v220_v58 = vmax.f32 %v156_v50, 0.0  ;;  %v251_v61 = vmax.f32 %v187_v53, 0.0  ;;  %v174_v26 = vadd.f32 %v832_v18, %v108_v17  ;;  %v75_v49 = vld [vmem:[%s1364_s0 + $0x1e0] sm:$0xff]  ;;  %v76_v50 = vld [vmem:[%s1364_s0 + $0x1e8] sm:$0xff] }
  0x26   :  { %v252_v62 = vmax.f32 %v188_v54, 0.0  ;;  %v109_v53 = vmul.f32 %v799_v7, %v43_v45  ;;  %v110_v54 = vmul.f32 %v799_v7, %v44_v46 }
  0x27   :  { %v279_v1 = vpack.c.bf16 %v220_v58, %v219_v57  ;;  %v141_v57 = vmul.f32 %v799_v7, %v75_v49  ;;  %v142_v58 = vmul.f32 %v799_v7, %v76_v50 }
  0x28   :  { %v295_v5 = vpack.c.bf16 %v252_v62, %v251_v61  ;;  %v175_v61 = vadd.f32 %v832_v18, %v109_v53  ;;  %v176_v62 = vadd.f32 %v832_v18, %v110_v54 }
  0x2f   :  { %712 = vmatmul.msk.bf16.gmra.mxu0 %vm351_vm1, %v276_v19  ;;  %720 = vmatmul.msk.bf16.gmra.mxu1 %vm351_vm1, %v284_v20  ;;  %v201_v19 = vadd.f32 %v832_v18, %v135_v10  ;;  %v202_v20 = vadd.f32 %v832_v18, %v136_v11  ;;  %v57_v10 = vld [vmem:[%s1364_s0 + $0x150] sm:$0xff]  ;;  %v58_v11 = vld [vmem:[%s1364_s0 + $0x158] sm:$0xff] }
  0x30   :  { %728 = vmatmul.msk.bf16.gmra.mxu2 %vm351_vm1, %v292_v23  ;;  %736 = vmatmul.msk.bf16.gmra.mxu3 %vm351_vm1, %v300_v24  ;;  %v233_v23 = vmax.f32 %v169_v14, 0.0  ;;  %v234_v24 = vmax.f32 %v170_v15, 0.0  ;;  %v91_v14 = vmul.f32 %v799_v7, %v25_v3  ;;  %v92_v15 = vmul.f32 %v799_v7, %v26_v4 }
  0x31   :  { %v265_v27 = vmax.f32 %v201_v19, 0.0  ;;  %v266_v28 = vmax.f32 %v202_v20, 0.0  ;;  %v123_v19 = vmul.f32 %v799_v7, %v57_v10  ;;  %v124_v20 = vmul.f32 %v799_v7, %v58_v11 }
  0x32   :  { %v286_v30 = vpack.c.bf16 %v234_v24, %v233_v23  ;;  %v157_v23 = vadd.f32 %v832_v18, %v91_v14  ;;  %v158_v24 = vadd.f32 %v832_v18, %v92_v15  ;;  %v29_v14 = vld [vmem:[%s1364_s0 + $0x70] sm:$0xff]  ;;  %v30_v15 = vld [vmem:[%s1364_s0 + $0x78] sm:$0xff] }
  0x33   :  { %v302_v34 = vpack.c.bf16 %v266_v28, %v265_v27  ;;  %v189_v27 = vadd.f32 %v832_v18, %v123_v19  ;;  %v190_v28 = vadd.f32 %v832_v18, %v124_v20  ;;  %v45_v19 = vld [vmem:[%s1364_s0 + $0xf0] sm:$0xff]  ;;  %v46_v20 = vld [vmem:[%s1364_s0 + $0xf8] sm:$0xff] }
  0x34   :  { %v221_v31 = vmax.f32 %v157_v23, 0.0  ;;  %v222_v32 = vmax.f32 %v158_v24, 0.0  ;;  %v77_v23 = vld [vmem:[%s1364_s0 + $0x1f0] sm:$0xff]  ;;  %v78_v24 = vld [vmem:[%s1364_s0 + $0x1f8] sm:$0xff] }
  0x35   :  { %v253_v35 = vmax.f32 %v189_v27, 0.0  ;;  %v254_v36 = vmax.f32 %v190_v28, 0.0  ;;  %v111_v27 = vmul.f32 %v799_v7, %v45_v19  ;;  %v112_v28 = vmul.f32 %v799_v7, %v46_v20 }
  0x36   :  { %v280_v39 = vpack.c.bf16 %v222_v32, %v221_v31  ;;  %v143_v31 = vmul.f32 %v799_v7, %v77_v23  ;;  %v144_v32 = vmul.f32 %v799_v7, %v78_v24 }
  0x37   :  { %v296_v43 = vpack.c.bf16 %v254_v36, %v253_v35  ;;  %v177_v35 = vadd.f32 %v832_v18, %v111_v27  ;;  %v178_v36 = vadd.f32 %v832_v18, %v112_v28 }
  0x3f   :  { %713 = vmatmul.msk.bf16.gmra.mxu0 %vm351_vm1, %v277_v55  ;;  %721 = vmatmul.msk.bf16.gmra.mxu1 %vm351_vm1, %v285_v56  ;;  %v203_v55 = vadd.f32 %v832_v18, %v137_v47  ;;  %v204_v56 = vadd.f32 %v832_v18, %v138_v48  ;;  %v59_v47 = vld [vmem:[%s1364_s0 + $0x160] sm:$0xff]  ;;  %v60_v48 = vld [vmem:[%s1364_s0 + $0x168] sm:$0xff] }
  0x40   :  { %729 = vmatmul.msk.bf16.gmra.mxu2 %vm351_vm1, %v293_v59  ;;  %737 = vmatmul.msk.bf16.gmra.mxu3 %vm351_vm1, %v301_v60  ;;  %v235_v59 = vmax.f32 %v171_v51, 0.0  ;;  %v236_v60 = vmax.f32 %v172_v52, 0.0  ;;  %v93_v51 = vmul.f32 %v799_v7, %v27_v41  ;;  %v94_v52 = vmul.f32 %v799_v7, %v28_v42 }
  0x41   :  { %v267_v63 = vmax.f32 %v203_v55, 0.0  ;;  %v268_v0 = vmax.f32 %v204_v56, 0.0  ;;  %v125_v55 = vmul.f32 %v799_v7, %v59_v47  ;;  %v126_v56 = vmul.f32 %v799_v7, %v60_v48 }
  0x42   :  { %v287_v2 = vpack.c.bf16 %v236_v60, %v235_v59  ;;  %v159_v59 = vadd.f32 %v832_v18, %v93_v51  ;;  %v160_v60 = vadd.f32 %v832_v18, %v94_v52 }
  0x43   :  { %v303_v6 = vpack.c.bf16 %v268_v0, %v267_v63  ;;  %v191_v63 = vadd.f32 %v832_v18, %v125_v55  ;;  %v192_v0 = vadd.f32 %v832_v18, %v126_v56 }
  0x44   :  { %v223_v3 = vmax.f32 %v159_v59, 0.0  ;;  %v224_v4 = vmax.f32 %v160_v60, 0.0 }
  0x45   :  { %v255_v8 = vmax.f32 %v191_v63, 0.0  ;;  %v256_v9 = vmax.f32 %v192_v0, 0.0 }
  0x46   :  { %v281_v12 = vpack.c.bf16 %v224_v4, %v223_v3 }
  0x47   :  { %v297_v16 = vpack.c.bf16 %v256_v9, %v255_v8 }
  0x4f   :  { %714 = vmatmul.msk.bf16.gmra.mxu0 %vm351_vm1, %v278_v29  ;;  %722 = vmatmul.msk.bf16.gmra.mxu1 %vm351_vm1, %v286_v30  ;;  %v205_v29 = vadd.f32 %v832_v18, %v139_v21  ;;  %v206_v30 = vadd.f32 %v832_v18, %v140_v22  ;;  %v61_v21 = vld [vmem:[%s1364_s0 + $0x170] sm:$0xff]  ;;  %v62_v22 = vld [vmem:[%s1364_s0 + $0x178] sm:$0xff] }
  0x50   :  { %730 = vmatmul.msk.bf16.gmra.mxu2 %vm351_vm1, %v294_v33  ;;  %738 = vmatmul.msk.bf16.gmra.mxu3 %vm351_vm1, %v302_v34  ;;  %v237_v33 = vmax.f32 %v173_v25, 0.0  ;;  %v238_v34 = vmax.f32 %v174_v26, 0.0  ;;  %v95_v25 = vmul.f32 %v799_v7, %v29_v14  ;;  %v96_v26 = vmul.f32 %v799_v7, %v30_v15 }
  0x51   :  { %v269_v37 = vmax.f32 %v205_v29, 0.0  ;;  %v270_v38 = vmax.f32 %v206_v30, 0.0  ;;  %v127_v29 = vmul.f32 %v799_v7, %v61_v21  ;;  %v128_v30 = vmul.f32 %v799_v7, %v62_v22 }
  0x52   :  { %v288_v40 = vpack.c.bf16 %v238_v34, %v237_v33  ;;  %v161_v33 = vadd.f32 %v832_v18, %v95_v25  ;;  %v162_v34 = vadd.f32 %v832_v18, %v96_v26  ;;  %v242_v7 = vmax.f32 %v178_v36, 0.0 }
  0x53   :  { %v304_v44 = vpack.c.bf16 %v270_v38, %v269_v37  ;;  %v193_v37 = vadd.f32 %v832_v18, %v127_v29  ;;  %v194_v38 = vadd.f32 %v832_v18, %v128_v30 }
  0x54   :  { %v225_v41 = vmax.f32 %v161_v33, 0.0  ;;  %v226_v42 = vmax.f32 %v162_v34, 0.0 }
  0x55   :  { %v258_v45 = vmax.f32 %v194_v38, 0.0 }
  0x56   :  { %v282_v48 = vpack.c.bf16 %v226_v42, %v225_v41 }
  0x5f   :  { %715 = vmatmul.msk.bf16.gmra.mxu0 %vm351_vm1, %v279_v1  ;;  %723 = vmatmul.msk.bf16.gmra.mxu1 %vm351_vm1, %v287_v2  ;;  %v207_v1 = vadd.f32 %v832_v18, %v141_v57  ;;  %v208_v2 = vadd.f32 %v832_v18, %v142_v58 }
  0x60   :  { %731 = vmatmul.msk.bf16.gmra.mxu2 %vm351_vm1, %v295_v5  ;;  %739 = vmatmul.msk.bf16.gmra.mxu3 %vm351_vm1, %v303_v6  ;;  %v239_v5 = vmax.f32 %v175_v61, 0.0  ;;  %v240_v6 = vmax.f32 %v176_v62, 0.0 }
  0x61   :  { %v271_v10 = vmax.f32 %v207_v1, 0.0  ;;  %v272_v11 = vmax.f32 %v208_v2, 0.0 }
  0x62   :  { %v289_v13 = vpack.c.bf16 %v240_v6, %v239_v5 }
  0x63   :  { %v305_v17 = vpack.c.bf16 %v272_v11, %v271_v10 }
  0x6f   :  { %716 = vmatmul.msk.bf16.gmra.mxu0 %vm351_vm1, %v280_v39  ;;  %724 = vmatmul.msk.bf16.gmra.mxu1 %vm351_vm1, %v288_v40  ;;  %v209_v39 = vadd.f32 %v832_v18, %v143_v31  ;;  %v210_v40 = vadd.f32 %v832_v18, %v144_v32 }
  0x70   :  { %732 = vmatmul.msk.bf16.gmra.mxu2 %vm351_vm1, %v296_v43  ;;  %740 = vmatmul.msk.bf16.gmra.mxu3 %vm351_vm1, %v304_v44  ;;  %v241_v43 = vmax.f32 %v177_v35, 0.0  ;;  %v257_v44 = vmax.f32 %v193_v37, 0.0 }
  0x71   :  { %v273_v46 = vmax.f32 %v209_v39, 0.0  ;;  %v274_v47 = vmax.f32 %v210_v40, 0.0 }
  0x72   :  { %v290_v49 = vpack.c.bf16 %v242_v7, %v241_v43  ;;  %v298_v50 = vpack.c.bf16 %v258_v45, %v257_v44 }
  0x73   :  { %v306_v51 = vpack.c.bf16 %v274_v47, %v273_v46 }
  0x7f   :  { %717 = vmatmul.msk.bf16.gmra.mxu0 %vm351_vm1, %v281_v12  ;;  %725 = vmatmul.msk.bf16.gmra.mxu1 %vm351_vm1, %v289_v13 }
  0x80   :  { %733 = vmatmul.msk.bf16.gmra.mxu2 %vm351_vm1, %v297_v16  ;;  %741 = vmatmul.msk.bf16.gmra.mxu3 %vm351_vm1, %v305_v17 }
  0x8f   :  { %718 = vmatmul.msk.bf16.gmra.mxu0 %vm351_vm1, %v282_v48  ;;  %726 = vmatmul.msk.bf16.gmra.mxu1 %vm351_vm1, %v290_v49 }
  0x90   :  { %734 = vmatmul.msk.bf16.gmra.mxu2 %vm351_vm1, %v298_v50  ;;  %742 = vmatmul.msk.bf16.gmra.mxu3 %vm351_vm1, %v306_v51 }
  0x9c   :  { %v463_v18 = vpop.f32.mrf.mxu0  ;;  %v503_v52 = vpop.f32.mrf.mxu1 }
  0x9d   :  { %623 = vst [vmem:[%s1365_s3] sm:$0xff] %v463_v18 }
  0x9e   :  { %639 = vst [vmem:[%s1365_s3 + $0x80] sm:$0xff] %v503_v52 }
  0xa3   :  { %v543_v53 = vpop.f32.mrf.mxu2  ;;  %v583_v54 = vpop.f32.mrf.mxu3 }
  0xa4   :  { %655 = vst [vmem:[%s1365_s3 + $0x100] sm:$0xff] %v543_v53  ;;  %v465_v55 = vpop.f32.mrf.mxu0  ;;  %v505_v56 = vpop.f32.mrf.mxu1 }
  0xa5   :  { %671 = vst [vmem:[%s1365_s3 + $0x180] sm:$0xff] %v583_v54 }
  0xa6   :  { %624 = vst [vmem:[%s1365_s3 + $0x8] sm:$0xff] %v465_v55 }
  0xa7   :  { %640 = vst [vmem:[%s1365_s3 + $0x88] sm:$0xff] %v505_v56 }
  0xab   :  { %v545_v57 = vpop.f32.mrf.mxu2  ;;  %v585_v58 = vpop.f32.mrf.mxu3 }
  0xac   :  { %656 = vst [vmem:[%s1365_s3 + $0x108] sm:$0xff] %v545_v57  ;;  %v468_v59 = vpop.f32.mrf.mxu0  ;;  %v508_v60 = vpop.f32.mrf.mxu1 }
  0xad   :  { %672 = vst [vmem:[%s1365_s3 + $0x188] sm:$0xff] %v585_v58 }
  0xae   :  { %625 = vst [vmem:[%s1365_s3 + $0x10] sm:$0xff] %v468_v59 }
  0xaf   :  { %641 = vst [vmem:[%s1365_s3 + $0x90] sm:$0xff] %v508_v60 }
  0xb3   :  { %v548_v61 = vpop.f32.mrf.mxu2  ;;  %v588_v62 = vpop.f32.mrf.mxu3 }
  0xb4   :  { %657 = vst [vmem:[%s1365_s3 + $0x110] sm:$0xff] %v548_v61  ;;  %v470_v63 = vpop.f32.mrf.mxu0  ;;  %v510_v0 = vpop.f32.mrf.mxu1 }
  0xb5   :  { %673 = vst [vmem:[%s1365_s3 + $0x190] sm:$0xff] %v588_v62 }
  0xb6   :  { %626 = vst [vmem:[%s1365_s3 + $0x18] sm:$0xff] %v470_v63 }
  0xb7   :  { %642 = vst [vmem:[%s1365_s3 + $0x98] sm:$0xff] %v510_v0 }
  0xbb   :  { %v550_v1 = vpop.f32.mrf.mxu2  ;;  %v590_v2 = vpop.f32.mrf.mxu3 }
  0xbc   :  { %658 = vst [vmem:[%s1365_s3 + $0x118] sm:$0xff] %v550_v1  ;;  %v473_v3 = vpop.f32.mrf.mxu0  ;;  %v513_v4 = vpop.f32.mrf.mxu1 }
  0xbd   :  { %674 = vst [vmem:[%s1365_s3 + $0x198] sm:$0xff] %v590_v2 }
  0xbe   :  { %627 = vst [vmem:[%s1365_s3 + $0x20] sm:$0xff] %v473_v3 }
  0xbf   :  { %643 = vst [vmem:[%s1365_s3 + $0xa0] sm:$0xff] %v513_v4 }
  0xc3   :  { %v553_v5 = vpop.f32.mrf.mxu2  ;;  %v593_v6 = vpop.f32.mrf.mxu3 }
  0xc4   :  { %659 = vst [vmem:[%s1365_s3 + $0x120] sm:$0xff] %v553_v5  ;;  %v475_v8 = vpop.f32.mrf.mxu0  ;;  %v515_v9 = vpop.f32.mrf.mxu1 }
  0xc5   :  { %675 = vst [vmem:[%s1365_s3 + $0x1a0] sm:$0xff] %v593_v6 }
  0xc6   :  { %628 = vst [vmem:[%s1365_s3 + $0x28] sm:$0xff] %v475_v8 }
  0xc7   :  { %644 = vst [vmem:[%s1365_s3 + $0xa8] sm:$0xff] %v515_v9 }
  0xcb   :  { %v555_v10 = vpop.f32.mrf.mxu2  ;;  %v595_v11 = vpop.f32.mrf.mxu3 }
  0xcc   :  { %660 = vst [vmem:[%s1365_s3 + $0x128] sm:$0xff] %v555_v10  ;;  %v478_v12 = vpop.f32.mrf.mxu0  ;;  %v518_v13 = vpop.f32.mrf.mxu1 }
  0xcd   :  { %676 = vst [vmem:[%s1365_s3 + $0x1a8] sm:$0xff] %v595_v11 }
  0xce   :  { %629 = vst [vmem:[%s1365_s3 + $0x30] sm:$0xff] %v478_v12 }
  0xcf   :  { %645 = vst [vmem:[%s1365_s3 + $0xb0] sm:$0xff] %v518_v13 }
  0xd3   :  { %v558_v14 = vpop.f32.mrf.mxu2  ;;  %v598_v15 = vpop.f32.mrf.mxu3 }
  0xd4   :  { %661 = vst [vmem:[%s1365_s3 + $0x130] sm:$0xff] %v558_v14  ;;  %v480_v16 = vpop.f32.mrf.mxu0  ;;  %v520_v17 = vpop.f32.mrf.mxu1 }
  0xd5   :  { %677 = vst [vmem:[%s1365_s3 + $0x1b0] sm:$0xff] %v598_v15 }
  0xd6   :  { %630 = vst [vmem:[%s1365_s3 + $0x38] sm:$0xff] %v480_v16 }
  0xd7   :  { %646 = vst [vmem:[%s1365_s3 + $0xb8] sm:$0xff] %v520_v17 }
  0xdb   :  { %v560_v19 = vpop.f32.mrf.mxu2  ;;  %v600_v20 = vpop.f32.mrf.mxu3 }
  0xdc   :  { %662 = vst [vmem:[%s1365_s3 + $0x138] sm:$0xff] %v560_v19  ;;  %v483_v21 = vpop.f32.mrf.mxu0  ;;  %v523_v22 = vpop.f32.mrf.mxu1 }
  0xdd   :  { %678 = vst [vmem:[%s1365_s3 + $0x1b8] sm:$0xff] %v600_v20 }
  0xde   :  { %631 = vst [vmem:[%s1365_s3 + $0x40] sm:$0xff] %v483_v21 }
  0xdf   :  { %647 = vst [vmem:[%s1365_s3 + $0xc0] sm:$0xff] %v523_v22 }
  0xe3   :  { %v563_v23 = vpop.f32.mrf.mxu2  ;;  %v603_v24 = vpop.f32.mrf.mxu3 }
  0xe4   :  { %663 = vst [vmem:[%s1365_s3 + $0x140] sm:$0xff] %v563_v23  ;;  %v485_v25 = vpop.f32.mrf.mxu0  ;;  %v525_v26 = vpop.f32.mrf.mxu1 }
  0xe5   :  { %679 = vst [vmem:[%s1365_s3 + $0x1c0] sm:$0xff] %v603_v24 }
  0xe6   :  { %632 = vst [vmem:[%s1365_s3 + $0x48] sm:$0xff] %v485_v25 }
  0xe7   :  { %648 = vst [vmem:[%s1365_s3 + $0xc8] sm:$0xff] %v525_v26 }
  0xeb   :  { %v565_v27 = vpop.f32.mrf.mxu2  ;;  %v605_v28 = vpop.f32.mrf.mxu3 }
  0xec   :  { %664 = vst [vmem:[%s1365_s3 + $0x148] sm:$0xff] %v565_v27  ;;  %v488_v29 = vpop.f32.mrf.mxu0  ;;  %v528_v30 = vpop.f32.mrf.mxu1 }
  0xed   :  { %680 = vst [vmem:[%s1365_s3 + $0x1c8] sm:$0xff] %v605_v28 }
  0xee   :  { %633 = vst [vmem:[%s1365_s3 + $0x50] sm:$0xff] %v488_v29 }
  0xef   :  { %649 = vst [vmem:[%s1365_s3 + $0xd0] sm:$0xff] %v528_v30 }
  0xf3   :  { %v568_v31 = vpop.f32.mrf.mxu2  ;;  %v608_v32 = vpop.f32.mrf.mxu3 }
  0xf4   :  { %665 = vst [vmem:[%s1365_s3 + $0x150] sm:$0xff] %v568_v31  ;;  %v490_v33 = vpop.f32.mrf.mxu0  ;;  %v530_v34 = vpop.f32.mrf.mxu1 }
  0xf5   :  { %681 = vst [vmem:[%s1365_s3 + $0x1d0] sm:$0xff] %v608_v32 }
  0xf6   :  { %634 = vst [vmem:[%s1365_s3 + $0x58] sm:$0xff] %v490_v33 }
  0xf7   :  { %650 = vst [vmem:[%s1365_s3 + $0xd8] sm:$0xff] %v530_v34 }
  0xfb   :  { %v570_v35 = vpop.f32.mrf.mxu2  ;;  %v610_v36 = vpop.f32.mrf.mxu3 }
  0xfc   :  { %666 = vst [vmem:[%s1365_s3 + $0x158] sm:$0xff] %v570_v35  ;;  %v493_v37 = vpop.f32.mrf.mxu0  ;;  %v533_v38 = vpop.f32.mrf.mxu1 }
  0xfd   :  { %682 = vst [vmem:[%s1365_s3 + $0x1d8] sm:$0xff] %v610_v36 }
  0xfe   :  { %635 = vst [vmem:[%s1365_s3 + $0x60] sm:$0xff] %v493_v37 }
  0xff   :  { %651 = vst [vmem:[%s1365_s3 + $0xe0] sm:$0xff] %v533_v38 }
 0x103   :  { %v573_v39 = vpop.f32.mrf.mxu2  ;;  %v613_v40 = vpop.f32.mrf.mxu3 }
 0x104   :  { %667 = vst [vmem:[%s1365_s3 + $0x160] sm:$0xff] %v573_v39  ;;  %v495_v41 = vpop.f32.mrf.mxu0  ;;  %v535_v42 = vpop.f32.mrf.mxu1 }
 0x105   :  { %683 = vst [vmem:[%s1365_s3 + $0x1e0] sm:$0xff] %v613_v40 }
 0x106   :  { %636 = vst [vmem:[%s1365_s3 + $0x68] sm:$0xff] %v495_v41 }
 0x107   :  { %652 = vst [vmem:[%s1365_s3 + $0xe8] sm:$0xff] %v535_v42 }
 0x10b   :  { %v575_v43 = vpop.f32.mrf.mxu2  ;;  %v615_v7 = vpop.f32.mrf.mxu3 }
 0x10c   :  { %668 = vst [vmem:[%s1365_s3 + $0x168] sm:$0xff] %v575_v43  ;;  %v498_v44 = vpop.f32.mrf.mxu0  ;;  %v538_v45 = vpop.f32.mrf.mxu1 }
 0x10d   :  { %684 = vst [vmem:[%s1365_s3 + $0x1e8] sm:$0xff] %v615_v7 }
 0x10e   :  { %637 = vst [vmem:[%s1365_s3 + $0x70] sm:$0xff] %v498_v44 }
 0x10f   :  { %653 = vst [vmem:[%s1365_s3 + $0xf0] sm:$0xff] %v538_v45 }
 0x113   :  { %v578_v46 = vpop.f32.mrf.mxu2  ;;  %v618_v47 = vpop.f32.mrf.mxu3 }
 0x114   :  { %669 = vst [vmem:[%s1365_s3 + $0x170] sm:$0xff] %v578_v46  ;;  %v500_v48 = vpop.f32.mrf.mxu0  ;;  %v540_v49 = vpop.f32.mrf.mxu1 }
 0x115   :  { %685 = vst [vmem:[%s1365_s3 + $0x1f0] sm:$0xff] %v618_v47 }
 0x116   :  { %638 = vst [vmem:[%s1365_s3 + $0x78] sm:$0xff] %v500_v48 }
 0x117   :  { %654 = vst [vmem:[%s1365_s3 + $0xf8] sm:$0xff] %v540_v49 }
 0x11b   :  { %v580_v50 = vpop.f32.mrf.mxu2  ;;  %v620_v51 = vpop.f32.mrf.mxu3 }
 0x11c   :  { %670 = vst [vmem:[%s1365_s3 + $0x178] sm:$0xff] %v580_v50 }
 0x11d   :  { %686 = vst [vmem:[%s1365_s3 + $0x1f8] sm:$0xff] %v620_v51 }

// kernel: _lambda_.27
= control target key start
LH: loop header
LB: loop body
LE: loop exit
PB: predicated region body
PF: predicated region fallthrough
CT: control target
= control target key end

     0   :  { %vm380_vm0 = vcmask 523264   ;;  %s1496_s2 = inlined_call_operand.vmem [shape: bf16[64,128], index: 2, kind: input, shape index: {}]   ;;  %s1497_s0 = inlined_call_operand.vmem [shape: f32[578,64], index: 0, kind: input, shape index: {}]   ;;  %s1498_s1 = inlined_call_operand.vmem [shape: f32[2,64], index: 1, kind: input, shape index: {}]   ;;  %s1499_s3 = inlined_call_operand.vmem [shape: f32[578,128], index: 3, kind: output, shape index: {}]  }
   0x1   :  { %v818_v0 = vld [vmem:[%s1496_s2 + $0x18] sm:$0xff]  ;;  %v817_v1 = vld [vmem:[%s1496_s2 + $0x10] sm:$0xff]  ;;  %v51_v2 = vld [vmem:[%s1497_s0 + $0x120] sm:$0xff] }
   0x2   :  { %v52_v3 = vld [vmem:[%s1497_s0 + $0x128] sm:$0xff]  ;;  %820 = vmatpush.bf16.msra.mxu2 %v818_v0  ;;  %821 = vmatpush.bf16.msra.mxu3 %v818_v0  ;;  %v868_v4 = vld [vmem:[%s1498_s1] ss:$0 sm:$0xff]  ;;  %v873_v5 = vld [vmem:[%s1498_s1 + $0x1] ss:$0 sm:$0xff] }
   0x3   :  { %496 = vmatpush.bf16.msra.mxu0 %v818_v0  ;;  %819 = vmatpush.bf16.msra.mxu1 %v818_v0  ;;  %v71_v6 = vld [vmem:[%s1497_s0 + $0x1c0] sm:$0xff]  ;;  %v72_v7 = vld [vmem:[%s1497_s0 + $0x1c8] sm:$0xff]  ;;  %v126_v8 = vmul.f32 %v868_v4, %v51_v2  ;;  %v127_v9 = vmul.f32 %v868_v4, %v52_v3  ;;  %v33_v14 = vld [vmem:[%s1497_s0 + $0x90] sm:$0xff] }
   0x4   :  { %v146_v10 = vmul.f32 %v868_v4, %v71_v6  ;;  %v147_v11 = vmul.f32 %v868_v4, %v72_v7  ;;  %v15_v12 = vld [vmem:[%s1497_s0] sm:$0xff]  ;;  %v16_v13 = vld [vmem:[%s1497_s0 + $0x8] sm:$0xff]  ;;  %v34_v17 = vld [vmem:[%s1497_s0 + $0x98] sm:$0xff]  ;;  %v108_v18 = vmul.f32 %v868_v4, %v33_v14 }
   0x5   :  { %v90_v15 = vmul.f32 %v868_v4, %v15_v12  ;;  %v91_v16 = vmul.f32 %v868_v4, %v16_v13  ;;  %v816_v19 = vld [vmem:[%s1496_s2 + $0x8] sm:$0xff]  ;;  %v201_v20 = vadd.f32 %v873_v5, %v126_v8  ;;  %v202_v21 = vadd.f32 %v873_v5, %v127_v9  ;;  %v815_v32 = vld [vmem:[%s1496_s2] sm:$0xff]  ;;  %v53_v40 = vld [vmem:[%s1497_s0 + $0x130] sm:$0xff] }
   0x6   :  { %823 = vmatpush.bf16.msra.mxu2 %v817_v1  ;;  %824 = vmatpush.bf16.msra.mxu3 %v817_v1  ;;  %v221_v22 = vadd.f32 %v873_v5, %v146_v10  ;;  %v222_v23 = vadd.f32 %v873_v5, %v147_v11  ;;  %v109_v27 = vmul.f32 %v868_v4, %v34_v17  ;;  %v54_v41 = vld [vmem:[%s1497_s0 + $0x138] sm:$0xff]  ;;  %v73_v44 = vld [vmem:[%s1497_s0 + $0x1d0] sm:$0xff]  ;;  %v35_v48 = vld [vmem:[%s1497_s0 + $0xa0] sm:$0xff] }
   0x7   :  { %497 = vmatpush.bf16.msra.mxu0 %v817_v1  ;;  %822 = vmatpush.bf16.msra.mxu1 %v817_v1  ;;  %v165_v24 = vadd.f32 %v873_v5, %v90_v15  ;;  %v166_v25 = vadd.f32 %v873_v5, %v91_v16  ;;  %v274_v26 = vmax.f32 %v201_v20, 0.0  ;;  %v275_v28 = vmax.f32 %v202_v21, 0.0  ;;  %v74_v45 = vld [vmem:[%s1497_s0 + $0x1d8] sm:$0xff]  ;;  %v17_v46 = vld [vmem:[%s1497_s0 + $0x10] sm:$0xff]  ;;  %v36_v49 = vld [vmem:[%s1497_s0 + $0xa8] sm:$0xff] }
   0x8   :  { %v294_v29 = vmax.f32 %v221_v22, 0.0  ;;  %v295_v30 = vmax.f32 %v222_v23, 0.0  ;;  %v183_v31 = vadd.f32 %v873_v5, %v108_v18  ;;  %v184_v35 = vadd.f32 %v873_v5, %v109_v27  ;;  %v18_v47 = vld [vmem:[%s1497_s0 + $0x18] sm:$0xff]  ;;  %v55_v14 = vld [vmem:[%s1497_s0 + $0x140] sm:$0xff]  ;;  %v56_v15 = vld [vmem:[%s1497_s0 + $0x148] sm:$0xff] }
   0x9   :  { %v238_v33 = vmax.f32 %v165_v24, 0.0  ;;  %v239_v34 = vmax.f32 %v166_v25, 0.0  ;;  %v329_v38 = vpack.c.bf16 %v275_v28, %v274_v26  ;;  %v128_v50 = vmul.f32 %v868_v4, %v53_v40  ;;  %v75_v18 = vld [vmem:[%s1497_s0 + $0x1e0] sm:$0xff]  ;;  %v20_v21 = vld [vmem:[%s1497_s0 + $0x28] sm:$0xff]  ;;  %v37_v22 = vld [vmem:[%s1497_s0 + $0xb0] sm:$0xff] }
   0xa   :  { %826 = vmatpush.bf16.msra.mxu2 %v816_v19  ;;  %827 = vmatpush.bf16.msra.mxu3 %v816_v19  ;;  %v256_v36 = vmax.f32 %v183_v31, 0.0  ;;  %v257_v37 = vmax.f32 %v184_v35, 0.0  ;;  %v339_v39 = vpack.c.bf16 %v295_v30, %v294_v29  ;;  %v129_v51 = vmul.f32 %v868_v4, %v54_v41  ;;  %v19_v20 = vld [vmem:[%s1497_s0 + $0x20] sm:$0xff]  ;;  %v38_v23 = vld [vmem:[%s1497_s0 + $0xb8] sm:$0xff] }
   0xb   :  { %498 = vmatpush.bf16.msra.mxu0 %v816_v19  ;;  %825 = vmatpush.bf16.msra.mxu1 %v816_v19  ;;  %v311_v42 = vpack.c.bf16 %v239_v34, %v238_v33  ;;  %v148_v52 = vmul.f32 %v868_v4, %v73_v44  ;;  %v149_v53 = vmul.f32 %v868_v4, %v74_v45  ;;  %v76_v19 = vld [vmem:[%s1497_s0 + $0x1e8] sm:$0xff] }
   0xc   :  { %v320_v43 = vpack.c.bf16 %v257_v37, %v256_v36  ;;  %v92_v54 = vmul.f32 %v868_v4, %v17_v46  ;;  %v93_v55 = vmul.f32 %v868_v4, %v18_v47  ;;  %v110_v56 = vmul.f32 %v868_v4, %v35_v48 }
   0xd   :  { %v111_v57 = vmul.f32 %v868_v4, %v36_v49  ;;  %v203_v58 = vadd.f32 %v873_v5, %v128_v50  ;;  %v204_v59 = vadd.f32 %v873_v5, %v129_v51  ;;  %v223_v60 = vadd.f32 %v873_v5, %v148_v52  ;;  %v57_v50 = vld [vmem:[%s1497_s0 + $0x150] sm:$0xff]  ;;  %v58_v51 = vld [vmem:[%s1497_s0 + $0x158] sm:$0xff] }
   0xe   :  { %829 = vmatpush.bf16.msra.mxu2 %v815_v32  ;;  %830 = vmatpush.bf16.msra.mxu3 %v815_v32  ;;  %v224_v61 = vadd.f32 %v873_v5, %v149_v53  ;;  %v167_v62 = vadd.f32 %v873_v5, %v92_v54  ;;  %v168_v63 = vadd.f32 %v873_v5, %v93_v55  ;;  %v77_v54 = vld [vmem:[%s1497_s0 + $0x1f0] sm:$0xff]  ;;  %v78_v55 = vld [vmem:[%s1497_s0 + $0x1f8] sm:$0xff] }
   0xf   :  { %499 = vmatpush.bf16.msra.mxu0 %v815_v32  ;;  %828 = vmatpush.bf16.msra.mxu1 %v815_v32  ;;  %v185_v0 = vadd.f32 %v873_v5, %v110_v56  ;;  %v186_v1 = vadd.f32 %v873_v5, %v111_v57  ;;  %v276_v2 = vmax.f32 %v203_v58, 0.0  ;;  %v277_v3 = vmax.f32 %v204_v59, 0.0  ;;  %v21_v56 = vld [vmem:[%s1497_s0 + $0x30] sm:$0xff]  ;;  %v22_v57 = vld [vmem:[%s1497_s0 + $0x38] sm:$0xff]  ;;  %v39_v58 = vld [vmem:[%s1497_s0 + $0xc0] sm:$0xff] }
  0x10   :  { %v296_v6 = vmax.f32 %v223_v60, 0.0  ;;  %v297_v7 = vmax.f32 %v224_v61, 0.0  ;;  %v240_v8 = vmax.f32 %v167_v62, 0.0  ;;  %v241_v9 = vmax.f32 %v168_v63, 0.0  ;;  %v40_v59 = vld [vmem:[%s1497_s0 + $0xc8] sm:$0xff] }
  0x11   :  { %796 = vmatmul.msk.bf16.vlgmr.msra.gmra.mxu2 %vm380_vm0, %v329_v38  ;;  %806 = vmatmul.msk.bf16.vlgmr.msra.gmra.mxu3 %vm380_vm0, %v339_v39  ;;  %v258_v10 = vmax.f32 %v185_v0, 0.0  ;;  %v259_v11 = vmax.f32 %v186_v1, 0.0  ;;  %v330_v12 = vpack.c.bf16 %v277_v3, %v276_v2  ;;  %v130_v24 = vmul.f32 %v868_v4, %v55_v14 }
  0x12   :  { %778 = vmatmul.msk.bf16.vlgmr.msra.gmra.mxu0 %vm380_vm0, %v311_v42  ;;  %787 = vmatmul.msk.bf16.vlgmr.msra.gmra.mxu1 %vm380_vm0, %v320_v43  ;;  %v340_v13 = vpack.c.bf16 %v297_v7, %v296_v6  ;;  %v312_v16 = vpack.c.bf16 %v241_v9, %v240_v8  ;;  %v131_v25 = vmul.f32 %v868_v4, %v56_v15 }
  0x13   :  { %v321_v17 = vpack.c.bf16 %v259_v11, %v258_v10  ;;  %v150_v26 = vmul.f32 %v868_v4, %v75_v18  ;;  %v151_v27 = vmul.f32 %v868_v4, %v76_v19  ;;  %v94_v28 = vmul.f32 %v868_v4, %v19_v20 }
  0x14   :  { %v95_v29 = vmul.f32 %v868_v4, %v20_v21  ;;  %v112_v30 = vmul.f32 %v868_v4, %v37_v22  ;;  %v113_v31 = vmul.f32 %v868_v4, %v38_v23  ;;  %v205_v32 = vadd.f32 %v873_v5, %v130_v24  ;;  %v59_v24 = vld [vmem:[%s1497_s0 + $0x160] sm:$0xff] }
  0x15   :  { %v206_v33 = vadd.f32 %v873_v5, %v131_v25  ;;  %v225_v34 = vadd.f32 %v873_v5, %v150_v26  ;;  %v226_v35 = vadd.f32 %v873_v5, %v151_v27  ;;  %v169_v36 = vadd.f32 %v873_v5, %v94_v28  ;;  %v60_v25 = vld [vmem:[%s1497_s0 + $0x168] sm:$0xff]  ;;  %v79_v28 = vld [vmem:[%s1497_s0 + $0x200] sm:$0xff] }
  0x16   :  { %v170_v37 = vadd.f32 %v873_v5, %v95_v29  ;;  %v187_v38 = vadd.f32 %v873_v5, %v112_v30  ;;  %v188_v39 = vadd.f32 %v873_v5, %v113_v31  ;;  %v278_v40 = vmax.f32 %v205_v32, 0.0  ;;  %v80_v29 = vld [vmem:[%s1497_s0 + $0x208] sm:$0xff]  ;;  %v23_v30 = vld [vmem:[%s1497_s0 + $0x40] sm:$0xff]  ;;  %v41_v32 = vld [vmem:[%s1497_s0 + $0xd0] sm:$0xff] }
  0x17   :  { %v279_v41 = vmax.f32 %v206_v33, 0.0  ;;  %v298_v42 = vmax.f32 %v225_v34, 0.0  ;;  %v299_v43 = vmax.f32 %v226_v35, 0.0  ;;  %v242_v44 = vmax.f32 %v169_v36, 0.0  ;;  %v24_v31 = vld [vmem:[%s1497_s0 + $0x48] sm:$0xff]  ;;  %v42_v33 = vld [vmem:[%s1497_s0 + $0xd8] sm:$0xff] }
  0x18   :  { %v243_v45 = vmax.f32 %v170_v37, 0.0  ;;  %v260_v46 = vmax.f32 %v187_v38, 0.0  ;;  %v261_v47 = vmax.f32 %v188_v39, 0.0  ;;  %v132_v60 = vmul.f32 %v868_v4, %v57_v50 }
  0x19   :  { %v331_v48 = vpack.c.bf16 %v279_v41, %v278_v40  ;;  %v341_v49 = vpack.c.bf16 %v299_v43, %v298_v42  ;;  %v133_v61 = vmul.f32 %v868_v4, %v58_v51  ;;  %v152_v62 = vmul.f32 %v868_v4, %v77_v54 }
  0x1a   :  { %v313_v52 = vpack.c.bf16 %v243_v45, %v242_v44  ;;  %v322_v53 = vpack.c.bf16 %v261_v47, %v260_v46  ;;  %v153_v63 = vmul.f32 %v868_v4, %v78_v55  ;;  %v96_v0 = vmul.f32 %v868_v4, %v21_v56 }
  0x1b   :  { %v97_v1 = vmul.f32 %v868_v4, %v22_v57  ;;  %v114_v2 = vmul.f32 %v868_v4, %v39_v58  ;;  %v115_v3 = vmul.f32 %v868_v4, %v40_v59  ;;  %v207_v6 = vadd.f32 %v873_v5, %v132_v60  ;;  %v61_v60 = vld [vmem:[%s1497_s0 + $0x170] sm:$0xff] }
  0x1c   :  { %v208_v7 = vadd.f32 %v873_v5, %v133_v61  ;;  %v227_v8 = vadd.f32 %v873_v5, %v152_v62  ;;  %v228_v9 = vadd.f32 %v873_v5, %v153_v63  ;;  %v171_v10 = vadd.f32 %v873_v5, %v96_v0  ;;  %v62_v61 = vld [vmem:[%s1497_s0 + $0x178] sm:$0xff]  ;;  %v81_v0 = vld [vmem:[%s1497_s0 + $0x210] sm:$0xff] }
  0x1d   :  { %v172_v11 = vadd.f32 %v873_v5, %v97_v1  ;;  %v280_v14 = vmax.f32 %v207_v6, 0.0  ;;  %v134_v34 = vmul.f32 %v868_v4, %v59_v24  ;;  %v135_v35 = vmul.f32 %v868_v4, %v60_v25  ;;  %v82_v1 = vld [vmem:[%s1497_s0 + $0x218] sm:$0xff]  ;;  %v43_v6 = vld [vmem:[%s1497_s0 + $0xe0] sm:$0xff] }
  0x1e   :  { %v281_v15 = vmax.f32 %v208_v7, 0.0  ;;  %v244_v18 = vmax.f32 %v171_v10, 0.0  ;;  %v154_v36 = vmul.f32 %v868_v4, %v79_v28  ;;  %v155_v37 = vmul.f32 %v868_v4, %v80_v29  ;;  %v44_v7 = vld [vmem:[%s1497_s0 + $0xe8] sm:$0xff] }
  0x1f   :  { %v245_v19 = vmax.f32 %v172_v11, 0.0  ;;  %v98_v38 = vmul.f32 %v868_v4, %v23_v30  ;;  %v99_v39 = vmul.f32 %v868_v4, %v24_v31  ;;  %v116_v40 = vmul.f32 %v868_v4, %v41_v32 }
  0x20   :  { %v332_v22 = vpack.c.bf16 %v281_v15, %v280_v14  ;;  %v117_v41 = vmul.f32 %v868_v4, %v42_v33  ;;  %v209_v42 = vadd.f32 %v873_v5, %v134_v34  ;;  %v210_v43 = vadd.f32 %v873_v5, %v135_v35  ;;  %v63_v34 = vld [vmem:[%s1497_s0 + $0x180] sm:$0xff]  ;;  %v64_v35 = vld [vmem:[%s1497_s0 + $0x188] sm:$0xff] }
  0x21   :  { %797 = vmatmul.msk.bf16.gmra.mxu2 %vm380_vm0, %v330_v12  ;;  %807 = vmatmul.msk.bf16.gmra.mxu3 %vm380_vm0, %v340_v13  ;;  %v189_v12 = vadd.f32 %v873_v5, %v114_v2  ;;  %v190_v13 = vadd.f32 %v873_v5, %v115_v3  ;;  %v314_v26 = vpack.c.bf16 %v245_v19, %v244_v18  ;;  %v25_v2 = vld [vmem:[%s1497_s0 + $0x50] sm:$0xff]  ;;  %v26_v3 = vld [vmem:[%s1497_s0 + $0x58] sm:$0xff] }
  0x22   :  { %779 = vmatmul.msk.bf16.gmra.mxu0 %vm380_vm0, %v312_v16  ;;  %788 = vmatmul.msk.bf16.gmra.mxu1 %vm380_vm0, %v321_v17  ;;  %v300_v16 = vmax.f32 %v227_v8, 0.0  ;;  %v301_v17 = vmax.f32 %v228_v9, 0.0  ;;  %v229_v44 = vadd.f32 %v873_v5, %v154_v36  ;;  %v230_v45 = vadd.f32 %v873_v5, %v155_v37 }
  0x23   :  { %v262_v20 = vmax.f32 %v189_v12, 0.0  ;;  %v263_v21 = vmax.f32 %v190_v13, 0.0  ;;  %v173_v46 = vadd.f32 %v873_v5, %v98_v38  ;;  %v174_v47 = vadd.f32 %v873_v5, %v99_v39  ;;  %v83_v38 = vld [vmem:[%s1497_s0 + $0x220] sm:$0xff]  ;;  %v84_v39 = vld [vmem:[%s1497_s0 + $0x228] sm:$0xff] }
  0x24   :  { %v342_v23 = vpack.c.bf16 %v301_v17, %v300_v16  ;;  %v282_v50 = vmax.f32 %v209_v42, 0.0  ;;  %v283_v51 = vmax.f32 %v210_v43, 0.0  ;;  %v136_v8 = vmul.f32 %v868_v4, %v61_v60  ;;  %v45_v42 = vld [vmem:[%s1497_s0 + $0xf0] sm:$0xff]  ;;  %v46_v43 = vld [vmem:[%s1497_s0 + $0xf8] sm:$0xff] }
  0x25   :  { %v323_v27 = vpack.c.bf16 %v263_v21, %v262_v20  ;;  %v246_v54 = vmax.f32 %v173_v46, 0.0  ;;  %v247_v55 = vmax.f32 %v174_v47, 0.0  ;;  %v137_v9 = vmul.f32 %v868_v4, %v62_v61 }
  0x26   :  { %v333_v58 = vpack.c.bf16 %v283_v51, %v282_v50  ;;  %v156_v10 = vmul.f32 %v868_v4, %v81_v0  ;;  %v157_v11 = vmul.f32 %v868_v4, %v82_v1  ;;  %v100_v12 = vmul.f32 %v868_v4, %v25_v2 }
  0x27   :  { %v315_v62 = vpack.c.bf16 %v247_v55, %v246_v54  ;;  %v101_v13 = vmul.f32 %v868_v4, %v26_v3  ;;  %v118_v14 = vmul.f32 %v868_v4, %v43_v6  ;;  %v119_v15 = vmul.f32 %v868_v4, %v44_v7 }
  0x28   :  { %v211_v16 = vadd.f32 %v873_v5, %v136_v8  ;;  %v212_v17 = vadd.f32 %v873_v5, %v137_v9  ;;  %v231_v18 = vadd.f32 %v873_v5, %v156_v10  ;;  %v232_v19 = vadd.f32 %v873_v5, %v157_v11  ;;  %v65_v8 = vld [vmem:[%s1497_s0 + $0x190] sm:$0xff]  ;;  %v66_v9 = vld [vmem:[%s1497_s0 + $0x198] sm:$0xff] }
  0x29   :  { %v175_v20 = vadd.f32 %v873_v5, %v100_v12  ;;  %v176_v21 = vadd.f32 %v873_v5, %v101_v13  ;;  %v158_v46 = vmul.f32 %v868_v4, %v83_v38  ;;  %v159_v47 = vmul.f32 %v868_v4, %v84_v39  ;;  %v85_v12 = vld [vmem:[%s1497_s0 + $0x230] sm:$0xff]  ;;  %v86_v13 = vld [vmem:[%s1497_s0 + $0x238] sm:$0xff] }
  0x2a   :  { %v284_v24 = vmax.f32 %v211_v16, 0.0  ;;  %v285_v25 = vmax.f32 %v212_v17, 0.0  ;;  %v120_v50 = vmul.f32 %v868_v4, %v45_v42  ;;  %v121_v51 = vmul.f32 %v868_v4, %v46_v43  ;;  %v47_v16 = vld [vmem:[%s1497_s0 + $0x100] sm:$0xff]  ;;  %v48_v17 = vld [vmem:[%s1497_s0 + $0x108] sm:$0xff] }
  0x2b   :  { %v248_v28 = vmax.f32 %v175_v20, 0.0  ;;  %v249_v29 = vmax.f32 %v176_v21, 0.0  ;;  %v233_v54 = vadd.f32 %v873_v5, %v158_v46  ;;  %v234_v55 = vadd.f32 %v873_v5, %v159_v47  ;;  %v68_v47 = vld [vmem:[%s1497_s0 + $0x1a8] sm:$0xff] }
  0x2c   :  { %v334_v32 = vpack.c.bf16 %v285_v25, %v284_v24  ;;  %v160_v20 = vmul.f32 %v868_v4, %v85_v12  ;;  %v161_v21 = vmul.f32 %v868_v4, %v86_v13  ;;  %v122_v24 = vmul.f32 %v868_v4, %v47_v16  ;;  %v69_v16 = vld [vmem:[%s1497_s0 + $0x1b0] sm:$0xff] }
  0x2d   :  { %v316_v36 = vpack.c.bf16 %v249_v29, %v248_v28  ;;  %v123_v25 = vmul.f32 %v868_v4, %v48_v17  ;;  %v70_v17 = vld [vmem:[%s1497_s0 + $0x1b8] sm:$0xff] }
  0x2e   :  { %v235_v28 = vadd.f32 %v873_v5, %v160_v20  ;;  %v236_v29 = vadd.f32 %v873_v5, %v161_v21  ;;  %v144_v20 = vmul.f32 %v868_v4, %v69_v16  ;;  %v145_v21 = vmul.f32 %v868_v4, %v70_v17 }
  0x31   :  { %798 = vmatmul.msk.bf16.gmra.mxu2 %vm380_vm0, %v331_v48  ;;  %808 = vmatmul.msk.bf16.gmra.mxu3 %vm380_vm0, %v341_v49  ;;  %v191_v48 = vadd.f32 %v873_v5, %v116_v40  ;;  %v192_v49 = vadd.f32 %v873_v5, %v117_v41  ;;  %v27_v40 = vld [vmem:[%s1497_s0 + $0x60] sm:$0xff]  ;;  %v28_v41 = vld [vmem:[%s1497_s0 + $0x68] sm:$0xff] }
  0x32   :  { %780 = vmatmul.msk.bf16.gmra.mxu0 %vm380_vm0, %v313_v52  ;;  %789 = vmatmul.msk.bf16.gmra.mxu1 %vm380_vm0, %v322_v53  ;;  %v302_v52 = vmax.f32 %v229_v44, 0.0  ;;  %v303_v53 = vmax.f32 %v230_v45, 0.0  ;;  %v138_v44 = vmul.f32 %v868_v4, %v63_v34  ;;  %v139_v45 = vmul.f32 %v868_v4, %v64_v35 }
  0x33   :  { %v264_v56 = vmax.f32 %v191_v48, 0.0  ;;  %v265_v57 = vmax.f32 %v192_v49, 0.0  ;;  %v102_v48 = vmul.f32 %v868_v4, %v27_v40  ;;  %v103_v49 = vmul.f32 %v868_v4, %v28_v41 }
  0x34   :  { %v343_v59 = vpack.c.bf16 %v303_v53, %v302_v52  ;;  %v213_v52 = vadd.f32 %v873_v5, %v138_v44  ;;  %v214_v53 = vadd.f32 %v873_v5, %v139_v45  ;;  %v67_v44 = vld [vmem:[%s1497_s0 + $0x1a0] sm:$0xff] }
  0x35   :  { %v324_v63 = vpack.c.bf16 %v265_v57, %v264_v56  ;;  %v177_v56 = vadd.f32 %v873_v5, %v102_v48  ;;  %v178_v57 = vadd.f32 %v873_v5, %v103_v49  ;;  %v87_v48 = vld [vmem:[%s1497_s0 + $0x240] sm:$0x3] }
  0x36   :  { %v286_v60 = vmax.f32 %v213_v52, 0.0  ;;  %v287_v61 = vmax.f32 %v214_v53, 0.0  ;;  %v31_v49 = vld [vmem:[%s1497_s0 + $0x80] sm:$0xff]  ;;  %v50_v52 = vld [vmem:[%s1497_s0 + $0x118] sm:$0xff]  ;;  %v142_v53 = vmul.f32 %v868_v4, %v67_v44 }
  0x37   :  { %v250_v0 = vmax.f32 %v177_v56, 0.0  ;;  %v251_v1 = vmax.f32 %v178_v57, 0.0  ;;  %v106_v56 = vmul.f32 %v868_v4, %v31_v49 }
  0x38   :  { %v335_v6 = vpack.c.bf16 %v287_v61, %v286_v60  ;;  %v217_v60 = vadd.f32 %v873_v5, %v142_v53 }
  0x39   :  { %v317_v10 = vpack.c.bf16 %v251_v1, %v250_v0 }
  0x41   :  { %799 = vmatmul.msk.bf16.gmra.mxu2 %vm380_vm0, %v332_v22  ;;  %809 = vmatmul.msk.bf16.gmra.mxu3 %vm380_vm0, %v342_v23  ;;  %v193_v22 = vadd.f32 %v873_v5, %v118_v14  ;;  %v194_v23 = vadd.f32 %v873_v5, %v119_v15  ;;  %v29_v14 = vld [vmem:[%s1497_s0 + $0x70] sm:$0xff]  ;;  %v30_v15 = vld [vmem:[%s1497_s0 + $0x78] sm:$0xff] }
  0x42   :  { %781 = vmatmul.msk.bf16.gmra.mxu0 %vm380_vm0, %v314_v26  ;;  %790 = vmatmul.msk.bf16.gmra.mxu1 %vm380_vm0, %v323_v27  ;;  %v304_v26 = vmax.f32 %v231_v18, 0.0  ;;  %v305_v27 = vmax.f32 %v232_v19, 0.0  ;;  %v140_v18 = vmul.f32 %v868_v4, %v65_v8  ;;  %v141_v19 = vmul.f32 %v868_v4, %v66_v9 }
  0x43   :  { %v266_v30 = vmax.f32 %v193_v22, 0.0  ;;  %v267_v31 = vmax.f32 %v194_v23, 0.0  ;;  %v104_v22 = vmul.f32 %v868_v4, %v29_v14  ;;  %v105_v23 = vmul.f32 %v868_v4, %v30_v15 }
  0x44   :  { %v344_v33 = vpack.c.bf16 %v305_v27, %v304_v26  ;;  %v215_v26 = vadd.f32 %v873_v5, %v140_v18  ;;  %v216_v27 = vadd.f32 %v873_v5, %v141_v19 }
  0x45   :  { %v325_v37 = vpack.c.bf16 %v267_v31, %v266_v30  ;;  %v179_v30 = vadd.f32 %v873_v5, %v104_v22  ;;  %v180_v31 = vadd.f32 %v873_v5, %v105_v23 }
  0x46   :  { %v288_v34 = vmax.f32 %v215_v26, 0.0  ;;  %v289_v35 = vmax.f32 %v216_v27, 0.0 }
  0x47   :  { %v252_v38 = vmax.f32 %v179_v30, 0.0  ;;  %v253_v39 = vmax.f32 %v180_v31, 0.0 }
  0x48   :  { %v336_v42 = vpack.c.bf16 %v289_v35, %v288_v34 }
  0x49   :  { %v318_v45 = vpack.c.bf16 %v253_v39, %v252_v38 }
  0x51   :  { %800 = vmatmul.msk.bf16.gmra.mxu2 %vm380_vm0, %v333_v58  ;;  %810 = vmatmul.msk.bf16.gmra.mxu3 %vm380_vm0, %v343_v59  ;;  %v195_v58 = vadd.f32 %v873_v5, %v120_v50  ;;  %v196_v59 = vadd.f32 %v873_v5, %v121_v51  ;;  %v32_v50 = vld [vmem:[%s1497_s0 + $0x88] sm:$0xff]  ;;  %v49_v51 = vld [vmem:[%s1497_s0 + $0x110] sm:$0xff] }
  0x52   :  { %782 = vmatmul.msk.bf16.gmra.mxu0 %vm380_vm0, %v315_v62  ;;  %791 = vmatmul.msk.bf16.gmra.mxu1 %vm380_vm0, %v324_v63  ;;  %v306_v62 = vmax.f32 %v233_v54, 0.0  ;;  %v307_v63 = vmax.f32 %v234_v55, 0.0  ;;  %v143_v54 = vmul.f32 %v868_v4, %v68_v47  ;;  %v162_v55 = vmul.f32 %v868_v4, %v87_v48 }
  0x53   :  { %v268_v2 = vmax.f32 %v195_v58, 0.0  ;;  %v269_v3 = vmax.f32 %v196_v59, 0.0  ;;  %v107_v57 = vmul.f32 %v868_v4, %v32_v50  ;;  %v124_v58 = vmul.f32 %v868_v4, %v49_v51 }
  0x54   :  { %v345_v7 = vpack.c.bf16 %v307_v63, %v306_v62  ;;  %v125_v59 = vmul.f32 %v868_v4, %v50_v52  ;;  %v218_v61 = vadd.f32 %v873_v5, %v143_v54  ;;  %v237_v62 = vadd.f32 %v873_v5, %v162_v55 }
  0x55   :  { %v326_v11 = vpack.c.bf16 %v269_v3, %v268_v2  ;;  %v181_v63 = vadd.f32 %v873_v5, %v106_v56  ;;  %v182_v0 = vadd.f32 %v873_v5, %v107_v57  ;;  %v199_v1 = vadd.f32 %v873_v5, %v124_v58 }
  0x56   :  { %v200_v2 = vadd.f32 %v873_v5, %v125_v59  ;;  %v290_v3 = vmax.f32 %v217_v60, 0.0 }
  0x57   :  { %v254_v8 = vmax.f32 %v181_v63, 0.0  ;;  %v255_v9 = vmax.f32 %v182_v0, 0.0 }
  0x59   :  { %v319_v14 = vpack.c.bf16 %v255_v9, %v254_v8 }
  0x61   :  { %801 = vmatmul.msk.bf16.gmra.mxu2 %vm380_vm0, %v334_v32  ;;  %811 = vmatmul.msk.bf16.gmra.mxu3 %vm380_vm0, %v344_v33  ;;  %v197_v32 = vadd.f32 %v873_v5, %v122_v24  ;;  %v198_v33 = vadd.f32 %v873_v5, %v123_v25  ;;  %v219_v24 = vadd.f32 %v873_v5, %v144_v20 }
  0x62   :  { %783 = vmatmul.msk.bf16.gmra.mxu0 %vm380_vm0, %v316_v36  ;;  %792 = vmatmul.msk.bf16.gmra.mxu1 %vm380_vm0, %v325_v37  ;;  %v308_v36 = vmax.f32 %v235_v28, 0.0  ;;  %v309_v37 = vmax.f32 %v236_v29, 0.0  ;;  %v220_v25 = vadd.f32 %v873_v5, %v145_v21 }
  0x63   :  { %v270_v40 = vmax.f32 %v197_v32, 0.0  ;;  %v271_v41 = vmax.f32 %v198_v33, 0.0  ;;  %v292_v27 = vmax.f32 %v219_v24, 0.0 }
  0x64   :  { %v346_v43 = vpack.c.bf16 %v309_v37, %v308_v36  ;;  %v293_v28 = vmax.f32 %v220_v25, 0.0 }
  0x65   :  { %v327_v46 = vpack.c.bf16 %v271_v41, %v270_v40 }
  0x66   :  { %v338_v5 = vpack.c.bf16 %v293_v28, %v292_v27 }
  0x71   :  { %802 = vmatmul.msk.bf16.gmra.mxu2 %vm380_vm0, %v335_v6  ;;  %812 = vmatmul.msk.bf16.gmra.mxu3 %vm380_vm0, %v345_v7  ;;  %v291_v6 = vmax.f32 %v218_v61, 0.0  ;;  %v310_v7 = vmax.f32 %v237_v62, 0.0 }
  0x72   :  { %784 = vmatmul.msk.bf16.gmra.mxu0 %vm380_vm0, %v317_v10  ;;  %793 = vmatmul.msk.bf16.gmra.mxu1 %vm380_vm0, %v326_v11  ;;  %v272_v10 = vmax.f32 %v199_v1, 0.0  ;;  %v273_v11 = vmax.f32 %v200_v2, 0.0 }
  0x73   :  { %v337_v12 = vpack.c.bf16 %v291_v6, %v290_v3  ;;  %v347_v13 = vpack.c.bf16 %v310_v7, %v310_v7 }
  0x74   :  { %v328_v15 = vpack.c.bf16 %v273_v11, %v272_v10 }
  0x81   :  { %803 = vmatmul.msk.bf16.gmra.mxu2 %vm380_vm0, %v336_v42  ;;  %813 = vmatmul.msk.bf16.gmra.mxu3 %vm380_vm0, %v346_v43 }
  0x82   :  { %785 = vmatmul.msk.bf16.gmra.mxu0 %vm380_vm0, %v318_v45  ;;  %794 = vmatmul.msk.bf16.gmra.mxu1 %vm380_vm0, %v327_v46 }
  0x8f   :  { %v501_v18 = vpop.f32.mrf.mxu0  ;;  %v546_v19 = vpop.f32.mrf.mxu1 }
  0x90   :  { %685 = vst [vmem:[%s1499_s3] sm:$0xff] %v501_v18 }
  0x91   :  { %804 = vmatmul.msk.bf16.gmra.mxu2 %vm380_vm0, %v337_v12  ;;  %814 = vmatmul.msk.bf16.gmra.mxu3 %vm380_vm0, %v347_v13  ;;  %703 = vst [vmem:[%s1499_s3 + $0x90] sm:$0xff] %v546_v19 }
  0x92   :  { %786 = vmatmul.msk.bf16.gmra.mxu0 %vm380_vm0, %v319_v14  ;;  %795 = vmatmul.msk.bf16.gmra.mxu1 %vm380_vm0, %v328_v15 }
  0x94   :  { %v591_v22 = vpop.f32.mrf.mxu2  ;;  %v641_v23 = vpop.f32.mrf.mxu3 }
  0x95   :  { %721 = vst [vmem:[%s1499_s3 + $0x120] sm:$0xff] %v591_v22 }
  0x96   :  { %741 = vst [vmem:[%s1499_s3 + $0x1c0] sm:$0xff] %v641_v23 }
  0x97   :  { %v503_v26 = vpop.f32.mrf.mxu0  ;;  %v548_v4 = vpop.f32.mrf.mxu1 }
  0x98   :  { %686 = vst [vmem:[%s1499_s3 + $0x8] sm:$0xff] %v503_v26 }
  0x99   :  { %704 = vst [vmem:[%s1499_s3 + $0x98] sm:$0xff] %v548_v4 }
  0x9c   :  { %v593_v29 = vpop.f32.mrf.mxu2  ;;  %v643_v30 = vpop.f32.mrf.mxu3 }
  0x9d   :  { %722 = vst [vmem:[%s1499_s3 + $0x128] sm:$0xff] %v593_v29 }
  0x9e   :  { %742 = vst [vmem:[%s1499_s3 + $0x1c8] sm:$0xff] %v643_v30 }
  0x9f   :  { %v506_v31 = vpop.f32.mrf.mxu0  ;;  %v551_v32 = vpop.f32.mrf.mxu1 }
  0xa0   :  { %687 = vst [vmem:[%s1499_s3 + $0x10] sm:$0xff] %v506_v31 }
  0xa1   :  { %805 = vmatmul.msk.bf16.gmra.mxu2 %vm380_vm0, %v338_v5  ;;  %705 = vst [vmem:[%s1499_s3 + $0xa0] sm:$0xff] %v551_v32 }
  0xa4   :  { %v596_v33 = vpop.f32.mrf.mxu2  ;;  %v646_v34 = vpop.f32.mrf.mxu3 }
  0xa5   :  { %723 = vst [vmem:[%s1499_s3 + $0x130] sm:$0xff] %v596_v33 }
  0xa6   :  { %743 = vst [vmem:[%s1499_s3 + $0x1d0] sm:$0xff] %v646_v34 }
  0xa7   :  { %v508_v35 = vpop.f32.mrf.mxu0  ;;  %v553_v36 = vpop.f32.mrf.mxu1 }
  0xa8   :  { %688 = vst [vmem:[%s1499_s3 + $0x18] sm:$0xff] %v508_v35 }
  0xa9   :  { %706 = vst [vmem:[%s1499_s3 + $0xa8] sm:$0xff] %v553_v36 }
  0xac   :  { %v598_v37 = vpop.f32.mrf.mxu2  ;;  %v648_v38 = vpop.f32.mrf.mxu3 }
  0xad   :  { %724 = vst [vmem:[%s1499_s3 + $0x138] sm:$0xff] %v598_v37 }
  0xae   :  { %744 = vst [vmem:[%s1499_s3 + $0x1d8] sm:$0xff] %v648_v38 }
  0xaf   :  { %v511_v39 = vpop.f32.mrf.mxu0  ;;  %v556_v40 = vpop.f32.mrf.mxu1 }
  0xb0   :  { %689 = vst [vmem:[%s1499_s3 + $0x20] sm:$0xff] %v511_v39 }
  0xb1   :  { %707 = vst [vmem:[%s1499_s3 + $0xb0] sm:$0xff] %v556_v40 }
  0xb4   :  { %v601_v41 = vpop.f32.mrf.mxu2  ;;  %v651_v42 = vpop.f32.mrf.mxu3 }
  0xb5   :  { %725 = vst [vmem:[%s1499_s3 + $0x140] sm:$0xff] %v601_v41 }
  0xb6   :  { %745 = vst [vmem:[%s1499_s3 + $0x1e0] sm:$0xff] %v651_v42 }
  0xb7   :  { %v513_v43 = vpop.f32.mrf.mxu0  ;;  %v558_v44 = vpop.f32.mrf.mxu1 }
  0xb8   :  { %690 = vst [vmem:[%s1499_s3 + $0x28] sm:$0xff] %v513_v43 }
  0xb9   :  { %708 = vst [vmem:[%s1499_s3 + $0xb8] sm:$0xff] %v558_v44 }
  0xbc   :  { %v603_v45 = vpop.f32.mrf.mxu2  ;;  %v653_v46 = vpop.f32.mrf.mxu3 }
  0xbd   :  { %726 = vst [vmem:[%s1499_s3 + $0x148] sm:$0xff] %v603_v45 }
  0xbe   :  { %746 = vst [vmem:[%s1499_s3 + $0x1e8] sm:$0xff] %v653_v46 }
  0xbf   :  { %v516_v47 = vpop.f32.mrf.mxu0  ;;  %v561_v48 = vpop.f32.mrf.mxu1 }
  0xc0   :  { %691 = vst [vmem:[%s1499_s3 + $0x30] sm:$0xff] %v516_v47 }
  0xc1   :  { %709 = vst [vmem:[%s1499_s3 + $0xc0] sm:$0xff] %v561_v48 }
  0xc4   :  { %v606_v49 = vpop.f32.mrf.mxu2  ;;  %v656_v50 = vpop.f32.mrf.mxu3 }
  0xc5   :  { %727 = vst [vmem:[%s1499_s3 + $0x150] sm:$0xff] %v606_v49 }
  0xc6   :  { %747 = vst [vmem:[%s1499_s3 + $0x1f0] sm:$0xff] %v656_v50 }
  0xc7   :  { %v518_v51 = vpop.f32.mrf.mxu0  ;;  %v563_v52 = vpop.f32.mrf.mxu1 }
  0xc8   :  { %692 = vst [vmem:[%s1499_s3 + $0x38] sm:$0xff] %v518_v51 }
  0xc9   :  { %710 = vst [vmem:[%s1499_s3 + $0xc8] sm:$0xff] %v563_v52 }
  0xcc   :  { %v608_v53 = vpop.f32.mrf.mxu2  ;;  %v658_v54 = vpop.f32.mrf.mxu3 }
  0xcd   :  { %728 = vst [vmem:[%s1499_s3 + $0x158] sm:$0xff] %v608_v53 }
  0xce   :  { %748 = vst [vmem:[%s1499_s3 + $0x1f8] sm:$0xff] %v658_v54 }
  0xcf   :  { %v521_v55 = vpop.f32.mrf.mxu0  ;;  %v566_v56 = vpop.f32.mrf.mxu1 }
  0xd0   :  { %693 = vst [vmem:[%s1499_s3 + $0x40] sm:$0xff] %v521_v55 }
  0xd1   :  { %711 = vst [vmem:[%s1499_s3 + $0xd0] sm:$0xff] %v566_v56 }
  0xd4   :  { %v611_v57 = vpop.f32.mrf.mxu2  ;;  %v661_v58 = vpop.f32.mrf.mxu3 }
  0xd5   :  { %729 = vst [vmem:[%s1499_s3 + $0x160] sm:$0xff] %v611_v57 }
  0xd6   :  { %749 = vst [vmem:[%s1499_s3 + $0x200] sm:$0xff] %v661_v58 }
  0xd7   :  { %v523_v59 = vpop.f32.mrf.mxu0  ;;  %v568_v60 = vpop.f32.mrf.mxu1 }
  0xd8   :  { %694 = vst [vmem:[%s1499_s3 + $0x48] sm:$0xff] %v523_v59 }
  0xd9   :  { %712 = vst [vmem:[%s1499_s3 + $0xd8] sm:$0xff] %v568_v60 }
  0xdc   :  { %v613_v61 = vpop.f32.mrf.mxu2  ;;  %v663_v62 = vpop.f32.mrf.mxu3 }
  0xdd   :  { %730 = vst [vmem:[%s1499_s3 + $0x168] sm:$0xff] %v613_v61 }
  0xde   :  { %750 = vst [vmem:[%s1499_s3 + $0x208] sm:$0xff] %v663_v62 }
  0xdf   :  { %v526_v63 = vpop.f32.mrf.mxu0  ;;  %v571_v0 = vpop.f32.mrf.mxu1 }
  0xe0   :  { %695 = vst [vmem:[%s1499_s3 + $0x50] sm:$0xff] %v526_v63 }
  0xe1   :  { %713 = vst [vmem:[%s1499_s3 + $0xe0] sm:$0xff] %v571_v0 }
  0xe4   :  { %v616_v1 = vpop.f32.mrf.mxu2  ;;  %v666_v2 = vpop.f32.mrf.mxu3 }
  0xe5   :  { %731 = vst [vmem:[%s1499_s3 + $0x170] sm:$0xff] %v616_v1 }
  0xe6   :  { %751 = vst [vmem:[%s1499_s3 + $0x210] sm:$0xff] %v666_v2 }
  0xe7   :  { %v528_v3 = vpop.f32.mrf.mxu0  ;;  %v573_v6 = vpop.f32.mrf.mxu1 }
  0xe8   :  { %696 = vst [vmem:[%s1499_s3 + $0x58] sm:$0xff] %v528_v3 }
  0xe9   :  { %714 = vst [vmem:[%s1499_s3 + $0xe8] sm:$0xff] %v573_v6 }
  0xec   :  { %v618_v7 = vpop.f32.mrf.mxu2  ;;  %v668_v8 = vpop.f32.mrf.mxu3 }
  0xed   :  { %732 = vst [vmem:[%s1499_s3 + $0x178] sm:$0xff] %v618_v7 }
  0xee   :  { %752 = vst [vmem:[%s1499_s3 + $0x218] sm:$0xff] %v668_v8 }
  0xef   :  { %v531_v9 = vpop.f32.mrf.mxu0  ;;  %v576_v10 = vpop.f32.mrf.mxu1 }
  0xf0   :  { %697 = vst [vmem:[%s1499_s3 + $0x60] sm:$0xff] %v531_v9 }
  0xf1   :  { %715 = vst [vmem:[%s1499_s3 + $0xf0] sm:$0xff] %v576_v10 }
  0xf4   :  { %v621_v11 = vpop.f32.mrf.mxu2  ;;  %v671_v12 = vpop.f32.mrf.mxu3 }
  0xf5   :  { %733 = vst [vmem:[%s1499_s3 + $0x180] sm:$0xff] %v621_v11 }
  0xf6   :  { %753 = vst [vmem:[%s1499_s3 + $0x220] sm:$0xff] %v671_v12 }
  0xf7   :  { %v533_v13 = vpop.f32.mrf.mxu0  ;;  %v578_v14 = vpop.f32.mrf.mxu1 }
  0xf8   :  { %698 = vst [vmem:[%s1499_s3 + $0x68] sm:$0xff] %v533_v13 }
  0xf9   :  { %716 = vst [vmem:[%s1499_s3 + $0xf8] sm:$0xff] %v578_v14 }
  0xfc   :  { %v623_v15 = vpop.f32.mrf.mxu2  ;;  %v673_v16 = vpop.f32.mrf.mxu3 }
  0xfd   :  { %734 = vst [vmem:[%s1499_s3 + $0x188] sm:$0xff] %v623_v15 }
  0xfe   :  { %754 = vst [vmem:[%s1499_s3 + $0x228] sm:$0xff] %v673_v16 }
  0xff   :  { %v536_v17 = vpop.f32.mrf.mxu0  ;;  %v581_v18 = vpop.f32.mrf.mxu1 }
 0x100   :  { %699 = vst [vmem:[%s1499_s3 + $0x70] sm:$0xff] %v536_v17 }
 0x101   :  { %717 = vst [vmem:[%s1499_s3 + $0x100] sm:$0xff] %v581_v18 }
 0x104   :  { %v626_v19 = vpop.f32.mrf.mxu2  ;;  %v676_v20 = vpop.f32.mrf.mxu3 }
 0x105   :  { %735 = vst [vmem:[%s1499_s3 + $0x190] sm:$0xff] %v626_v19 }
 0x106   :  { %755 = vst [vmem:[%s1499_s3 + $0x230] sm:$0xff] %v676_v20 }
 0x107   :  { %v538_v21 = vpop.f32.mrf.mxu0  ;;  %v583_v22 = vpop.f32.mrf.mxu1 }
 0x108   :  { %700 = vst [vmem:[%s1499_s3 + $0x78] sm:$0xff] %v538_v21 }
 0x109   :  { %718 = vst [vmem:[%s1499_s3 + $0x108] sm:$0xff] %v583_v22 }
 0x10c   :  { %v628_v23 = vpop.f32.mrf.mxu2  ;;  %v678_v24 = vpop.f32.mrf.mxu3 }
 0x10d   :  { %736 = vst [vmem:[%s1499_s3 + $0x198] sm:$0xff] %v628_v23 }
 0x10e   :  { %756 = vst [vmem:[%s1499_s3 + $0x238] sm:$0xff] %v678_v24 }
 0x10f   :  { %v541_v25 = vpop.f32.mrf.mxu0  ;;  %v586_v26 = vpop.f32.mrf.mxu1 }
 0x110   :  { %701 = vst [vmem:[%s1499_s3 + $0x80] sm:$0xff] %v541_v25 }
 0x111   :  { %719 = vst [vmem:[%s1499_s3 + $0x110] sm:$0xff] %v586_v26 }
 0x114   :  { %v631_v4 = vpop.f32.mrf.mxu2  ;;  %v681_v27 = vpop.f32.mrf.mxu3 }
 0x115   :  { %737 = vst [vmem:[%s1499_s3 + $0x1a0] sm:$0xff] %v631_v4 }
 0x116   :  { %757 = vst [vmem:[%s1499_s3 + $0x240] sm:$0x3] %v681_v27 }
 0x117   :  { %v543_v28 = vpop.f32.mrf.mxu0  ;;  %v588_v29 = vpop.f32.mrf.mxu1 }
 0x118   :  { %702 = vst [vmem:[%s1499_s3 + $0x88] sm:$0xff] %v543_v28 }
 0x119   :  { %720 = vst [vmem:[%s1499_s3 + $0x118] sm:$0xff] %v588_v29 }
 0x11c   :  { %v633_v30 = vpop.f32.mrf.mxu2  ;;  %v683_v5 = vpop.f32.mrf.mxu3 }
 0x11d   :  { %738 = vst [vmem:[%s1499_s3 + $0x1a8] sm:$0xff] %v633_v30 }
 0x124   :  { %v636_v31 = vpop.f32.mrf.mxu2 }
 0x125   :  { %739 = vst [vmem:[%s1499_s3 + $0x1b0] sm:$0xff] %v636_v31 }
 0x12c   :  { %v638_v32 = vpop.f32.mrf.mxu2 }
 0x12d   :  { %740 = vst [vmem:[%s1499_s3 + $0x1b8] sm:$0xff] %v638_v32 }

</bundles_post_ra>
